<compile_context>
chip_gen: v6e
topology: v6e:2x2x1
jax: 0.10.0
libtpu: 0.0.40
codegen_flags: <defaults>
</compile_context>

<pallas_src>
import functools

import jax
import jax.numpy as jnp
from jax import lax
from jax.experimental import pallas as pl
from jax.experimental.pallas import tpu as pltpu


def _round_up(x, m):
    return ((x + m - 1) // m) * m


# ---------------------------------------------------------------------------
# Fused multi-layer LSTM kernel
# ---------------------------------------------------------------------------
def _fused_lstm_kernel(*refs, num_layers, seq_len, tc, bp, hs,
                       mask_tail, unroll):
    """All LSTM layers for one time-chunk of Tc steps.

    refs layout:
      x_ref                      : (Tc*Bp, E)   bf16  chunk of inputs (time folded
                                                       into sublanes)
      per layer l: wih_l (K_l,G4) bf16, whh_l (Hs,G4) bf16, b_l (1,G4) f32
      out_ref                    : (Tc*Bp, Hs)  bf16  top-layer h_t of this chunk
      hN_ref, cN_ref             : (L, Bp, Hs)  f32   final hidden / cell states
      gates_sc                   : (Tc*Bp, G4)  f32   hoisted input projection
      act_sc                     : (Tc*Bp, Hs)  bf16  inter-layer activations
      h_sc, c_sc                 : (L, Bp, Hs)  f32   recurrent state carries
    """
    x_ref = refs[0]
    w_refs = refs[1:1 + 3 * num_layers]
    out_ref, hN_ref, cN_ref = refs[1 + 3 * num_layers:4 + 3 * num_layers]
    gates_sc, act_sc, h_sc, c_sc = refs[4 + 3 * num_layers:]

    chunk = pl.program_id(0)

    @pl.when(chunk == 0)
    def _():
        h_sc[...] = jnp.zeros_like(h_sc)
        c_sc[...] = jnp.zeros_like(c_sc)
        if mask_tail:
            hN_ref[...] = jnp.zeros_like(hN_ref)
            cN_ref[...] = jnp.zeros_like(cN_ref)

    for l in range(num_layers):
        wih_ref, whh_ref, b_ref = w_refs[3 * l:3 * l + 3]
        last = (l == num_layers - 1)

        # Hoisted input projection for the whole chunk: one big MXU contraction
        # (bf16 operands, f32 accumulation), bias folded in.  Layer l >= 1 reads
        # the previous layer's activations straight out of VMEM (never HBM).
        xin = x_ref[...] if l == 0 else act_sc[...]
        gates_sc[...] = (
            jnp.dot(xin, wih_ref[...], preferred_element_type=jnp.float32)
            + b_ref[...])

        # W_hh loaded once per chunk & layer, reused across all Tc steps.
        whh = whh_ref[...]

        def step(t, carry, whh=whh, l=l, last=last):
            h_prev, c_prev = carry
            row = pl.multiple_of(t * bp, bp)
            # Serial critical path: one small MXU op + gate elementwise math.
            gates = (gates_sc[pl.ds(row, bp), :]
                     + jnp.dot(h_prev.astype(jnp.bfloat16), whh,
                               preferred_element_type=jnp.float32))
            # PyTorch gate order: i, f, g, o — packed at lane stride hs.
            i = jax.nn.sigmoid(gates[:, 0 * hs:1 * hs])
            f = jax.nn.sigmoid(gates[:, 1 * hs:2 * hs])
            g = jnp.tanh(gates[:, 2 * hs:3 * hs])
            o = jax.nn.sigmoid(gates[:, 3 * hs:4 * hs])
            c_new = f * c_prev + i * g
            h_new = o * jnp.tanh(c_new)
            if last:
                out_ref[pl.ds(row, bp), :] = h_new.astype(out_ref.dtype)
            else:
                act_sc[pl.ds(row, bp), :] = h_new.astype(act_sc.dtype)
            if mask_tail:
                # Only emitted when T was padded up to a chunk multiple: latch
                # the true final state exactly at global step seq_len-1 (cheap
                # scalar compare + branch, no per-step wide selects).
                @pl.when(chunk * tc + t == seq_len - 1)
                def _():
                    hN_ref[l] = h_new
                    cN_ref[l] = c_new
            return (h_new, c_new)

        h_fin, c_fin = lax.fori_loop(0, tc, step, (h_sc[l], c_sc[l]),
                                     unroll=unroll)
        h_sc[l] = h_fin
        c_sc[l] = c_fin
        if not mask_tail:
            # Written every chunk (tiny: Bp x Hs) so the resident hN/cN output
            # blocks never write uninitialized VMEM back to HBM.
            hN_ref[l] = h_fin
            cN_ref[l] = c_fin


# ---------------------------------------------------------------------------
# Host-side layout glue + pallas_call wrapper
# ---------------------------------------------------------------------------
def _pack_gates(w_t, h, hs, g4, rows_p=None, dtype=jnp.bfloat16):
    """(rows, 4h) -> (rows_p, g4): gate g lands at lane offset g*hs, zero pad."""
    rows = w_t.shape[0]
    rows_p = rows if rows_p is None else rows_p
    blocks = []
    for g in range(4):
        blk = w_t[:, g * h:(g + 1) * h]
        blocks.append(jnp.pad(blk, ((0, rows_p - rows), (0, hs - h))))
    out = jnp.concatenate(blocks, axis=1)              # (rows_p, 4*hs)
    if g4 > 4 * hs:
        out = jnp.pad(out, ((0, 0), (0, g4 - 4 * hs)))
    return out.astype(dtype)


def _derive_chunk(T, Bp, E, Hs, G4, L, out_itemsize, *, tc_cap, budget):
    """Pick time-chunk length Tc so the per-chunk VMEM footprint stays under
    `budget` (keeps v7x's 64 MiB VMEM happy while amortizing grid overhead)."""
    per_t = Bp * (2 * 2 * E                # x block (bf16), double-buffered
                  + 2 * out_itemsize * Hs  # out block, double-buffered
                  + 4 * G4                 # gate scratch (f32)
                  + 2 * Hs)                # inter-layer activation scratch (bf16)
    fixed = 0
    for l in range(L):
        k_in = E if l == 0 else Hs
        fixed += 2 * (2 * (k_in + Hs) * G4 + 4 * G4)   # weights + bias (x2 buf)
    fixed += 6 * L * Bp * Hs * 4                       # h/c carries + hN/cN blocks
    tc = (budget - fixed) // max(per_t, 1)
    tc = int(max(1, min(tc_cap, T, tc)))
    return tc, int(fixed + tc * per_t)


def fused_lstm_encoder(x, layers, *, out_dtype=jnp.bfloat16, tc_cap=128,
                       vmem_budget=40 * 1024 * 1024):
    """x: (T, B, E) f32.  layers: [(w_ih (4H,in), w_hh (4H,H), b_ih, b_hh), ...]
    (PyTorch nn.LSTM layout).  Runs ALL layers in one pallas_call.

    Returns (outputs (T,B,H) out_dtype, h_n (L,B,H) f32, c_n (L,B,H) f32)."""
    T, B, E = x.shape
    L = len(layers)
    H = layers[0][1].shape[1]                     # w_hh: (4H, H)

    Bp = _round_up(B, 16)                         # bf16 sublane tile => aligned stores
    Hs = _round_up(H, 128) if H >= 128 else H     # per-gate 128-blocks only for H>=128
    G4 = _round_up(4 * Hs, 128)                   # packed, lane-dense gate width

    out_itemsize = jnp.dtype(out_dtype).itemsize
    Tc, vmem_est = _derive_chunk(T, Bp, E, Hs, G4, L, out_itemsize,
                                 tc_cap=tc_cap, budget=vmem_budget)
    Tpad = _round_up(T, Tc)
    n_chunks = Tpad // Tc
    mask_tail = (Tpad != T)

    # ---- one-time layout glue (XLA): pad batch/time, fold time into sublanes --
    x_p = jnp.zeros((Tpad, Bp, E), jnp.bfloat16)
    x_p = x_p.at[:T, :B, :].set(x.astype(jnp.bfloat16))
    x_flat = x_p.reshape(Tpad * Bp, E)

    inputs = [x_flat]
    in_specs = [pl.BlockSpec((Tc * Bp, E), lambda c: (c, 0))]
    for li, (w_ih, w_hh, b_ih, b_hh) in enumerate(layers):
        k_in = E if li == 0 else Hs
        wih_p = _pack_gates(jnp.transpose(w_ih), H, Hs, G4, rows_p=k_in)
        whh_p = _pack_gates(jnp.transpose(w_hh), H, Hs, G4, rows_p=Hs)
        b_p = _pack_gates((b_ih + b_hh).reshape(1, 4 * H).astype(jnp.float32),
                          H, Hs, G4, rows_p=1, dtype=jnp.float32)
        inputs += [wih_p, whh_p, b_p]
        # Grid-invariant weights (constant index maps).
        in_specs += [pl.BlockSpec((k_in, G4), lambda c: (0, 0)),
                     pl.BlockSpec((Hs, G4), lambda c: (0, 0)),
                     pl.BlockSpec((1, G4), lambda c: (0, 0))]

    # Partial unroll for long chunks / wide states, full unroll when small.
    unroll = Tc if (Tc <= 16 and Hs <= 256) else min(Tc, 8)

    kernel = functools.partial(
        _fused_lstm_kernel, num_layers=L, seq_len=T, tc=Tc, bp=Bp, hs=Hs,
        mask_tail=mask_tail, unroll=unroll)

    out_shapes = (
        jax.ShapeDtypeStruct((Tpad * Bp, Hs), out_dtype),   # top-layer h_t (bf16)
        jax.ShapeDtypeStruct((L, Bp, Hs), jnp.float32),     # final hidden
        jax.ShapeDtypeStruct((L, Bp, Hs), jnp.float32),     # final cell
    )
    out_specs = [
        pl.BlockSpec((Tc * Bp, Hs), lambda c: (c, 0)),
        pl.BlockSpec((L, Bp, Hs), lambda c: (0, 0, 0)),
        pl.BlockSpec((L, Bp, Hs), lambda c: (0, 0, 0)),
    ]
    scratch_shapes = [
        pltpu.VMEM((Tc * Bp, G4), jnp.float32),    # hoisted input-projection gates
        pltpu.VMEM((Tc * Bp, Hs), jnp.bfloat16),   # inter-layer h_t (VMEM only)
        pltpu.VMEM((L, Bp, Hs), jnp.float32),      # h carry
        pltpu.VMEM((L, Bp, Hs), jnp.float32),      # c carry
    ]

    grid_spec = pltpu.PrefetchScalarGridSpec(
        num_scalar_prefetch=0,
        grid=(n_chunks,),
        in_specs=in_specs,
        out_specs=out_specs,
        scratch_shapes=scratch_shapes,
    )

    # Raise the scoped VMEM limit only when the footprint needs it (v5e default
    # is 16 MiB, v6e/v7x 32 MiB); cap well under v7x's 64 MiB physical.
    vmem_limit = None
    if vmem_est > 12 * 1024 * 1024:
        vmem_limit = min(int(vmem_est * 1.25) + (2 << 20), 60 * 1024 * 1024)

    out_flat, h_n, c_n = pl.pallas_call(
        kernel,
        out_shape=out_shapes,
        grid_spec=grid_spec,
        compiler_params=pltpu.CompilerParams(
            dimension_semantics=("arbitrary",),   # time chunks are serial
            vmem_limit_bytes=vmem_limit),
    )(*inputs)

    outputs = out_flat.reshape(Tpad, Bp, Hs)[:T, :B, :H]
    return outputs, h_n[:, :B, :H], c_n[:, :B, :H]


# ---------------------------------------------------------------------------
# Model wrapper (mirrors the PyTorch EncoderLSTM forward)
# ---------------------------------------------------------------------------
class EncoderLSTMParams:
    """Deterministic synthetic parameters mirroring the PyTorch module shapes."""

    def __init__(self, key, vocab_size, embedding_dim, hidden_size, num_layers):
        self.vocab_size = vocab_size
        self.embedding_dim = embedding_dim
        self.hidden_size = hidden_size
        self.num_layers = num_layers

        keys = jax.random.split(key, 1 + 4 * num_layers)
        self.embedding = jax.random.normal(
            keys[0], (vocab_size, embedding_dim), jnp.float32)

        self.layers = []
        for l in range(num_layers):
            in_sz = embedding_dim if l == 0 else hidden_size
            k_wih, k_whh, k_bih, k_bhh = keys[1 + 4 * l:1 + 4 * (l + 1)]
            scale = 0.1
            w_ih = jax.random.uniform(k_wih, (4 * hidden_size, in_sz),
                                      jnp.float32, -scale, scale)
            w_hh = jax.random.uniform(k_whh, (4 * hidden_size, hidden_size),
                                      jnp.float32, -scale, scale)
            b_ih = jax.random.uniform(k_bih, (4 * hidden_size,),
                                      jnp.float32, -scale, scale)
            b_hh = jax.random.uniform(k_bhh, (4 * hidden_size,),
                                      jnp.float32, -scale, scale)
            self.layers.append((w_ih, w_hh, b_ih, b_hh))


def encoder_lstm_forward(params, sequence):
    """sequence: (batch, seq_len) int32 token ids."""
    # Embedding lookup (XLA gather glue) + input dropout (identity, eval mode).
    embedded = jnp.take(params.embedding, sequence, axis=0)   # (B, T, E)
    x = jnp.transpose(embedded, (1, 0, 2))                    # (T, B, E)
    # All LSTM layers (and identity inter-layer dropout) run in ONE pallas_call;
    # inter-layer activations never round-trip HBM.  Output sequence is bf16.
    outputs, hidden, cell = fused_lstm_encoder(x, params.layers)
    return {'encoder_out': (outputs, hidden, cell)}


# ---------------------------------------------------------------------------
# Pure-JAX reference, numerically matched to the kernel (bf16 matmul operands,
# f32 accumulation, f32 elementwise/state).
# ---------------------------------------------------------------------------
def _reference_forward(params, sequence):
    embedded = jnp.take(params.embedding, sequence, axis=0)
    x = jnp.transpose(embedded, (1, 0, 2))
    H = params.hidden_size
    B = sequence.shape[0]

    def mm(a, b):
        return jnp.dot(a.astype(jnp.bfloat16), b.astype(jnp.bfloat16),
                       preferred_element_type=jnp.float32)

    def one_layer(x, w_ih, w_hh, b_ih, b_hh):
        wih_t = jnp.transpose(w_ih)
        whh_t = jnp.transpose(w_hh)
        bias = (b_ih + b_hh).astype(jnp.float32)

        def step(carry, x_t):
            h, c = carry
            gates = mm(x_t, wih_t) + mm(h, whh_t) + bias
            i = jax.nn.sigmoid(gates[:, 0 * H:1 * H])
            f = jax.nn.sigmoid(gates[:, 1 * H:2 * H])
            g = jnp.tanh(gates[:, 2 * H:3 * H])
            o = jax.nn.sigmoid(gates[:, 3 * H:4 * H])
            c = f * c + i * g
            h = o * jnp.tanh(c)
            return (h, c), h
        init = (jnp.zeros((B, H), jnp.float32), jnp.zeros((B, H), jnp.float32))
        (h_n, c_n), outs = lax.scan(step, init, x)
        return outs, h_n, c_n

    hiddens, cells = [], []
    layer_in = x
    for (w_ih, w_hh, b_ih, b_hh) in params.layers:
        layer_in, h_n, c_n = one_layer(layer_in, w_ih, w_hh, b_ih, b_hh)
        hiddens.append(h_n)
        cells.append(c_n)
    return layer_in, jnp.stack(hiddens, 0), jnp.stack(cells, 0)


if __name__ == "__main__":
    VOCAB = 50
    EMB = 32
    HID = 32
    LAYERS = 2
    BATCH = 2
    SEQ = 8

    key = jax.random.PRNGKey(0)
    k_param, k_seq = jax.random.split(key)
    params = EncoderLSTMParams(k_param, VOCAB, EMB, HID, LAYERS)
    sequence = jax.random.randint(k_seq, (BATCH, SEQ), 0, VOCAB, dtype=jnp.int32)

    result = encoder_lstm_forward(params, sequence)
    outputs, hidden, cell = result['encoder_out']
    jax.block_until_ready((outputs, hidden, cell))

    assert outputs.shape == (SEQ, BATCH, HID)
    assert hidden.shape == (LAYERS, BATCH, HID)
    assert cell.shape == (LAYERS, BATCH, HID)

    ref_out, ref_h, ref_c = _reference_forward(params, sequence)
    # Output sequence is stored in bf16 by the kernel (halved HBM writeback);
    # hidden/cell states are full f32.
    assert jnp.allclose(outputs.astype(jnp.float32), ref_out, atol=2e-2), \
        "outputs mismatch"
    assert jnp.allclose(hidden, ref_h, atol=2e-3), "hidden mismatch"
    assert jnp.allclose(cell, ref_c, atol=2e-3), "cell mismatch"

    print("KERNEL_OK")
</pallas_src>

<mosaic_0001>
module attributes {stable_mosaic.version = 11 : i64} {
  func.func @_fused_lstm_kernel(%arg0: i32, %arg1: memref<128x32xbf16, #tpu.memory_space<vmem>>, %arg2: memref<32x128xbf16, #tpu.memory_space<vmem>>, %arg3: memref<32x128xbf16, #tpu.memory_space<vmem>>, %arg4: memref<1x128xf32, #tpu.memory_space<vmem>>, %arg5: memref<32x128xbf16, #tpu.memory_space<vmem>>, %arg6: memref<32x128xbf16, #tpu.memory_space<vmem>>, %arg7: memref<1x128xf32, #tpu.memory_space<vmem>>, %arg8: memref<128x32xbf16, #tpu.memory_space<vmem>>, %arg9: memref<2x16x32xf32, #tpu.memory_space<vmem>>, %arg10: memref<2x16x32xf32, #tpu.memory_space<vmem>>, %arg11: memref<128x128xf32, #tpu.memory_space<vmem>>, %arg12: memref<128x32xbf16, #tpu.memory_space<vmem>>, %arg13: memref<2x16x32xf32, #tpu.memory_space<vmem>>, %arg14: memref<2x16x32xf32, #tpu.memory_space<vmem>>) attributes {dimension_semantics = [#tpu.dimension_semantics<arbitrary>], iteration_bounds = array<i64: 1>, scalar_prefetch = 0 : i64, scratch_operands = 4 : i64, tpu.core_type = #tpu.core_type<tc>, window_params = [{transform_indices = @transform_0, window_bounds = array<i64: 128, 32>}, {pipeline_mode = #tpu.pipeline_mode<synchronous>, transform_indices = @transform_1, window_bounds = array<i64: 32, 128>}, {pipeline_mode = #tpu.pipeline_mode<synchronous>, transform_indices = @transform_2, window_bounds = array<i64: 32, 128>}, {pipeline_mode = #tpu.pipeline_mode<synchronous>, transform_indices = @transform_3, window_bounds = array<i64: 1, 128>}, {pipeline_mode = #tpu.pipeline_mode<synchronous>, transform_indices = @transform_4, window_bounds = array<i64: 32, 128>}, {pipeline_mode = #tpu.pipeline_mode<synchronous>, transform_indices = @transform_5, window_bounds = array<i64: 32, 128>}, {pipeline_mode = #tpu.pipeline_mode<synchronous>, transform_indices = @transform_6, window_bounds = array<i64: 1, 128>}, {transform_indices = @transform_7, window_bounds = array<i64: 128, 32>}, {pipeline_mode = #tpu.pipeline_mode<synchronous>, transform_indices = @transform_8, window_bounds = array<i64: 2, 16, 32>}, {pipeline_mode = #tpu.pipeline_mode<synchronous>, transform_indices = @transform_9, window_bounds = array<i64: 2, 16, 32>}]} {
    %c0_i32 = arith.constant 0 : i32
    %0 = arith.cmpi eq, %arg0, %c0_i32 : i32
    %1 = arith.extui %0 : i1 to i32
    %c0_i32_0 = arith.constant 0 : i32
    %2 = arith.cmpi ne, %1, %c0_i32_0 : i32
    scf.if %2 {
      %cst_177 = arith.constant 0.000000e+00 : f32
      %611 = vector.broadcast %cst_177 : f32 to vector<2x16x32xf32>
      %c0_178 = arith.constant 0 : index
      %c0_179 = arith.constant 0 : index
      %c0_180 = arith.constant 0 : index
      %612 = vector.load %arg13[%c0_178, %c0_179, %c0_180] : memref<2x16x32xf32, #tpu.memory_space<vmem>>, vector<2x16x32xf32>
      tpu.vector_store %arg13[%c0_178, %c0_179, %c0_180], %611 {strides = array<i32>} : memref<2x16x32xf32, #tpu.memory_space<vmem>>, vector<2x16x32xf32>,
      %cst_181 = arith.constant 0.000000e+00 : f32
      %613 = vector.broadcast %cst_181 : f32 to vector<2x16x32xf32>
      %c0_182 = arith.constant 0 : index
      %c0_183 = arith.constant 0 : index
      %c0_184 = arith.constant 0 : index
      %614 = vector.load %arg14[%c0_182, %c0_183, %c0_184] : memref<2x16x32xf32, #tpu.memory_space<vmem>>, vector<2x16x32xf32>
      tpu.vector_store %arg14[%c0_182, %c0_183, %c0_184], %613 {strides = array<i32>} : memref<2x16x32xf32, #tpu.memory_space<vmem>>, vector<2x16x32xf32>,
    } else {
    }
    %c0 = arith.constant 0 : index
    %c0_1 = arith.constant 0 : index
    %3 = vector.load %arg1[%c0, %c0_1] : memref<128x32xbf16, #tpu.memory_space<vmem>>, vector<128x32xbf16>
    %c0_2 = arith.constant 0 : index
    %c0_3 = arith.constant 0 : index
    %4 = vector.load %arg2[%c0_2, %c0_3] : memref<32x128xbf16, #tpu.memory_space<vmem>>, vector<32x128xbf16>
    %cst = arith.constant dense<0.000000e+00> : vector<128x128xf32>
    %5 = tpu.matmul %3, %4, %cst {dimension_numbers = #tpu.dot_dimension_numbers<[1], [0], [0], [1], [0, 0, 1, 1], [], []>} : vector<128x32xbf16>, vector<32x128xbf16>, vector<128x128xf32> -> vector<128x128xf32>
    %c0_4 = arith.constant 0 : index
    %c0_5 = arith.constant 0 : index
    %6 = vector.load %arg4[%c0_4, %c0_5] : memref<1x128xf32, #tpu.memory_space<vmem>>, vector<1x128xf32>
    %7 = vector.broadcast %6 : vector<1x128xf32> to vector<128x128xf32>
    %8 = arith.addf %5, %7 : vector<128x128xf32>
    %c0_6 = arith.constant 0 : index
    %c0_7 = arith.constant 0 : index
    %9 = vector.load %arg11[%c0_6, %c0_7] : memref<128x128xf32, #tpu.memory_space<vmem>>, vector<128x128xf32>
    tpu.vector_store %arg11[%c0_6, %c0_7], %8 {strides = array<i32>} : memref<128x128xf32, #tpu.memory_space<vmem>>, vector<128x128xf32>,
    %c0_8 = arith.constant 0 : index
    %c0_9 = arith.constant 0 : index
    %10 = vector.load %arg3[%c0_8, %c0_9] : memref<32x128xbf16, #tpu.memory_space<vmem>>, vector<32x128xbf16>
    %c0_10 = arith.constant 0 : index
    %c0_11 = arith.constant 0 : index
    %c0_12 = arith.constant 0 : index
    %11 = vector.load %arg13[%c0_10, %c0_11, %c0_12] : memref<2x16x32xf32, #tpu.memory_space<vmem>>, vector<1x16x32xf32>
    %12 = vector.shape_cast %11 : vector<1x16x32xf32> to vector<16x32xf32>
    %c0_13 = arith.constant 0 : index
    %c0_14 = arith.constant 0 : index
    %c0_15 = arith.constant 0 : index
    %13 = vector.load %arg14[%c0_13, %c0_14, %c0_15] : memref<2x16x32xf32, #tpu.memory_space<vmem>>, vector<1x16x32xf32>
    %14 = vector.shape_cast %13 : vector<1x16x32xf32> to vector<16x32xf32>
    %c0_i32_16 = arith.constant 0 : i32
    %c16_i32 = arith.constant 16 : i32
    %15 = arith.muli %c0_i32_16, %c16_i32 : i32
    %16 = tpu.assume_multiple %15, 16 : i32
    %17 = arith.index_cast %16 : i32 to index
    %c0_17 = arith.constant 0 : index
    %18 = vector.load %arg11[%17, %c0_17] : memref<128x128xf32, #tpu.memory_space<vmem>>, vector<16x128xf32>
    %19 = arith.truncf %12 : vector<16x32xf32> to vector<16x32xbf16>
    %cst_18 = arith.constant dense<0.000000e+00> : vector<16x128xf32>
    %20 = tpu.matmul %19, %10, %cst_18 {dimension_numbers = #tpu.dot_dimension_numbers<[1], [0], [0], [1], [0, 0, 1, 1], [], []>} : vector<16x32xbf16>, vector<32x128xbf16>, vector<16x128xf32> -> vector<16x128xf32>
    %21 = arith.addf %18, %20 : vector<16x128xf32>
    %22 = vector.extract_strided_slice %21 {offsets = [0, 0], sizes = [16, 32], strides = [1, 1]} : vector<16x128xf32> to vector<16x32xf32>
    %23 = arith.negf %22 : vector<16x32xf32>
    %24 = math.exp %23 : vector<16x32xf32>
    %cst_19 = arith.constant 1.000000e+00 : f32
    %25 = vector.broadcast %cst_19 : f32 to vector<16x32xf32>
    %26 = arith.addf %25, %24 : vector<16x32xf32>
    %27 = arith.divf %25, %26 : vector<16x32xf32>
    %28 = vector.extract_strided_slice %21 {offsets = [0, 32], sizes = [16, 32], strides = [1, 1]} : vector<16x128xf32> to vector<16x32xf32>
    %29 = arith.negf %28 : vector<16x32xf32>
    %30 = math.exp %29 : vector<16x32xf32>
    %cst_20 = arith.constant 1.000000e+00 : f32
    %31 = vector.broadcast %cst_20 : f32 to vector<16x32xf32>
    %32 = arith.addf %31, %30 : vector<16x32xf32>
    %33 = arith.divf %31, %32 : vector<16x32xf32>
    %34 = vector.extract_strided_slice %21 {offsets = [0, 64], sizes = [16, 32], strides = [1, 1]} : vector<16x128xf32> to vector<16x32xf32>
    %35 = math.tanh %34 : vector<16x32xf32>
    %36 = vector.extract_strided_slice %21 {offsets = [0, 96], sizes = [16, 32], strides = [1, 1]} : vector<16x128xf32> to vector<16x32xf32>
    %37 = arith.negf %36 : vector<16x32xf32>
    %38 = math.exp %37 : vector<16x32xf32>
    %cst_21 = arith.constant 1.000000e+00 : f32
    %39 = vector.broadcast %cst_21 : f32 to vector<16x32xf32>
    %40 = arith.addf %39, %38 : vector<16x32xf32>
    %41 = arith.divf %39, %40 : vector<16x32xf32>
    %42 = arith.mulf %33, %14 : vector<16x32xf32>
    %43 = arith.mulf %27, %35 : vector<16x32xf32>
    %44 = arith.addf %42, %43 : vector<16x32xf32>
    %45 = math.tanh %44 : vector<16x32xf32>
    %46 = arith.mulf %41, %45 : vector<16x32xf32>
    %47 = arith.truncf %46 : vector<16x32xf32> to vector<16x32xbf16>
    %48 = arith.index_cast %16 : i32 to index
    %c0_22 = arith.constant 0 : index
    %49 = vector.load %arg12[%48, %c0_22] : memref<128x32xbf16, #tpu.memory_space<vmem>>, vector<16x32xbf16>
    tpu.vector_store %arg12[%48, %c0_22], %47 {strides = array<i32>} : memref<128x32xbf16, #tpu.memory_space<vmem>>, vector<16x32xbf16>,
    %c1_i32 = arith.constant 1 : i32
    %c16_i32_23 = arith.constant 16 : i32
    %50 = arith.muli %c1_i32, %c16_i32_23 : i32
    %51 = tpu.assume_multiple %50, 16 : i32
    %52 = arith.index_cast %51 : i32 to index
    %c0_24 = arith.constant 0 : index
    %53 = vector.load %arg11[%52, %c0_24] : memref<128x128xf32, #tpu.memory_space<vmem>>, vector<16x128xf32>
    %54 = arith.truncf %46 : vector<16x32xf32> to vector<16x32xbf16>
    %cst_25 = arith.constant dense<0.000000e+00> : vector<16x128xf32>
    %55 = tpu.matmul %54, %10, %cst_25 {dimension_numbers = #tpu.dot_dimension_numbers<[1], [0], [0], [1], [0, 0, 1, 1], [], []>} : vector<16x32xbf16>, vector<32x128xbf16>, vector<16x128xf32> -> vector<16x128xf32>
    %56 = arith.addf %53, %55 : vector<16x128xf32>
    %57 = vector.extract_strided_slice %56 {offsets = [0, 0], sizes = [16, 32], strides = [1, 1]} : vector<16x128xf32> to vector<16x32xf32>
    %58 = arith.negf %57 : vector<16x32xf32>
    %59 = math.exp %58 : vector<16x32xf32>
    %cst_26 = arith.constant 1.000000e+00 : f32
    %60 = vector.broadcast %cst_26 : f32 to vector<16x32xf32>
    %61 = arith.addf %60, %59 : vector<16x32xf32>
    %62 = arith.divf %60, %61 : vector<16x32xf32>
    %63 = vector.extract_strided_slice %56 {offsets = [0, 32], sizes = [16, 32], strides = [1, 1]} : vector<16x128xf32> to vector<16x32xf32>
    %64 = arith.negf %63 : vector<16x32xf32>
    %65 = math.exp %64 : vector<16x32xf32>
    %cst_27 = arith.constant 1.000000e+00 : f32
    %66 = vector.broadcast %cst_27 : f32 to vector<16x32xf32>
    %67 = arith.addf %66, %65 : vector<16x32xf32>
    %68 = arith.divf %66, %67 : vector<16x32xf32>
    %69 = vector.extract_strided_slice %56 {offsets = [0, 64], sizes = [16, 32], strides = [1, 1]} : vector<16x128xf32> to vector<16x32xf32>
    %70 = math.tanh %69 : vector<16x32xf32>
    %71 = vector.extract_strided_slice %56 {offsets = [0, 96], sizes = [16, 32], strides = [1, 1]} : vector<16x128xf32> to vector<16x32xf32>
    %72 = arith.negf %71 : vector<16x32xf32>
    %73 = math.exp %72 : vector<16x32xf32>
    %cst_28 = arith.constant 1.000000e+00 : f32
    %74 = vector.broadcast %cst_28 : f32 to vector<16x32xf32>
    %75 = arith.addf %74, %73 : vector<16x32xf32>
    %76 = arith.divf %74, %75 : vector<16x32xf32>
    %77 = arith.mulf %68, %44 : vector<16x32xf32>
    %78 = arith.mulf %62, %70 : vector<16x32xf32>
    %79 = arith.addf %77, %78 : vector<16x32xf32>
    %80 = math.tanh %79 : vector<16x32xf32>
    %81 = arith.mulf %76, %80 : vector<16x32xf32>
    %82 = arith.truncf %81 : vector<16x32xf32> to vector<16x32xbf16>
    %83 = arith.index_cast %51 : i32 to index
    %c0_29 = arith.constant 0 : index
    %84 = vector.load %arg12[%83, %c0_29] : memref<128x32xbf16, #tpu.memory_space<vmem>>, vector<16x32xbf16>
    tpu.vector_store %arg12[%83, %c0_29], %82 {strides = array<i32>} : memref<128x32xbf16, #tpu.memory_space<vmem>>, vector<16x32xbf16>,
    %c2_i32 = arith.constant 2 : i32
    %c16_i32_30 = arith.constant 16 : i32
    %85 = arith.muli %c2_i32, %c16_i32_30 : i32
    %86 = tpu.assume_multiple %85, 16 : i32
    %87 = arith.index_cast %86 : i32 to index
    %c0_31 = arith.constant 0 : index
    %88 = vector.load %arg11[%87, %c0_31] : memref<128x128xf32, #tpu.memory_space<vmem>>, vector<16x128xf32>
    %89 = arith.truncf %81 : vector<16x32xf32> to vector<16x32xbf16>
    %cst_32 = arith.constant dense<0.000000e+00> : vector<16x128xf32>
    %90 = tpu.matmul %89, %10, %cst_32 {dimension_numbers = #tpu.dot_dimension_numbers<[1], [0], [0], [1], [0, 0, 1, 1], [], []>} : vector<16x32xbf16>, vector<32x128xbf16>, vector<16x128xf32> -> vector<16x128xf32>
    %91 = arith.addf %88, %90 : vector<16x128xf32>
    %92 = vector.extract_strided_slice %91 {offsets = [0, 0], sizes = [16, 32], strides = [1, 1]} : vector<16x128xf32> to vector<16x32xf32>
    %93 = arith.negf %92 : vector<16x32xf32>
    %94 = math.exp %93 : vector<16x32xf32>
    %cst_33 = arith.constant 1.000000e+00 : f32
    %95 = vector.broadcast %cst_33 : f32 to vector<16x32xf32>
    %96 = arith.addf %95, %94 : vector<16x32xf32>
    %97 = arith.divf %95, %96 : vector<16x32xf32>
    %98 = vector.extract_strided_slice %91 {offsets = [0, 32], sizes = [16, 32], strides = [1, 1]} : vector<16x128xf32> to vector<16x32xf32>
    %99 = arith.negf %98 : vector<16x32xf32>
    %100 = math.exp %99 : vector<16x32xf32>
    %cst_34 = arith.constant 1.000000e+00 : f32
    %101 = vector.broadcast %cst_34 : f32 to vector<16x32xf32>
    %102 = arith.addf %101, %100 : vector<16x32xf32>
    %103 = arith.divf %101, %102 : vector<16x32xf32>
    %104 = vector.extract_strided_slice %91 {offsets = [0, 64], sizes = [16, 32], strides = [1, 1]} : vector<16x128xf32> to vector<16x32xf32>
    %105 = math.tanh %104 : vector<16x32xf32>
    %106 = vector.extract_strided_slice %91 {offsets = [0, 96], sizes = [16, 32], strides = [1, 1]} : vector<16x128xf32> to vector<16x32xf32>
    %107 = arith.negf %106 : vector<16x32xf32>
    %108 = math.exp %107 : vector<16x32xf32>
    %cst_35 = arith.constant 1.000000e+00 : f32
    %109 = vector.broadcast %cst_35 : f32 to vector<16x32xf32>
    %110 = arith.addf %109, %108 : vector<16x32xf32>
    %111 = arith.divf %109, %110 : vector<16x32xf32>
    %112 = arith.mulf %103, %79 : vector<16x32xf32>
    %113 = arith.mulf %97, %105 : vector<16x32xf32>
    %114 = arith.addf %112, %113 : vector<16x32xf32>
    %115 = math.tanh %114 : vector<16x32xf32>
    %116 = arith.mulf %111, %115 : vector<16x32xf32>
    %117 = arith.truncf %116 : vector<16x32xf32> to vector<16x32xbf16>
    %118 = arith.index_cast %86 : i32 to index
    %c0_36 = arith.constant 0 : index
    %119 = vector.load %arg12[%118, %c0_36] : memref<128x32xbf16, #tpu.memory_space<vmem>>, vector<16x32xbf16>
    tpu.vector_store %arg12[%118, %c0_36], %117 {strides = array<i32>} : memref<128x32xbf16, #tpu.memory_space<vmem>>, vector<16x32xbf16>,
    %c3_i32 = arith.constant 3 : i32
    %c16_i32_37 = arith.constant 16 : i32
    %120 = arith.muli %c3_i32, %c16_i32_37 : i32
    %121 = tpu.assume_multiple %120, 16 : i32
    %122 = arith.index_cast %121 : i32 to index
    %c0_38 = arith.constant 0 : index
    %123 = vector.load %arg11[%122, %c0_38] : memref<128x128xf32, #tpu.memory_space<vmem>>, vector<16x128xf32>
    %124 = arith.truncf %116 : vector<16x32xf32> to vector<16x32xbf16>
    %cst_39 = arith.constant dense<0.000000e+00> : vector<16x128xf32>
    %125 = tpu.matmul %124, %10, %cst_39 {dimension_numbers = #tpu.dot_dimension_numbers<[1], [0], [0], [1], [0, 0, 1, 1], [], []>} : vector<16x32xbf16>, vector<32x128xbf16>, vector<16x128xf32> -> vector<16x128xf32>
    %126 = arith.addf %123, %125 : vector<16x128xf32>
    %127 = vector.extract_strided_slice %126 {offsets = [0, 0], sizes = [16, 32], strides = [1, 1]} : vector<16x128xf32> to vector<16x32xf32>
    %128 = arith.negf %127 : vector<16x32xf32>
    %129 = math.exp %128 : vector<16x32xf32>
    %cst_40 = arith.constant 1.000000e+00 : f32
    %130 = vector.broadcast %cst_40 : f32 to vector<16x32xf32>
    %131 = arith.addf %130, %129 : vector<16x32xf32>
    %132 = arith.divf %130, %131 : vector<16x32xf32>
    %133 = vector.extract_strided_slice %126 {offsets = [0, 32], sizes = [16, 32], strides = [1, 1]} : vector<16x128xf32> to vector<16x32xf32>
    %134 = arith.negf %133 : vector<16x32xf32>
    %135 = math.exp %134 : vector<16x32xf32>
    %cst_41 = arith.constant 1.000000e+00 : f32
    %136 = vector.broadcast %cst_41 : f32 to vector<16x32xf32>
    %137 = arith.addf %136, %135 : vector<16x32xf32>
    %138 = arith.divf %136, %137 : vector<16x32xf32>
    %139 = vector.extract_strided_slice %126 {offsets = [0, 64], sizes = [16, 32], strides = [1, 1]} : vector<16x128xf32> to vector<16x32xf32>
    %140 = math.tanh %139 : vector<16x32xf32>
    %141 = vector.extract_strided_slice %126 {offsets = [0, 96], sizes = [16, 32], strides = [1, 1]} : vector<16x128xf32> to vector<16x32xf32>
    %142 = arith.negf %141 : vector<16x32xf32>
    %143 = math.exp %142 : vector<16x32xf32>
    %cst_42 = arith.constant 1.000000e+00 : f32
    %144 = vector.broadcast %cst_42 : f32 to vector<16x32xf32>
    %145 = arith.addf %144, %143 : vector<16x32xf32>
    %146 = arith.divf %144, %145 : vector<16x32xf32>
    %147 = arith.mulf %138, %114 : vector<16x32xf32>
    %148 = arith.mulf %132, %140 : vector<16x32xf32>
    %149 = arith.addf %147, %148 : vector<16x32xf32>
    %150 = math.tanh %149 : vector<16x32xf32>
    %151 = arith.mulf %146, %150 : vector<16x32xf32>
    %152 = arith.truncf %151 : vector<16x32xf32> to vector<16x32xbf16>
    %153 = arith.index_cast %121 : i32 to index
    %c0_43 = arith.constant 0 : index
    %154 = vector.load %arg12[%153, %c0_43] : memref<128x32xbf16, #tpu.memory_space<vmem>>, vector<16x32xbf16>
    tpu.vector_store %arg12[%153, %c0_43], %152 {strides = array<i32>} : memref<128x32xbf16, #tpu.memory_space<vmem>>, vector<16x32xbf16>,
    %c4_i32 = arith.constant 4 : i32
    %c16_i32_44 = arith.constant 16 : i32
    %155 = arith.muli %c4_i32, %c16_i32_44 : i32
    %156 = tpu.assume_multiple %155, 16 : i32
    %157 = arith.index_cast %156 : i32 to index
    %c0_45 = arith.constant 0 : index
    %158 = vector.load %arg11[%157, %c0_45] : memref<128x128xf32, #tpu.memory_space<vmem>>, vector<16x128xf32>
    %159 = arith.truncf %151 : vector<16x32xf32> to vector<16x32xbf16>
    %cst_46 = arith.constant dense<0.000000e+00> : vector<16x128xf32>
    %160 = tpu.matmul %159, %10, %cst_46 {dimension_numbers = #tpu.dot_dimension_numbers<[1], [0], [0], [1], [0, 0, 1, 1], [], []>} : vector<16x32xbf16>, vector<32x128xbf16>, vector<16x128xf32> -> vector<16x128xf32>
    %161 = arith.addf %158, %160 : vector<16x128xf32>
    %162 = vector.extract_strided_slice %161 {offsets = [0, 0], sizes = [16, 32], strides = [1, 1]} : vector<16x128xf32> to vector<16x32xf32>
    %163 = arith.negf %162 : vector<16x32xf32>
    %164 = math.exp %163 : vector<16x32xf32>
    %cst_47 = arith.constant 1.000000e+00 : f32
    %165 = vector.broadcast %cst_47 : f32 to vector<16x32xf32>
    %166 = arith.addf %165, %164 : vector<16x32xf32>
    %167 = arith.divf %165, %166 : vector<16x32xf32>
    %168 = vector.extract_strided_slice %161 {offsets = [0, 32], sizes = [16, 32], strides = [1, 1]} : vector<16x128xf32> to vector<16x32xf32>
    %169 = arith.negf %168 : vector<16x32xf32>
    %170 = math.exp %169 : vector<16x32xf32>
    %cst_48 = arith.constant 1.000000e+00 : f32
    %171 = vector.broadcast %cst_48 : f32 to vector<16x32xf32>
    %172 = arith.addf %171, %170 : vector<16x32xf32>
    %173 = arith.divf %171, %172 : vector<16x32xf32>
    %174 = vector.extract_strided_slice %161 {offsets = [0, 64], sizes = [16, 32], strides = [1, 1]} : vector<16x128xf32> to vector<16x32xf32>
    %175 = math.tanh %174 : vector<16x32xf32>
    %176 = vector.extract_strided_slice %161 {offsets = [0, 96], sizes = [16, 32], strides = [1, 1]} : vector<16x128xf32> to vector<16x32xf32>
    %177 = arith.negf %176 : vector<16x32xf32>
    %178 = math.exp %177 : vector<16x32xf32>
    %cst_49 = arith.constant 1.000000e+00 : f32
    %179 = vector.broadcast %cst_49 : f32 to vector<16x32xf32>
    %180 = arith.addf %179, %178 : vector<16x32xf32>
    %181 = arith.divf %179, %180 : vector<16x32xf32>
    %182 = arith.mulf %173, %149 : vector<16x32xf32>
    %183 = arith.mulf %167, %175 : vector<16x32xf32>
    %184 = arith.addf %182, %183 : vector<16x32xf32>
    %185 = math.tanh %184 : vector<16x32xf32>
    %186 = arith.mulf %181, %185 : vector<16x32xf32>
    %187 = arith.truncf %186 : vector<16x32xf32> to vector<16x32xbf16>
    %188 = arith.index_cast %156 : i32 to index
    %c0_50 = arith.constant 0 : index
    %189 = vector.load %arg12[%188, %c0_50] : memref<128x32xbf16, #tpu.memory_space<vmem>>, vector<16x32xbf16>
    tpu.vector_store %arg12[%188, %c0_50], %187 {strides = array<i32>} : memref<128x32xbf16, #tpu.memory_space<vmem>>, vector<16x32xbf16>,
    %c5_i32 = arith.constant 5 : i32
    %c16_i32_51 = arith.constant 16 : i32
    %190 = arith.muli %c5_i32, %c16_i32_51 : i32
    %191 = tpu.assume_multiple %190, 16 : i32
    %192 = arith.index_cast %191 : i32 to index
    %c0_52 = arith.constant 0 : index
    %193 = vector.load %arg11[%192, %c0_52] : memref<128x128xf32, #tpu.memory_space<vmem>>, vector<16x128xf32>
    %194 = arith.truncf %186 : vector<16x32xf32> to vector<16x32xbf16>
    %cst_53 = arith.constant dense<0.000000e+00> : vector<16x128xf32>
    %195 = tpu.matmul %194, %10, %cst_53 {dimension_numbers = #tpu.dot_dimension_numbers<[1], [0], [0], [1], [0, 0, 1, 1], [], []>} : vector<16x32xbf16>, vector<32x128xbf16>, vector<16x128xf32> -> vector<16x128xf32>
    %196 = arith.addf %193, %195 : vector<16x128xf32>
    %197 = vector.extract_strided_slice %196 {offsets = [0, 0], sizes = [16, 32], strides = [1, 1]} : vector<16x128xf32> to vector<16x32xf32>
    %198 = arith.negf %197 : vector<16x32xf32>
    %199 = math.exp %198 : vector<16x32xf32>
    %cst_54 = arith.constant 1.000000e+00 : f32
    %200 = vector.broadcast %cst_54 : f32 to vector<16x32xf32>
    %201 = arith.addf %200, %199 : vector<16x32xf32>
    %202 = arith.divf %200, %201 : vector<16x32xf32>
    %203 = vector.extract_strided_slice %196 {offsets = [0, 32], sizes = [16, 32], strides = [1, 1]} : vector<16x128xf32> to vector<16x32xf32>
    %204 = arith.negf %203 : vector<16x32xf32>
    %205 = math.exp %204 : vector<16x32xf32>
    %cst_55 = arith.constant 1.000000e+00 : f32
    %206 = vector.broadcast %cst_55 : f32 to vector<16x32xf32>
    %207 = arith.addf %206, %205 : vector<16x32xf32>
    %208 = arith.divf %206, %207 : vector<16x32xf32>
    %209 = vector.extract_strided_slice %196 {offsets = [0, 64], sizes = [16, 32], strides = [1, 1]} : vector<16x128xf32> to vector<16x32xf32>
    %210 = math.tanh %209 : vector<16x32xf32>
    %211 = vector.extract_strided_slice %196 {offsets = [0, 96], sizes = [16, 32], strides = [1, 1]} : vector<16x128xf32> to vector<16x32xf32>
    %212 = arith.negf %211 : vector<16x32xf32>
    %213 = math.exp %212 : vector<16x32xf32>
    %cst_56 = arith.constant 1.000000e+00 : f32
    %214 = vector.broadcast %cst_56 : f32 to vector<16x32xf32>
    %215 = arith.addf %214, %213 : vector<16x32xf32>
    %216 = arith.divf %214, %215 : vector<16x32xf32>
    %217 = arith.mulf %208, %184 : vector<16x32xf32>
    %218 = arith.mulf %202, %210 : vector<16x32xf32>
    %219 = arith.addf %217, %218 : vector<16x32xf32>
    %220 = math.tanh %219 : vector<16x32xf32>
    %221 = arith.mulf %216, %220 : vector<16x32xf32>
    %222 = arith.truncf %221 : vector<16x32xf32> to vector<16x32xbf16>
    %223 = arith.index_cast %191 : i32 to index
    %c0_57 = arith.constant 0 : index
    %224 = vector.load %arg12[%223, %c0_57] : memref<128x32xbf16, #tpu.memory_space<vmem>>, vector<16x32xbf16>
    tpu.vector_store %arg12[%223, %c0_57], %222 {strides = array<i32>} : memref<128x32xbf16, #tpu.memory_space<vmem>>, vector<16x32xbf16>,
    %c6_i32 = arith.constant 6 : i32
    %c16_i32_58 = arith.constant 16 : i32
    %225 = arith.muli %c6_i32, %c16_i32_58 : i32
    %226 = tpu.assume_multiple %225, 16 : i32
    %227 = arith.index_cast %226 : i32 to index
    %c0_59 = arith.constant 0 : index
    %228 = vector.load %arg11[%227, %c0_59] : memref<128x128xf32, #tpu.memory_space<vmem>>, vector<16x128xf32>
    %229 = arith.truncf %221 : vector<16x32xf32> to vector<16x32xbf16>
    %cst_60 = arith.constant dense<0.000000e+00> : vector<16x128xf32>
    %230 = tpu.matmul %229, %10, %cst_60 {dimension_numbers = #tpu.dot_dimension_numbers<[1], [0], [0], [1], [0, 0, 1, 1], [], []>} : vector<16x32xbf16>, vector<32x128xbf16>, vector<16x128xf32> -> vector<16x128xf32>
    %231 = arith.addf %228, %230 : vector<16x128xf32>
    %232 = vector.extract_strided_slice %231 {offsets = [0, 0], sizes = [16, 32], strides = [1, 1]} : vector<16x128xf32> to vector<16x32xf32>
    %233 = arith.negf %232 : vector<16x32xf32>
    %234 = math.exp %233 : vector<16x32xf32>
    %cst_61 = arith.constant 1.000000e+00 : f32
    %235 = vector.broadcast %cst_61 : f32 to vector<16x32xf32>
    %236 = arith.addf %235, %234 : vector<16x32xf32>
    %237 = arith.divf %235, %236 : vector<16x32xf32>
    %238 = vector.extract_strided_slice %231 {offsets = [0, 32], sizes = [16, 32], strides = [1, 1]} : vector<16x128xf32> to vector<16x32xf32>
    %239 = arith.negf %238 : vector<16x32xf32>
    %240 = math.exp %239 : vector<16x32xf32>
    %cst_62 = arith.constant 1.000000e+00 : f32
    %241 = vector.broadcast %cst_62 : f32 to vector<16x32xf32>
    %242 = arith.addf %241, %240 : vector<16x32xf32>
    %243 = arith.divf %241, %242 : vector<16x32xf32>
    %244 = vector.extract_strided_slice %231 {offsets = [0, 64], sizes = [16, 32], strides = [1, 1]} : vector<16x128xf32> to vector<16x32xf32>
    %245 = math.tanh %244 : vector<16x32xf32>
    %246 = vector.extract_strided_slice %231 {offsets = [0, 96], sizes = [16, 32], strides = [1, 1]} : vector<16x128xf32> to vector<16x32xf32>
    %247 = arith.negf %246 : vector<16x32xf32>
    %248 = math.exp %247 : vector<16x32xf32>
    %cst_63 = arith.constant 1.000000e+00 : f32
    %249 = vector.broadcast %cst_63 : f32 to vector<16x32xf32>
    %250 = arith.addf %249, %248 : vector<16x32xf32>
    %251 = arith.divf %249, %250 : vector<16x32xf32>
    %252 = arith.mulf %243, %219 : vector<16x32xf32>
    %253 = arith.mulf %237, %245 : vector<16x32xf32>
    %254 = arith.addf %252, %253 : vector<16x32xf32>
    %255 = math.tanh %254 : vector<16x32xf32>
    %256 = arith.mulf %251, %255 : vector<16x32xf32>
    %257 = arith.truncf %256 : vector<16x32xf32> to vector<16x32xbf16>
    %258 = arith.index_cast %226 : i32 to index
    %c0_64 = arith.constant 0 : index
    %259 = vector.load %arg12[%258, %c0_64] : memref<128x32xbf16, #tpu.memory_space<vmem>>, vector<16x32xbf16>
    tpu.vector_store %arg12[%258, %c0_64], %257 {strides = array<i32>} : memref<128x32xbf16, #tpu.memory_space<vmem>>, vector<16x32xbf16>,
    %c7_i32 = arith.constant 7 : i32
    %c16_i32_65 = arith.constant 16 : i32
    %260 = arith.muli %c7_i32, %c16_i32_65 : i32
    %261 = tpu.assume_multiple %260, 16 : i32
    %262 = arith.index_cast %261 : i32 to index
    %c0_66 = arith.constant 0 : index
    %263 = vector.load %arg11[%262, %c0_66] : memref<128x128xf32, #tpu.memory_space<vmem>>, vector<16x128xf32>
    %264 = arith.truncf %256 : vector<16x32xf32> to vector<16x32xbf16>
    %cst_67 = arith.constant dense<0.000000e+00> : vector<16x128xf32>
    %265 = tpu.matmul %264, %10, %cst_67 {dimension_numbers = #tpu.dot_dimension_numbers<[1], [0], [0], [1], [0, 0, 1, 1], [], []>} : vector<16x32xbf16>, vector<32x128xbf16>, vector<16x128xf32> -> vector<16x128xf32>
    %266 = arith.addf %263, %265 : vector<16x128xf32>
    %267 = vector.extract_strided_slice %266 {offsets = [0, 0], sizes = [16, 32], strides = [1, 1]} : vector<16x128xf32> to vector<16x32xf32>
    %268 = arith.negf %267 : vector<16x32xf32>
    %269 = math.exp %268 : vector<16x32xf32>
    %cst_68 = arith.constant 1.000000e+00 : f32
    %270 = vector.broadcast %cst_68 : f32 to vector<16x32xf32>
    %271 = arith.addf %270, %269 : vector<16x32xf32>
    %272 = arith.divf %270, %271 : vector<16x32xf32>
    %273 = vector.extract_strided_slice %266 {offsets = [0, 32], sizes = [16, 32], strides = [1, 1]} : vector<16x128xf32> to vector<16x32xf32>
    %274 = arith.negf %273 : vector<16x32xf32>
    %275 = math.exp %274 : vector<16x32xf32>
    %cst_69 = arith.constant 1.000000e+00 : f32
    %276 = vector.broadcast %cst_69 : f32 to vector<16x32xf32>
    %277 = arith.addf %276, %275 : vector<16x32xf32>
    %278 = arith.divf %276, %277 : vector<16x32xf32>
    %279 = vector.extract_strided_slice %266 {offsets = [0, 64], sizes = [16, 32], strides = [1, 1]} : vector<16x128xf32> to vector<16x32xf32>
    %280 = math.tanh %279 : vector<16x32xf32>
    %281 = vector.extract_strided_slice %266 {offsets = [0, 96], sizes = [16, 32], strides = [1, 1]} : vector<16x128xf32> to vector<16x32xf32>
    %282 = arith.negf %281 : vector<16x32xf32>
    %283 = math.exp %282 : vector<16x32xf32>
    %cst_70 = arith.constant 1.000000e+00 : f32
    %284 = vector.broadcast %cst_70 : f32 to vector<16x32xf32>
    %285 = arith.addf %284, %283 : vector<16x32xf32>
    %286 = arith.divf %284, %285 : vector<16x32xf32>
    %287 = arith.mulf %278, %254 : vector<16x32xf32>
    %288 = arith.mulf %272, %280 : vector<16x32xf32>
    %289 = arith.addf %287, %288 : vector<16x32xf32>
    %290 = math.tanh %289 : vector<16x32xf32>
    %291 = arith.mulf %286, %290 : vector<16x32xf32>
    %292 = arith.truncf %291 : vector<16x32xf32> to vector<16x32xbf16>
    %293 = arith.index_cast %261 : i32 to index
    %c0_71 = arith.constant 0 : index
    %294 = vector.load %arg12[%293, %c0_71] : memref<128x32xbf16, #tpu.memory_space<vmem>>, vector<16x32xbf16>
    tpu.vector_store %arg12[%293, %c0_71], %292 {strides = array<i32>} : memref<128x32xbf16, #tpu.memory_space<vmem>>, vector<16x32xbf16>,
    %c8_i32 = arith.constant 8 : i32
    %c0_72 = arith.constant 0 : index
    %c0_73 = arith.constant 0 : index
    %c0_74 = arith.constant 0 : index
    %295 = vector.load %arg13[%c0_72, %c0_73, %c0_74] : memref<2x16x32xf32, #tpu.memory_space<vmem>>, vector<1x16x32xf32>
    %296 = vector.shape_cast %295 : vector<1x16x32xf32> to vector<16x32xf32>
    %297 = vector.shape_cast %291 : vector<16x32xf32> to vector<1x16x32xf32>
    tpu.vector_store %arg13[%c0_72, %c0_73, %c0_74], %297 {strides = array<i32>} : memref<2x16x32xf32, #tpu.memory_space<vmem>>, vector<1x16x32xf32>,
    %c0_75 = arith.constant 0 : index
    %c0_76 = arith.constant 0 : index
    %c0_77 = arith.constant 0 : index
    %298 = vector.load %arg14[%c0_75, %c0_76, %c0_77] : memref<2x16x32xf32, #tpu.memory_space<vmem>>, vector<1x16x32xf32>
    %299 = vector.shape_cast %298 : vector<1x16x32xf32> to vector<16x32xf32>
    %300 = vector.shape_cast %289 : vector<16x32xf32> to vector<1x16x32xf32>
    tpu.vector_store %arg14[%c0_75, %c0_76, %c0_77], %300 {strides = array<i32>} : memref<2x16x32xf32, #tpu.memory_space<vmem>>, vector<1x16x32xf32>,
    %c0_78 = arith.constant 0 : index
    %c0_79 = arith.constant 0 : index
    %c0_80 = arith.constant 0 : index
    %301 = vector.load %arg9[%c0_78, %c0_79, %c0_80] : memref<2x16x32xf32, #tpu.memory_space<vmem>>, vector<1x16x32xf32>
    %302 = vector.shape_cast %301 : vector<1x16x32xf32> to vector<16x32xf32>
    %303 = vector.shape_cast %291 : vector<16x32xf32> to vector<1x16x32xf32>
    tpu.vector_store %arg9[%c0_78, %c0_79, %c0_80], %303 {strides = array<i32>} : memref<2x16x32xf32, #tpu.memory_space<vmem>>, vector<1x16x32xf32>,
    %c0_81 = arith.constant 0 : index
    %c0_82 = arith.constant 0 : index
    %c0_83 = arith.constant 0 : index
    %304 = vector.load %arg10[%c0_81, %c0_82, %c0_83] : memref<2x16x32xf32, #tpu.memory_space<vmem>>, vector<1x16x32xf32>
    %305 = vector.shape_cast %304 : vector<1x16x32xf32> to vector<16x32xf32>
    %306 = vector.shape_cast %289 : vector<16x32xf32> to vector<1x16x32xf32>
    tpu.vector_store %arg10[%c0_81, %c0_82, %c0_83], %306 {strides = array<i32>} : memref<2x16x32xf32, #tpu.memory_space<vmem>>, vector<1x16x32xf32>,
    %c0_84 = arith.constant 0 : index
    %c0_85 = arith.constant 0 : index
    %307 = vector.load %arg12[%c0_84, %c0_85] : memref<128x32xbf16, #tpu.memory_space<vmem>>, vector<128x32xbf16>
    %c0_86 = arith.constant 0 : index
    %c0_87 = arith.constant 0 : index
    %308 = vector.load %arg5[%c0_86, %c0_87] : memref<32x128xbf16, #tpu.memory_space<vmem>>, vector<32x128xbf16>
    %cst_88 = arith.constant dense<0.000000e+00> : vector<128x128xf32>
    %309 = tpu.matmul %307, %308, %cst_88 {dimension_numbers = #tpu.dot_dimension_numbers<[1], [0], [0], [1], [0, 0, 1, 1], [], []>} : vector<128x32xbf16>, vector<32x128xbf16>, vector<128x128xf32> -> vector<128x128xf32>
    %c0_89 = arith.constant 0 : index
    %c0_90 = arith.constant 0 : index
    %310 = vector.load %arg7[%c0_89, %c0_90] : memref<1x128xf32, #tpu.memory_space<vmem>>, vector<1x128xf32>
    %311 = vector.broadcast %310 : vector<1x128xf32> to vector<128x128xf32>
    %312 = arith.addf %309, %311 : vector<128x128xf32>
    %c0_91 = arith.constant 0 : index
    %c0_92 = arith.constant 0 : index
    %313 = vector.load %arg11[%c0_91, %c0_92] : memref<128x128xf32, #tpu.memory_space<vmem>>, vector<128x128xf32>
    tpu.vector_store %arg11[%c0_91, %c0_92], %312 {strides = array<i32>} : memref<128x128xf32, #tpu.memory_space<vmem>>, vector<128x128xf32>,
    %c0_93 = arith.constant 0 : index
    %c0_94 = arith.constant 0 : index
    %314 = vector.load %arg6[%c0_93, %c0_94] : memref<32x128xbf16, #tpu.memory_space<vmem>>, vector<32x128xbf16>
    %c1 = arith.constant 1 : index
    %c0_95 = arith.constant 0 : index
    %c0_96 = arith.constant 0 : index
    %315 = vector.load %arg13[%c1, %c0_95, %c0_96] : memref<2x16x32xf32, #tpu.memory_space<vmem>>, vector<1x16x32xf32>
    %316 = vector.shape_cast %315 : vector<1x16x32xf32> to vector<16x32xf32>
    %c1_97 = arith.constant 1 : index
    %c0_98 = arith.constant 0 : index
    %c0_99 = arith.constant 0 : index
    %317 = vector.load %arg14[%c1_97, %c0_98, %c0_99] : memref<2x16x32xf32, #tpu.memory_space<vmem>>, vector<1x16x32xf32>
    %318 = vector.shape_cast %317 : vector<1x16x32xf32> to vector<16x32xf32>
    %c0_i32_100 = arith.constant 0 : i32
    %c16_i32_101 = arith.constant 16 : i32
    %319 = arith.muli %c0_i32_100, %c16_i32_101 : i32
    %320 = tpu.assume_multiple %319, 16 : i32
    %321 = arith.index_cast %320 : i32 to index
    %c0_102 = arith.constant 0 : index
    %322 = vector.load %arg11[%321, %c0_102] : memref<128x128xf32, #tpu.memory_space<vmem>>, vector<16x128xf32>
    %323 = arith.truncf %316 : vector<16x32xf32> to vector<16x32xbf16>
    %cst_103 = arith.constant dense<0.000000e+00> : vector<16x128xf32>
    %324 = tpu.matmul %323, %314, %cst_103 {dimension_numbers = #tpu.dot_dimension_numbers<[1], [0], [0], [1], [0, 0, 1, 1], [], []>} : vector<16x32xbf16>, vector<32x128xbf16>, vector<16x128xf32> -> vector<16x128xf32>
    %325 = arith.addf %322, %324 : vector<16x128xf32>
    %326 = vector.extract_strided_slice %325 {offsets = [0, 0], sizes = [16, 32], strides = [1, 1]} : vector<16x128xf32> to vector<16x32xf32>
    %327 = arith.negf %326 : vector<16x32xf32>
    %328 = math.exp %327 : vector<16x32xf32>
    %cst_104 = arith.constant 1.000000e+00 : f32
    %329 = vector.broadcast %cst_104 : f32 to vector<16x32xf32>
    %330 = arith.addf %329, %328 : vector<16x32xf32>
    %331 = arith.divf %329, %330 : vector<16x32xf32>
    %332 = vector.extract_strided_slice %325 {offsets = [0, 32], sizes = [16, 32], strides = [1, 1]} : vector<16x128xf32> to vector<16x32xf32>
    %333 = arith.negf %332 : vector<16x32xf32>
    %334 = math.exp %333 : vector<16x32xf32>
    %cst_105 = arith.constant 1.000000e+00 : f32
    %335 = vector.broadcast %cst_105 : f32 to vector<16x32xf32>
    %336 = arith.addf %335, %334 : vector<16x32xf32>
    %337 = arith.divf %335, %336 : vector<16x32xf32>
    %338 = vector.extract_strided_slice %325 {offsets = [0, 64], sizes = [16, 32], strides = [1, 1]} : vector<16x128xf32> to vector<16x32xf32>
    %339 = math.tanh %338 : vector<16x32xf32>
    %340 = vector.extract_strided_slice %325 {offsets = [0, 96], sizes = [16, 32], strides = [1, 1]} : vector<16x128xf32> to vector<16x32xf32>
    %341 = arith.negf %340 : vector<16x32xf32>
    %342 = math.exp %341 : vector<16x32xf32>
    %cst_106 = arith.constant 1.000000e+00 : f32
    %343 = vector.broadcast %cst_106 : f32 to vector<16x32xf32>
    %344 = arith.addf %343, %342 : vector<16x32xf32>
    %345 = arith.divf %343, %344 : vector<16x32xf32>
    %346 = arith.mulf %337, %318 : vector<16x32xf32>
    %347 = arith.mulf %331, %339 : vector<16x32xf32>
    %348 = arith.addf %346, %347 : vector<16x32xf32>
    %349 = math.tanh %348 : vector<16x32xf32>
    %350 = arith.mulf %345, %349 : vector<16x32xf32>
    %351 = arith.truncf %350 : vector<16x32xf32> to vector<16x32xbf16>
    %352 = arith.index_cast %320 : i32 to index
    %c0_107 = arith.constant 0 : index
    %353 = vector.load %arg8[%352, %c0_107] : memref<128x32xbf16, #tpu.memory_space<vmem>>, vector<16x32xbf16>
    tpu.vector_store %arg8[%352, %c0_107], %351 {strides = array<i32>} : memref<128x32xbf16, #tpu.memory_space<vmem>>, vector<16x32xbf16>,
    %c1_i32_108 = arith.constant 1 : i32
    %c16_i32_109 = arith.constant 16 : i32
    %354 = arith.muli %c1_i32_108, %c16_i32_109 : i32
    %355 = tpu.assume_multiple %354, 16 : i32
    %356 = arith.index_cast %355 : i32 to index
    %c0_110 = arith.constant 0 : index
    %357 = vector.load %arg11[%356, %c0_110] : memref<128x128xf32, #tpu.memory_space<vmem>>, vector<16x128xf32>
    %358 = arith.truncf %350 : vector<16x32xf32> to vector<16x32xbf16>
    %cst_111 = arith.constant dense<0.000000e+00> : vector<16x128xf32>
    %359 = tpu.matmul %358, %314, %cst_111 {dimension_numbers = #tpu.dot_dimension_numbers<[1], [0], [0], [1], [0, 0, 1, 1], [], []>} : vector<16x32xbf16>, vector<32x128xbf16>, vector<16x128xf32> -> vector<16x128xf32>
    %360 = arith.addf %357, %359 : vector<16x128xf32>
    %361 = vector.extract_strided_slice %360 {offsets = [0, 0], sizes = [16, 32], strides = [1, 1]} : vector<16x128xf32> to vector<16x32xf32>
    %362 = arith.negf %361 : vector<16x32xf32>
    %363 = math.exp %362 : vector<16x32xf32>
    %cst_112 = arith.constant 1.000000e+00 : f32
    %364 = vector.broadcast %cst_112 : f32 to vector<16x32xf32>
    %365 = arith.addf %364, %363 : vector<16x32xf32>
    %366 = arith.divf %364, %365 : vector<16x32xf32>
    %367 = vector.extract_strided_slice %360 {offsets = [0, 32], sizes = [16, 32], strides = [1, 1]} : vector<16x128xf32> to vector<16x32xf32>
    %368 = arith.negf %367 : vector<16x32xf32>
    %369 = math.exp %368 : vector<16x32xf32>
    %cst_113 = arith.constant 1.000000e+00 : f32
    %370 = vector.broadcast %cst_113 : f32 to vector<16x32xf32>
    %371 = arith.addf %370, %369 : vector<16x32xf32>
    %372 = arith.divf %370, %371 : vector<16x32xf32>
    %373 = vector.extract_strided_slice %360 {offsets = [0, 64], sizes = [16, 32], strides = [1, 1]} : vector<16x128xf32> to vector<16x32xf32>
    %374 = math.tanh %373 : vector<16x32xf32>
    %375 = vector.extract_strided_slice %360 {offsets = [0, 96], sizes = [16, 32], strides = [1, 1]} : vector<16x128xf32> to vector<16x32xf32>
    %376 = arith.negf %375 : vector<16x32xf32>
    %377 = math.exp %376 : vector<16x32xf32>
    %cst_114 = arith.constant 1.000000e+00 : f32
    %378 = vector.broadcast %cst_114 : f32 to vector<16x32xf32>
    %379 = arith.addf %378, %377 : vector<16x32xf32>
    %380 = arith.divf %378, %379 : vector<16x32xf32>
    %381 = arith.mulf %372, %348 : vector<16x32xf32>
    %382 = arith.mulf %366, %374 : vector<16x32xf32>
    %383 = arith.addf %381, %382 : vector<16x32xf32>
    %384 = math.tanh %383 : vector<16x32xf32>
    %385 = arith.mulf %380, %384 : vector<16x32xf32>
    %386 = arith.truncf %385 : vector<16x32xf32> to vector<16x32xbf16>
    %387 = arith.index_cast %355 : i32 to index
    %c0_115 = arith.constant 0 : index
    %388 = vector.load %arg8[%387, %c0_115] : memref<128x32xbf16, #tpu.memory_space<vmem>>, vector<16x32xbf16>
    tpu.vector_store %arg8[%387, %c0_115], %386 {strides = array<i32>} : memref<128x32xbf16, #tpu.memory_space<vmem>>, vector<16x32xbf16>,
    %c2_i32_116 = arith.constant 2 : i32
    %c16_i32_117 = arith.constant 16 : i32
    %389 = arith.muli %c2_i32_116, %c16_i32_117 : i32
    %390 = tpu.assume_multiple %389, 16 : i32
    %391 = arith.index_cast %390 : i32 to index
    %c0_118 = arith.constant 0 : index
    %392 = vector.load %arg11[%391, %c0_118] : memref<128x128xf32, #tpu.memory_space<vmem>>, vector<16x128xf32>
    %393 = arith.truncf %385 : vector<16x32xf32> to vector<16x32xbf16>
    %cst_119 = arith.constant dense<0.000000e+00> : vector<16x128xf32>
    %394 = tpu.matmul %393, %314, %cst_119 {dimension_numbers = #tpu.dot_dimension_numbers<[1], [0], [0], [1], [0, 0, 1, 1], [], []>} : vector<16x32xbf16>, vector<32x128xbf16>, vector<16x128xf32> -> vector<16x128xf32>
    %395 = arith.addf %392, %394 : vector<16x128xf32>
    %396 = vector.extract_strided_slice %395 {offsets = [0, 0], sizes = [16, 32], strides = [1, 1]} : vector<16x128xf32> to vector<16x32xf32>
    %397 = arith.negf %396 : vector<16x32xf32>
    %398 = math.exp %397 : vector<16x32xf32>
    %cst_120 = arith.constant 1.000000e+00 : f32
    %399 = vector.broadcast %cst_120 : f32 to vector<16x32xf32>
    %400 = arith.addf %399, %398 : vector<16x32xf32>
    %401 = arith.divf %399, %400 : vector<16x32xf32>
    %402 = vector.extract_strided_slice %395 {offsets = [0, 32], sizes = [16, 32], strides = [1, 1]} : vector<16x128xf32> to vector<16x32xf32>
    %403 = arith.negf %402 : vector<16x32xf32>
    %404 = math.exp %403 : vector<16x32xf32>
    %cst_121 = arith.constant 1.000000e+00 : f32
    %405 = vector.broadcast %cst_121 : f32 to vector<16x32xf32>
    %406 = arith.addf %405, %404 : vector<16x32xf32>
    %407 = arith.divf %405, %406 : vector<16x32xf32>
    %408 = vector.extract_strided_slice %395 {offsets = [0, 64], sizes = [16, 32], strides = [1, 1]} : vector<16x128xf32> to vector<16x32xf32>
    %409 = math.tanh %408 : vector<16x32xf32>
    %410 = vector.extract_strided_slice %395 {offsets = [0, 96], sizes = [16, 32], strides = [1, 1]} : vector<16x128xf32> to vector<16x32xf32>
    %411 = arith.negf %410 : vector<16x32xf32>
    %412 = math.exp %411 : vector<16x32xf32>
    %cst_122 = arith.constant 1.000000e+00 : f32
    %413 = vector.broadcast %cst_122 : f32 to vector<16x32xf32>
    %414 = arith.addf %413, %412 : vector<16x32xf32>
    %415 = arith.divf %413, %414 : vector<16x32xf32>
    %416 = arith.mulf %407, %383 : vector<16x32xf32>
    %417 = arith.mulf %401, %409 : vector<16x32xf32>
    %418 = arith.addf %416, %417 : vector<16x32xf32>
    %419 = math.tanh %418 : vector<16x32xf32>
    %420 = arith.mulf %415, %419 : vector<16x32xf32>
    %421 = arith.truncf %420 : vector<16x32xf32> to vector<16x32xbf16>
    %422 = arith.index_cast %390 : i32 to index
    %c0_123 = arith.constant 0 : index
    %423 = vector.load %arg8[%422, %c0_123] : memref<128x32xbf16, #tpu.memory_space<vmem>>, vector<16x32xbf16>
    tpu.vector_store %arg8[%422, %c0_123], %421 {strides = array<i32>} : memref<128x32xbf16, #tpu.memory_space<vmem>>, vector<16x32xbf16>,
    %c3_i32_124 = arith.constant 3 : i32
    %c16_i32_125 = arith.constant 16 : i32
    %424 = arith.muli %c3_i32_124, %c16_i32_125 : i32
    %425 = tpu.assume_multiple %424, 16 : i32
    %426 = arith.index_cast %425 : i32 to index
    %c0_126 = arith.constant 0 : index
    %427 = vector.load %arg11[%426, %c0_126] : memref<128x128xf32, #tpu.memory_space<vmem>>, vector<16x128xf32>
    %428 = arith.truncf %420 : vector<16x32xf32> to vector<16x32xbf16>
    %cst_127 = arith.constant dense<0.000000e+00> : vector<16x128xf32>
    %429 = tpu.matmul %428, %314, %cst_127 {dimension_numbers = #tpu.dot_dimension_numbers<[1], [0], [0], [1], [0, 0, 1, 1], [], []>} : vector<16x32xbf16>, vector<32x128xbf16>, vector<16x128xf32> -> vector<16x128xf32>
    %430 = arith.addf %427, %429 : vector<16x128xf32>
    %431 = vector.extract_strided_slice %430 {offsets = [0, 0], sizes = [16, 32], strides = [1, 1]} : vector<16x128xf32> to vector<16x32xf32>
    %432 = arith.negf %431 : vector<16x32xf32>
    %433 = math.exp %432 : vector<16x32xf32>
    %cst_128 = arith.constant 1.000000e+00 : f32
    %434 = vector.broadcast %cst_128 : f32 to vector<16x32xf32>
    %435 = arith.addf %434, %433 : vector<16x32xf32>
    %436 = arith.divf %434, %435 : vector<16x32xf32>
    %437 = vector.extract_strided_slice %430 {offsets = [0, 32], sizes = [16, 32], strides = [1, 1]} : vector<16x128xf32> to vector<16x32xf32>
    %438 = arith.negf %437 : vector<16x32xf32>
    %439 = math.exp %438 : vector<16x32xf32>
    %cst_129 = arith.constant 1.000000e+00 : f32
    %440 = vector.broadcast %cst_129 : f32 to vector<16x32xf32>
    %441 = arith.addf %440, %439 : vector<16x32xf32>
    %442 = arith.divf %440, %441 : vector<16x32xf32>
    %443 = vector.extract_strided_slice %430 {offsets = [0, 64], sizes = [16, 32], strides = [1, 1]} : vector<16x128xf32> to vector<16x32xf32>
    %444 = math.tanh %443 : vector<16x32xf32>
    %445 = vector.extract_strided_slice %430 {offsets = [0, 96], sizes = [16, 32], strides = [1, 1]} : vector<16x128xf32> to vector<16x32xf32>
    %446 = arith.negf %445 : vector<16x32xf32>
    %447 = math.exp %446 : vector<16x32xf32>
    %cst_130 = arith.constant 1.000000e+00 : f32
    %448 = vector.broadcast %cst_130 : f32 to vector<16x32xf32>
    %449 = arith.addf %448, %447 : vector<16x32xf32>
    %450 = arith.divf %448, %449 : vector<16x32xf32>
    %451 = arith.mulf %442, %418 : vector<16x32xf32>
    %452 = arith.mulf %436, %444 : vector<16x32xf32>
    %453 = arith.addf %451, %452 : vector<16x32xf32>
    %454 = math.tanh %453 : vector<16x32xf32>
    %455 = arith.mulf %450, %454 : vector<16x32xf32>
    %456 = arith.truncf %455 : vector<16x32xf32> to vector<16x32xbf16>
    %457 = arith.index_cast %425 : i32 to index
    %c0_131 = arith.constant 0 : index
    %458 = vector.load %arg8[%457, %c0_131] : memref<128x32xbf16, #tpu.memory_space<vmem>>, vector<16x32xbf16>
    tpu.vector_store %arg8[%457, %c0_131], %456 {strides = array<i32>} : memref<128x32xbf16, #tpu.memory_space<vmem>>, vector<16x32xbf16>,
    %c4_i32_132 = arith.constant 4 : i32
    %c16_i32_133 = arith.constant 16 : i32
    %459 = arith.muli %c4_i32_132, %c16_i32_133 : i32
    %460 = tpu.assume_multiple %459, 16 : i32
    %461 = arith.index_cast %460 : i32 to index
    %c0_134 = arith.constant 0 : index
    %462 = vector.load %arg11[%461, %c0_134] : memref<128x128xf32, #tpu.memory_space<vmem>>, vector<16x128xf32>
    %463 = arith.truncf %455 : vector<16x32xf32> to vector<16x32xbf16>
    %cst_135 = arith.constant dense<0.000000e+00> : vector<16x128xf32>
    %464 = tpu.matmul %463, %314, %cst_135 {dimension_numbers = #tpu.dot_dimension_numbers<[1], [0], [0], [1], [0, 0, 1, 1], [], []>} : vector<16x32xbf16>, vector<32x128xbf16>, vector<16x128xf32> -> vector<16x128xf32>
    %465 = arith.addf %462, %464 : vector<16x128xf32>
    %466 = vector.extract_strided_slice %465 {offsets = [0, 0], sizes = [16, 32], strides = [1, 1]} : vector<16x128xf32> to vector<16x32xf32>
    %467 = arith.negf %466 : vector<16x32xf32>
    %468 = math.exp %467 : vector<16x32xf32>
    %cst_136 = arith.constant 1.000000e+00 : f32
    %469 = vector.broadcast %cst_136 : f32 to vector<16x32xf32>
    %470 = arith.addf %469, %468 : vector<16x32xf32>
    %471 = arith.divf %469, %470 : vector<16x32xf32>
    %472 = vector.extract_strided_slice %465 {offsets = [0, 32], sizes = [16, 32], strides = [1, 1]} : vector<16x128xf32> to vector<16x32xf32>
    %473 = arith.negf %472 : vector<16x32xf32>
    %474 = math.exp %473 : vector<16x32xf32>
    %cst_137 = arith.constant 1.000000e+00 : f32
    %475 = vector.broadcast %cst_137 : f32 to vector<16x32xf32>
    %476 = arith.addf %475, %474 : vector<16x32xf32>
    %477 = arith.divf %475, %476 : vector<16x32xf32>
    %478 = vector.extract_strided_slice %465 {offsets = [0, 64], sizes = [16, 32], strides = [1, 1]} : vector<16x128xf32> to vector<16x32xf32>
    %479 = math.tanh %478 : vector<16x32xf32>
    %480 = vector.extract_strided_slice %465 {offsets = [0, 96], sizes = [16, 32], strides = [1, 1]} : vector<16x128xf32> to vector<16x32xf32>
    %481 = arith.negf %480 : vector<16x32xf32>
    %482 = math.exp %481 : vector<16x32xf32>
    %cst_138 = arith.constant 1.000000e+00 : f32
    %483 = vector.broadcast %cst_138 : f32 to vector<16x32xf32>
    %484 = arith.addf %483, %482 : vector<16x32xf32>
    %485 = arith.divf %483, %484 : vector<16x32xf32>
    %486 = arith.mulf %477, %453 : vector<16x32xf32>
    %487 = arith.mulf %471, %479 : vector<16x32xf32>
    %488 = arith.addf %486, %487 : vector<16x32xf32>
    %489 = math.tanh %488 : vector<16x32xf32>
    %490 = arith.mulf %485, %489 : vector<16x32xf32>
    %491 = arith.truncf %490 : vector<16x32xf32> to vector<16x32xbf16>
    %492 = arith.index_cast %460 : i32 to index
    %c0_139 = arith.constant 0 : index
    %493 = vector.load %arg8[%492, %c0_139] : memref<128x32xbf16, #tpu.memory_space<vmem>>, vector<16x32xbf16>
    tpu.vector_store %arg8[%492, %c0_139], %491 {strides = array<i32>} : memref<128x32xbf16, #tpu.memory_space<vmem>>, vector<16x32xbf16>,
    %c5_i32_140 = arith.constant 5 : i32
    %c16_i32_141 = arith.constant 16 : i32
    %494 = arith.muli %c5_i32_140, %c16_i32_141 : i32
    %495 = tpu.assume_multiple %494, 16 : i32
    %496 = arith.index_cast %495 : i32 to index
    %c0_142 = arith.constant 0 : index
    %497 = vector.load %arg11[%496, %c0_142] : memref<128x128xf32, #tpu.memory_space<vmem>>, vector<16x128xf32>
    %498 = arith.truncf %490 : vector<16x32xf32> to vector<16x32xbf16>
    %cst_143 = arith.constant dense<0.000000e+00> : vector<16x128xf32>
    %499 = tpu.matmul %498, %314, %cst_143 {dimension_numbers = #tpu.dot_dimension_numbers<[1], [0], [0], [1], [0, 0, 1, 1], [], []>} : vector<16x32xbf16>, vector<32x128xbf16>, vector<16x128xf32> -> vector<16x128xf32>
    %500 = arith.addf %497, %499 : vector<16x128xf32>
    %501 = vector.extract_strided_slice %500 {offsets = [0, 0], sizes = [16, 32], strides = [1, 1]} : vector<16x128xf32> to vector<16x32xf32>
    %502 = arith.negf %501 : vector<16x32xf32>
    %503 = math.exp %502 : vector<16x32xf32>
    %cst_144 = arith.constant 1.000000e+00 : f32
    %504 = vector.broadcast %cst_144 : f32 to vector<16x32xf32>
    %505 = arith.addf %504, %503 : vector<16x32xf32>
    %506 = arith.divf %504, %505 : vector<16x32xf32>
    %507 = vector.extract_strided_slice %500 {offsets = [0, 32], sizes = [16, 32], strides = [1, 1]} : vector<16x128xf32> to vector<16x32xf32>
    %508 = arith.negf %507 : vector<16x32xf32>
    %509 = math.exp %508 : vector<16x32xf32>
    %cst_145 = arith.constant 1.000000e+00 : f32
    %510 = vector.broadcast %cst_145 : f32 to vector<16x32xf32>
    %511 = arith.addf %510, %509 : vector<16x32xf32>
    %512 = arith.divf %510, %511 : vector<16x32xf32>
    %513 = vector.extract_strided_slice %500 {offsets = [0, 64], sizes = [16, 32], strides = [1, 1]} : vector<16x128xf32> to vector<16x32xf32>
    %514 = math.tanh %513 : vector<16x32xf32>
    %515 = vector.extract_strided_slice %500 {offsets = [0, 96], sizes = [16, 32], strides = [1, 1]} : vector<16x128xf32> to vector<16x32xf32>
    %516 = arith.negf %515 : vector<16x32xf32>
    %517 = math.exp %516 : vector<16x32xf32>
    %cst_146 = arith.constant 1.000000e+00 : f32
    %518 = vector.broadcast %cst_146 : f32 to vector<16x32xf32>
    %519 = arith.addf %518, %517 : vector<16x32xf32>
    %520 = arith.divf %518, %519 : vector<16x32xf32>
    %521 = arith.mulf %512, %488 : vector<16x32xf32>
    %522 = arith.mulf %506, %514 : vector<16x32xf32>
    %523 = arith.addf %521, %522 : vector<16x32xf32>
    %524 = math.tanh %523 : vector<16x32xf32>
    %525 = arith.mulf %520, %524 : vector<16x32xf32>
    %526 = arith.truncf %525 : vector<16x32xf32> to vector<16x32xbf16>
    %527 = arith.index_cast %495 : i32 to index
    %c0_147 = arith.constant 0 : index
    %528 = vector.load %arg8[%527, %c0_147] : memref<128x32xbf16, #tpu.memory_space<vmem>>, vector<16x32xbf16>
    tpu.vector_store %arg8[%527, %c0_147], %526 {strides = array<i32>} : memref<128x32xbf16, #tpu.memory_space<vmem>>, vector<16x32xbf16>,
    %c6_i32_148 = arith.constant 6 : i32
    %c16_i32_149 = arith.constant 16 : i32
    %529 = arith.muli %c6_i32_148, %c16_i32_149 : i32
    %530 = tpu.assume_multiple %529, 16 : i32
    %531 = arith.index_cast %530 : i32 to index
    %c0_150 = arith.constant 0 : index
    %532 = vector.load %arg11[%531, %c0_150] : memref<128x128xf32, #tpu.memory_space<vmem>>, vector<16x128xf32>
    %533 = arith.truncf %525 : vector<16x32xf32> to vector<16x32xbf16>
    %cst_151 = arith.constant dense<0.000000e+00> : vector<16x128xf32>
    %534 = tpu.matmul %533, %314, %cst_151 {dimension_numbers = #tpu.dot_dimension_numbers<[1], [0], [0], [1], [0, 0, 1, 1], [], []>} : vector<16x32xbf16>, vector<32x128xbf16>, vector<16x128xf32> -> vector<16x128xf32>
    %535 = arith.addf %532, %534 : vector<16x128xf32>
    %536 = vector.extract_strided_slice %535 {offsets = [0, 0], sizes = [16, 32], strides = [1, 1]} : vector<16x128xf32> to vector<16x32xf32>
    %537 = arith.negf %536 : vector<16x32xf32>
    %538 = math.exp %537 : vector<16x32xf32>
    %cst_152 = arith.constant 1.000000e+00 : f32
    %539 = vector.broadcast %cst_152 : f32 to vector<16x32xf32>
    %540 = arith.addf %539, %538 : vector<16x32xf32>
    %541 = arith.divf %539, %540 : vector<16x32xf32>
    %542 = vector.extract_strided_slice %535 {offsets = [0, 32], sizes = [16, 32], strides = [1, 1]} : vector<16x128xf32> to vector<16x32xf32>
    %543 = arith.negf %542 : vector<16x32xf32>
    %544 = math.exp %543 : vector<16x32xf32>
    %cst_153 = arith.constant 1.000000e+00 : f32
    %545 = vector.broadcast %cst_153 : f32 to vector<16x32xf32>
    %546 = arith.addf %545, %544 : vector<16x32xf32>
    %547 = arith.divf %545, %546 : vector<16x32xf32>
    %548 = vector.extract_strided_slice %535 {offsets = [0, 64], sizes = [16, 32], strides = [1, 1]} : vector<16x128xf32> to vector<16x32xf32>
    %549 = math.tanh %548 : vector<16x32xf32>
    %550 = vector.extract_strided_slice %535 {offsets = [0, 96], sizes = [16, 32], strides = [1, 1]} : vector<16x128xf32> to vector<16x32xf32>
    %551 = arith.negf %550 : vector<16x32xf32>
    %552 = math.exp %551 : vector<16x32xf32>
    %cst_154 = arith.constant 1.000000e+00 : f32
    %553 = vector.broadcast %cst_154 : f32 to vector<16x32xf32>
    %554 = arith.addf %553, %552 : vector<16x32xf32>
    %555 = arith.divf %553, %554 : vector<16x32xf32>
    %556 = arith.mulf %547, %523 : vector<16x32xf32>
    %557 = arith.mulf %541, %549 : vector<16x32xf32>
    %558 = arith.addf %556, %557 : vector<16x32xf32>
    %559 = math.tanh %558 : vector<16x32xf32>
    %560 = arith.mulf %555, %559 : vector<16x32xf32>
    %561 = arith.truncf %560 : vector<16x32xf32> to vector<16x32xbf16>
    %562 = arith.index_cast %530 : i32 to index
    %c0_155 = arith.constant 0 : index
    %563 = vector.load %arg8[%562, %c0_155] : memref<128x32xbf16, #tpu.memory_space<vmem>>, vector<16x32xbf16>
    tpu.vector_store %arg8[%562, %c0_155], %561 {strides = array<i32>} : memref<128x32xbf16, #tpu.memory_space<vmem>>, vector<16x32xbf16>,
    %c7_i32_156 = arith.constant 7 : i32
    %c16_i32_157 = arith.constant 16 : i32
    %564 = arith.muli %c7_i32_156, %c16_i32_157 : i32
    %565 = tpu.assume_multiple %564, 16 : i32
    %566 = arith.index_cast %565 : i32 to index
    %c0_158 = arith.constant 0 : index
    %567 = vector.load %arg11[%566, %c0_158] : memref<128x128xf32, #tpu.memory_space<vmem>>, vector<16x128xf32>
    %568 = arith.truncf %560 : vector<16x32xf32> to vector<16x32xbf16>
    %cst_159 = arith.constant dense<0.000000e+00> : vector<16x128xf32>
    %569 = tpu.matmul %568, %314, %cst_159 {dimension_numbers = #tpu.dot_dimension_numbers<[1], [0], [0], [1], [0, 0, 1, 1], [], []>} : vector<16x32xbf16>, vector<32x128xbf16>, vector<16x128xf32> -> vector<16x128xf32>
    %570 = arith.addf %567, %569 : vector<16x128xf32>
    %571 = vector.extract_strided_slice %570 {offsets = [0, 0], sizes = [16, 32], strides = [1, 1]} : vector<16x128xf32> to vector<16x32xf32>
    %572 = arith.negf %571 : vector<16x32xf32>
    %573 = math.exp %572 : vector<16x32xf32>
    %cst_160 = arith.constant 1.000000e+00 : f32
    %574 = vector.broadcast %cst_160 : f32 to vector<16x32xf32>
    %575 = arith.addf %574, %573 : vector<16x32xf32>
    %576 = arith.divf %574, %575 : vector<16x32xf32>
    %577 = vector.extract_strided_slice %570 {offsets = [0, 32], sizes = [16, 32], strides = [1, 1]} : vector<16x128xf32> to vector<16x32xf32>
    %578 = arith.negf %577 : vector<16x32xf32>
    %579 = math.exp %578 : vector<16x32xf32>
    %cst_161 = arith.constant 1.000000e+00 : f32
    %580 = vector.broadcast %cst_161 : f32 to vector<16x32xf32>
    %581 = arith.addf %580, %579 : vector<16x32xf32>
    %582 = arith.divf %580, %581 : vector<16x32xf32>
    %583 = vector.extract_strided_slice %570 {offsets = [0, 64], sizes = [16, 32], strides = [1, 1]} : vector<16x128xf32> to vector<16x32xf32>
    %584 = math.tanh %583 : vector<16x32xf32>
    %585 = vector.extract_strided_slice %570 {offsets = [0, 96], sizes = [16, 32], strides = [1, 1]} : vector<16x128xf32> to vector<16x32xf32>
    %586 = arith.negf %585 : vector<16x32xf32>
    %587 = math.exp %586 : vector<16x32xf32>
    %cst_162 = arith.constant 1.000000e+00 : f32
    %588 = vector.broadcast %cst_162 : f32 to vector<16x32xf32>
    %589 = arith.addf %588, %587 : vector<16x32xf32>
    %590 = arith.divf %588, %589 : vector<16x32xf32>
    %591 = arith.mulf %582, %558 : vector<16x32xf32>
    %592 = arith.mulf %576, %584 : vector<16x32xf32>
    %593 = arith.addf %591, %592 : vector<16x32xf32>
    %594 = math.tanh %593 : vector<16x32xf32>
    %595 = arith.mulf %590, %594 : vector<16x32xf32>
    %596 = arith.truncf %595 : vector<16x32xf32> to vector<16x32xbf16>
    %597 = arith.index_cast %565 : i32 to index
    %c0_163 = arith.constant 0 : index
    %598 = vector.load %arg8[%597, %c0_163] : memref<128x32xbf16, #tpu.memory_space<vmem>>, vector<16x32xbf16>
    tpu.vector_store %arg8[%597, %c0_163], %596 {strides = array<i32>} : memref<128x32xbf16, #tpu.memory_space<vmem>>, vector<16x32xbf16>,
    %c8_i32_164 = arith.constant 8 : i32
    %c1_165 = arith.constant 1 : index
    %c0_166 = arith.constant 0 : index
    %c0_167 = arith.constant 0 : index
    %599 = vector.load %arg13[%c1_165, %c0_166, %c0_167] : memref<2x16x32xf32, #tpu.memory_space<vmem>>, vector<1x16x32xf32>
    %600 = vector.shape_cast %599 : vector<1x16x32xf32> to vector<16x32xf32>
    %601 = vector.shape_cast %595 : vector<16x32xf32> to vector<1x16x32xf32>
    tpu.vector_store %arg13[%c1_165, %c0_166, %c0_167], %601 {strides = array<i32>} : memref<2x16x32xf32, #tpu.memory_space<vmem>>, vector<1x16x32xf32>,
    %c1_168 = arith.constant 1 : index
    %c0_169 = arith.constant 0 : index
    %c0_170 = arith.constant 0 : index
    %602 = vector.load %arg14[%c1_168, %c0_169, %c0_170] : memref<2x16x32xf32, #tpu.memory_space<vmem>>, vector<1x16x32xf32>
    %603 = vector.shape_cast %602 : vector<1x16x32xf32> to vector<16x32xf32>
    %604 = vector.shape_cast %593 : vector<16x32xf32> to vector<1x16x32xf32>
    tpu.vector_store %arg14[%c1_168, %c0_169, %c0_170], %604 {strides = array<i32>} : memref<2x16x32xf32, #tpu.memory_space<vmem>>, vector<1x16x32xf32>,
    %c1_171 = arith.constant 1 : index
    %c0_172 = arith.constant 0 : index
    %c0_173 = arith.constant 0 : index
    %605 = vector.load %arg9[%c1_171, %c0_172, %c0_173] : memref<2x16x32xf32, #tpu.memory_space<vmem>>, vector<1x16x32xf32>
    %606 = vector.shape_cast %605 : vector<1x16x32xf32> to vector<16x32xf32>
    %607 = vector.shape_cast %595 : vector<16x32xf32> to vector<1x16x32xf32>
    tpu.vector_store %arg9[%c1_171, %c0_172, %c0_173], %607 {strides = array<i32>} : memref<2x16x32xf32, #tpu.memory_space<vmem>>, vector<1x16x32xf32>,
    %c1_174 = arith.constant 1 : index
    %c0_175 = arith.constant 0 : index
    %c0_176 = arith.constant 0 : index
    %608 = vector.load %arg10[%c1_174, %c0_175, %c0_176] : memref<2x16x32xf32, #tpu.memory_space<vmem>>, vector<1x16x32xf32>
    %609 = vector.shape_cast %608 : vector<1x16x32xf32> to vector<16x32xf32>
    %610 = vector.shape_cast %593 : vector<16x32xf32> to vector<1x16x32xf32>
    tpu.vector_store %arg10[%c1_174, %c0_175, %c0_176], %610 {strides = array<i32>} : memref<2x16x32xf32, #tpu.memory_space<vmem>>, vector<1x16x32xf32>,
    return
  }
  func.func @transform_0(%arg0: i32) -> (i32, i32) {
    %c0_i32 = arith.constant 0 : i32
    %c0_i32_0 = arith.constant 0 : i32
    return %arg0, %c0_i32 : i32, i32
  }
  func.func @transform_1(%arg0: i32) -> (i32, i32) {
    %c0_i32 = arith.constant 0 : i32
    %c0_i32_0 = arith.constant 0 : i32
    %c0_i32_1 = arith.constant 0 : i32
    return %c0_i32, %c0_i32_0 : i32, i32
  }
  func.func @transform_2(%arg0: i32) -> (i32, i32) {
    %c0_i32 = arith.constant 0 : i32
    %c0_i32_0 = arith.constant 0 : i32
    %c0_i32_1 = arith.constant 0 : i32
    return %c0_i32, %c0_i32_0 : i32, i32
  }
  func.func @transform_3(%arg0: i32) -> (i32, i32) {
    %c0_i32 = arith.constant 0 : i32
    %c0_i32_0 = arith.constant 0 : i32
    %c0_i32_1 = arith.constant 0 : i32
    return %c0_i32, %c0_i32_0 : i32, i32
  }
  func.func @transform_4(%arg0: i32) -> (i32, i32) {
    %c0_i32 = arith.constant 0 : i32
    %c0_i32_0 = arith.constant 0 : i32
    %c0_i32_1 = arith.constant 0 : i32
    return %c0_i32, %c0_i32_0 : i32, i32
  }
  func.func @transform_5(%arg0: i32) -> (i32, i32) {
    %c0_i32 = arith.constant 0 : i32
    %c0_i32_0 = arith.constant 0 : i32
    %c0_i32_1 = arith.constant 0 : i32
    return %c0_i32, %c0_i32_0 : i32, i32
  }
  func.func @transform_6(%arg0: i32) -> (i32, i32) {
    %c0_i32 = arith.constant 0 : i32
    %c0_i32_0 = arith.constant 0 : i32
    %c0_i32_1 = arith.constant 0 : i32
    return %c0_i32, %c0_i32_0 : i32, i32
  }
  func.func @transform_7(%arg0: i32) -> (i32, i32) {
    %c0_i32 = arith.constant 0 : i32
    %c0_i32_0 = arith.constant 0 : i32
    return %arg0, %c0_i32 : i32, i32
  }
  func.func @transform_8(%arg0: i32) -> (i32, i32, i32) {
    %c0_i32 = arith.constant 0 : i32
    %c0_i32_0 = arith.constant 0 : i32
    %c0_i32_1 = arith.constant 0 : i32
    %c0_i32_2 = arith.constant 0 : i32
    return %c0_i32, %c0_i32_0, %c0_i32_1 : i32, i32, i32
  }
  func.func @transform_9(%arg0: i32) -> (i32, i32, i32) {
    %c0_i32 = arith.constant 0 : i32
    %c0_i32_0 = arith.constant 0 : i32
    %c0_i32_1 = arith.constant 0 : i32
    %c0_i32_2 = arith.constant 0 : i32
    return %c0_i32, %c0_i32_0, %c0_i32_1 : i32, i32, i32
  }
}

</mosaic_0001>

<bundles_post_ra>
// kernel: tpu_custom_call.1
= control target key start
LH: loop header
LB: loop body
LE: loop exit
PB: predicated region body
PF: predicated region fallthrough
CT: control target
= control target key end

     0   :  { %15 = vsyncpa [#allocation7], 0  ;;  %v3172_v1 = vmov 0.0   ;;  %vm36_vm0 = vcmask 261120   ;;  %vm3173_vm1 = vmmov 0   ;;  %s4003_s0 = inlined_call_operand.vmem [shape: bf16[128,32], index: 0, kind: input, shape index: {}]   ;;  %s4004_s1 = inlined_call_operand.vmem [shape: bf16[32,128], index: 1, kind: input, shape index: {}]   ;;  %s4005_s2 = inlined_call_operand.vmem [shape: bf16[32,128], index: 2, kind: input, shape index: {}]   ;;  %s4006_s3 = inlined_call_operand.vmem [shape: f32[1,128], index: 3, kind: input, shape index: {}]   ;;  %s4007_s4 = inlined_call_operand.vmem [shape: bf16[32,128], index: 4, kind: input, shape index: {}]   ;;  %s4008_s5 = inlined_call_operand.vmem [shape: bf16[32,128], index: 5, kind: input, shape index: {}]   ;;  %s4009_s6 = inlined_call_operand.vmem [shape: f32[1,128], index: 6, kind: input, shape index: {}]   ;;  %s4010_s7 = inlined_call_operand.vmem [shape: bf16[128,32], index: 7, kind: output, shape index: {0}]   ;;  %s4011_s8 = inlined_call_operand.hbm [shape: f32[2,16,32], index: 8, kind: output, shape index: {1}]   ;;  %s4012_s9 = inlined_call_operand.hbm [shape: f32[2,16,32], index: 9, kind: output, shape index: {2}]  }
   0x1   :  { %v2847_v0 = vld [vmem:[%s4004_s1 + $0x8] sm:$0xff]   ;;  %2690 = vmatprep.subr.bf16.mxu1 %v3172_v1  ;;  %v2849_v3 = vld [vmem:[%s4004_s1] sm:$0xff]   ;;  %37 = vst.msk [vmem:[#allocation4] sm:$0xff] %vm36_vm0, %v3172_v1  ;;  %38 = vst.msk [vmem:[#allocation4 + $0x8] sm:$0xff] %vm36_vm0, %v3172_v1  ;;  %2694 = vmatprep.mubr.msk.bf16.mxu1 %vm3173_vm1, %v3172_v1 }
   0x2   :  { %v3238_v2 = vld [vmem:[%s4005_s2 + $0x8] sm:$0xff]   ;;  %2670 = vmatprep.subr.bf16.mxu0 %v2847_v0  ;;  %39 = vst.msk [vmem:[#allocation4 + $0x10] sm:$0xff] %vm36_vm0, %v3172_v1  ;;  %40 = vst.msk [vmem:[#allocation4 + $0x18] sm:$0xff] %vm36_vm0, %v3172_v1  ;;  %v3263_v4 = vld [vmem:[%s4005_s2] sm:$0xff]   ;;  %s3174_s2 = smov 32  }
   0x3   :  { %41 = vst.msk [vmem:[#allocation5] sm:$0xff] %vm36_vm0, %v3172_v1  ;;  %42 = vst.msk [vmem:[#allocation5 + $0x8] sm:$0xff] %vm36_vm0, %v3172_v1  ;;  %2671 = vmatpush3.bf16.msra.mxu0 %v2847_v0  ;;  %2691 = vmatpush3.bf16.msra.mxu1 %v3238_v2  ;;  %v2851_v5 = vld [vmem:[%s4003_s0] sm:$0xff]   ;;  %v2852_v6 = vld [vmem:[%s4003_s0 + $0x8] sm:$0xff]  }
   0x4   :  { %43 = vst.msk [vmem:[#allocation5 + $0x10] sm:$0xff] %vm36_vm0, %v3172_v1  ;;  %44 = vst.msk [vmem:[#allocation5 + $0x18] sm:$0xff] %vm36_vm0, %v3172_v1  ;;  %2672 = vmatprep.subr.bf16.mxu0 %v2849_v3  ;;  %2692 = vmatprep.subr.bf16.mxu1 %v3172_v1 }
   0x5   :  { %2674 = vmatprep.mubr.msk.bf16.mxu0 %vm36_vm0, %v2851_v5 }
   0x7   :  { %2673 = vmatpush3.bf16.msra.mxu0 %v2849_v3  ;;  %2693 = vmatpush3.bf16.msra.mxu1 %v3263_v4 }
   0x8   :  { %2698 = vmatprep.subr.bf16.mxu1 %v3172_v1  ;;  %2722 = vmatprep.subr.bf16.mxu0 %v3172_v1  ;;  %v266_v7 = vld [vmem:[#allocation4] sm:$0xff]  ;;  %v267_v8 = vld [vmem:[#allocation4 + $0x8] sm:$0xff] }
   0x9   :  { %v272_v10 = vpack.c.bf16 %v267_v8, %v266_v7 }
   0xa   :  { %v268_v9 = vld [vmem:[#allocation5] sm:$0xff]  ;;  %2675 = vmatmul.mubr.msk.bf16.vlgmr.msra.gmra.mxu0 %vm36_vm0, %v2852_v6  ;;  %v269_v11 = vld [vmem:[#allocation5 + $0x8] sm:$0xff] }
   0xb   :  { %347 = vrot.lane.b32.xlu1 %v268_v9, %s3174_s2  ;;  %2723 = vmatpush3.bf16.msra.mxu0 %v3238_v2 }
   0xc   :  { %2695 = vmatmul.mubr.msk.bf16.vlgmr.msra.gmra.mxu1 %vm36_vm0, %v272_v10  ;;  %2724 = vmatprep.subr.bf16.mxu0 %v3172_v1 }
   0xd   :  { %2699 = vmatpush3.bf16.msra.mxu1 %v3238_v2  ;;  %2702 = vmatprep.mubr.msk.bf16.mxu1 %vm3173_vm1, %v3172_v1 }
   0xe   :  { %2700 = vmatprep.subr.bf16.mxu1 %v3172_v1 }
   0xf   :  { %349 = vrot.lane.b32.xlu1 %v269_v11, %s3174_s2 }
  0x10   :  { %16 = vsyncpa [#allocation9], 0  ;;  %2725 = vmatpush3.bf16.msra.mxu0 %v3263_v4  ;;  %v3297_v13 = vld [vmem:[%s4006_s3] ss:$0 sm:$0xff]  ;;  %s3175_s22 = smov 64   ;;  %vm399_vm2 = vcmask 257024  }
  0x11   :  { %2738 = vmatprep.subr.bf16.mxu0 %v3172_v1  ;;  %2701 = vmatpush3.bf16.msra.mxu1 %v3263_v4  ;;  %s3177_s21 = smov [#allocation8]  }
  0x12   :  { %2706 = vmatprep.subr.bf16.mxu1 %v3172_v1 }
  0x7d   :  { %v348_v39 = vpop.permute.xlu1 %347 }
  0x81   :  { %v350_v41 = vpop.permute.xlu1 %349 }
  0xca   :  { %v3292_v12 = vpop.f32.mrf.mxu0 }
  0xcb   :  { %v192_v55 = vadd.f32 %v3292_v12, %v3297_v13 }
  0xcc   :  { %v322_v14 = vpop.f32.mrf.mxu1  ;;  %v183_v15 = vpop.f32.mrf.mxu0 }
  0xcd   :  { %v184_v16 = vadd.f32 %v3297_v13, %v183_v15 }
  0xce   :  { %v2696_v17 = vpop.f32.mrf.mxu1  ;;  %v3300_v18 = vpop.f32.mrf.mxu0 }
  0xcf   :  { %v329_v19 = vadd.f32 %v322_v14, %v184_v16  ;;  %v195_v59 = vadd.f32 %v3300_v18, %v3297_v13 }
  0xd0   :  { %v325_v20 = vpop.f32.mrf.mxu1  ;;  %v186_v21 = vpop.f32.mrf.mxu0 }
  0xd1   :  { %2871 = vtanh.f32 %v329_v19  ;;  %v187_v22 = vadd.f32 %v3297_v13, %v186_v21  ;;  %v2456_v27 = vmul.f32 -1.442695, %v329_v19 }
  0xd2   :  { %v2697_v23 = vpop.f32.mrf.mxu1 }
  0xd3   :  { %v330_v24 = vadd.f32 %v325_v20, %v187_v22  ;;  %v2853_v23 = vld [vmem:[%s4003_s0 + $0x10] sm:$0xff]  }
  0xd4   :  { %2678 = vmatprep.mubr.msk.bf16.mxu0 %vm36_vm0, %v2853_v23 }
  0xd5   :  { %2873 = vtanh.f32 %v330_v24  ;;  %v2457_v28 = vmul.f32 -1.442695, %v330_v24  ;;  %v2854_v24 = vld [vmem:[%s4003_s0 + $0x18] sm:$0xff]  }
  0xd6   :  { %2875 = vpow2.f32 %v2456_v27  ;;  %2679 = vmatmul.mubr.msk.bf16.gmra.mxu0 %vm36_vm0, %v2854_v24 }
  0xd7   :  { %2877 = vpow2.f32 %v2457_v28 }
  0xde   :  { %v2872_v25 = vpop.eup %2871 }
  0xdf   :  { %357 = vrot.lane.b32.xlu0 %v2872_v25, %s3175_s22 }
  0xe2   :  { %v2874_v26 = vpop.eup %2873 }
  0xe3   :  { %359 = vrot.lane.b32.xlu0 %v2874_v26, %s3175_s22  ;;  %v2876_v29 = vpop.eup %2875 }
  0xe4   :  { %v337_v30 = vadd.f32 1.0, %v2876_v29  ;;  %v2878_v31 = vpop.eup %2877 }
  0xe5   :  { %v338_v32 = vadd.f32 1.0, %v2878_v31 }
  0xe6   :  { %2879 = vrcp.f32 %v337_v30 }
  0xe7   :  { %2881 = vrcp.f32 %v338_v32 }
  0xf3   :  { %v2880_v33 = vpop.eup %2879 }
  0xf4   :  { %v2882_v36 = vpop.eup %2881  ;;  %v353_v40 = vmul.f32 %v2880_v33, %v348_v39 }
  0xf5   :  { %v354_v44 = vmul.f32 %v2882_v36, %v350_v41 }
 0x151   :  { %v358_v34 = vpop.permute.xlu0 %357 }
 0x152   :  { %v363_v35 = vmul.f32 %v2880_v33, %v358_v34 }
 0x154   :  { %367 = vrot.lane.b32.xlu0 %v363_v35, %s3174_s2 }
 0x155   :  { %v360_v37 = vpop.permute.xlu0 %359 }
 0x156   :  { %v364_v38 = vmul.f32 %v2882_v36, %v360_v37 }
 0x158   :  { %369 = vrot.lane.b32.xlu1 %v364_v38, %s3174_s2 }
 0x1c6   :  { %v368_v42 = vpop.permute.xlu0 %367 }
 0x1c7   :  { %v373_v43 = vadd.f32 %v368_v42, %v353_v40 }
 0x1c9   :  { %2883 = vtanh.f32 %v373_v43 }
 0x1ca   :  { %v370_v45 = vpop.permute.xlu1 %369 }
 0x1cb   :  { %v374_v46 = vadd.f32 %v370_v45, %v354_v44 }
 0x1cd   :  { %2885 = vtanh.f32 %v374_v46 }
 0x1d6   :  { %v2884_v47 = vpop.eup %2883 }
 0x1d7   :  { %379 = vrot.lane.b32.xlu0 %v2884_v47, %s3175_s22 }
 0x1da   :  { %v2886_v48 = vpop.eup %2885 }
 0x1db   :  { %381 = vrot.lane.b32.xlu1 %v2886_v48, %s3175_s22 }
 0x249   :  { %v380_v49 = vpop.permute.xlu0 %379 }
 0x24a   :  { %v3309_v51 = vmul.f32 %v2880_v33, %v380_v49  ;;  %v2680_v33 = vpop.f32.mrf.mxu0 }
 0x24c   :  { %v199_v34 = vpop.f32.mrf.mxu0 }
 0x24d   :  { %v382_v50 = vpop.permute.xlu1 %381 }
 0x24e   :  { %v3311_v52 = vmul.f32 %v2882_v36, %v382_v50  ;;  %v3361_v35 = vpop.f32.mrf.mxu0  ;;  %v200_v36 = vadd.f32 %v3297_v13, %v199_v34 }
 0x250   :  { %v387_v53 = vpack.c.bf16 %v3311_v52, %v3309_v51  ;;  %v202_v37 = vpop.f32.mrf.mxu0 }
 0x251   :  { %v203_v41 = vadd.f32 %v3297_v13, %v202_v37 }
 0x252   :  { %405 = vrot.lane.b32.xlu0 %v387_v53, %s3174_s2 }
 0x2c4   :  { %v406_v54 = vpop.permute.xlu0 %405 }
 0x2c5   :  { %2703 = vmatmul.mubr.msk.bf16.vlgmr.msra.gmra.mxu1 %vm36_vm0, %v406_v54 }
 0x2c6   :  { %2707 = vmatpush3.bf16.msra.mxu1 %v3238_v2  ;;  %2710 = vmatprep.mubr.msk.bf16.mxu1 %vm3173_vm1, %v3172_v1 }
 0x2c7   :  { %2708 = vmatprep.subr.bf16.mxu1 %v3172_v1 }
 0x2ca   :  { %2709 = vmatpush3.bf16.msra.mxu1 %v3263_v4 }
 0x2cb   :  { %2714 = vmatprep.subr.bf16.mxu1 %v3172_v1 }
 0x385   :  { %v444_v56 = vpop.f32.mrf.mxu1 }
 0x386   :  { %v451_v57 = vadd.f32 %v444_v56, %v192_v55 }
 0x387   :  { %v2704_v58 = vpop.f32.mrf.mxu1 }
 0x388   :  { %2887 = vtanh.f32 %v451_v57  ;;  %v2461_v3 = vmul.f32 -1.442695, %v451_v57 }
 0x389   :  { %v447_v60 = vpop.f32.mrf.mxu1 }
 0x38a   :  { %v452_v61 = vadd.f32 %v447_v60, %v195_v59 }
 0x38b   :  { %v2705_v62 = vpop.f32.mrf.mxu1 }
 0x38c   :  { %2889 = vtanh.f32 %v452_v61  ;;  %v2462_v5 = vmul.f32 -1.442695, %v452_v61 }
 0x38d   :  { %2891 = vpow2.f32 %v2461_v3 }
 0x38e   :  { %2893 = vpow2.f32 %v2462_v5 }
 0x395   :  { %v2888_v63 = vpop.eup %2887 }
 0x396   :  { %471 = vrot.lane.b32.xlu1 %v2888_v63, %s3175_s22 }
 0x399   :  { %v2890_v0 = vpop.eup %2889 }
 0x39a   :  { %473 = vrot.lane.b32.xlu0 %v2890_v0, %s3175_s22  ;;  %v2892_v6 = vpop.eup %2891 }
 0x39b   :  { %v459_v7 = vadd.f32 1.0, %v2892_v6  ;;  %v2894_v8 = vpop.eup %2893 }
 0x39c   :  { %v460_v9 = vadd.f32 1.0, %v2894_v8 }
 0x39d   :  { %2895 = vrcp.f32 %v459_v7 }
 0x39e   :  { %2897 = vrcp.f32 %v460_v9 }
 0x3aa   :  { %v2896_v10 = vpop.eup %2895 }
 0x3ab   :  { %v2898_v14 = vpop.eup %2897  ;;  %v467_v17 = vmul.f32 %v2896_v10, %v373_v43 }
 0x3ac   :  { %v468_v20 = vmul.f32 %v2898_v14, %v374_v46 }
 0x408   :  { %v472_v11 = vpop.permute.xlu1 %471 }
 0x409   :  { %v477_v12 = vmul.f32 %v2896_v10, %v472_v11 }
 0x40b   :  { %481 = vrot.lane.b32.xlu1 %v477_v12, %s3174_s2 }
 0x40c   :  { %v474_v15 = vpop.permute.xlu0 %473 }
 0x40d   :  { %v478_v16 = vmul.f32 %v2898_v14, %v474_v15  ;;  %v208_v15 = vadd.f32 %v2680_v33, %v3297_v13 }
 0x40f   :  { %483 = vrot.lane.b32.xlu0 %v478_v16, %s3174_s2 }
 0x47d   :  { %v482_v18 = vpop.permute.xlu1 %481 }
 0x47e   :  { %v3331_v19 = vadd.f32 %v482_v18, %v467_v17 }
 0x480   :  { %2899 = vtanh.f32 %v3331_v19 }
 0x481   :  { %v484_v21 = vpop.permute.xlu0 %483 }
 0x482   :  { %v3334_v22 = vadd.f32 %v484_v21, %v468_v20 }
 0x484   :  { %2901 = vtanh.f32 %v3334_v22 }
 0x48d   :  { %v2900_v25 = vpop.eup %2899 }
 0x48e   :  { %493 = vrot.lane.b32.xlu1 %v2900_v25, %s3175_s22 }
 0x491   :  { %v2902_v26 = vpop.eup %2901 }
 0x492   :  { %495 = vrot.lane.b32.xlu0 %v2902_v26, %s3175_s22 }
 0x500   :  { %v494_v27 = vpop.permute.xlu1 %493 }
 0x501   :  { %v3347_v29 = vmul.f32 %v2896_v10, %v494_v27 }
 0x504   :  { %v496_v28 = vpop.permute.xlu0 %495 }
 0x505   :  { %v3349_v30 = vmul.f32 %v2898_v14, %v496_v28 }
 0x507   :  { %v501_v31 = vpack.c.bf16 %v3349_v30, %v3347_v29 }
 0x509   :  { %519 = vrot.lane.b32.xlu1 %v501_v31, %s3174_s2 }
 0x57b   :  { %v520_v32 = vpop.permute.xlu1 %519 }
 0x57c   :  { %2711 = vmatmul.mubr.msk.bf16.vlgmr.msra.gmra.mxu1 %vm36_vm0, %v520_v32 }
 0x57d   :  { %2715 = vmatpush3.bf16.msra.mxu1 %v3238_v2  ;;  %2718 = vmatprep.mubr.msk.bf16.mxu1 %vm3173_vm1, %v3172_v1 }
 0x57e   :  { %2716 = vmatprep.subr.bf16.mxu1 %v3172_v1 }
 0x581   :  { %2717 = vmatpush3.bf16.msra.mxu1 %v3263_v4 }
 0x582   :  { %2730 = vmatprep.subr.bf16.mxu1 %v3172_v1 }
 0x63c   :  { %v558_v38 = vpop.f32.mrf.mxu1 }
 0x63d   :  { %v565_v39 = vadd.f32 %v558_v38, %v200_v36 }
 0x63e   :  { %v2712_v40 = vpop.f32.mrf.mxu1 }
 0x63f   :  { %2903 = vtanh.f32 %v565_v39  ;;  %v2466_v47 = vmul.f32 -1.442695, %v565_v39 }
 0x640   :  { %v561_v42 = vpop.f32.mrf.mxu1 }
 0x641   :  { %v566_v43 = vadd.f32 %v561_v42, %v203_v41 }
 0x642   :  { %v2713_v44 = vpop.f32.mrf.mxu1 }
 0x643   :  { %2905 = vtanh.f32 %v566_v43  ;;  %v2467_v48 = vmul.f32 -1.442695, %v566_v43 }
 0x644   :  { %2907 = vpow2.f32 %v2466_v47  ;;  %v2857_v47 = vld [vmem:[%s4003_s0 + $0x30] sm:$0xff]  }
 0x645   :  { %2909 = vpow2.f32 %v2467_v48 }
 0x64c   :  { %v2904_v45 = vpop.eup %2903 }
 0x64d   :  { %585 = vrot.lane.b32.xlu0 %v2904_v45, %s3175_s22  ;;  %v2855_v45 = vld [vmem:[%s4003_s0 + $0x20] sm:$0xff]  }
 0x64e   :  { %2682 = vmatprep.mubr.msk.bf16.mxu0 %vm36_vm0, %v2855_v45 }
 0x650   :  { %v2906_v46 = vpop.eup %2905 }
 0x651   :  { %587 = vrot.lane.b32.xlu1 %v2906_v46, %s3175_s22  ;;  %v2908_v49 = vpop.eup %2907  ;;  %v2856_v46 = vld [vmem:[%s4003_s0 + $0x28] sm:$0xff]  }
 0x652   :  { %v573_v50 = vadd.f32 1.0, %v2908_v49  ;;  %v2910_v53 = vpop.eup %2909  ;;  %2683 = vmatmul.mubr.msk.bf16.gmra.mxu0 %vm36_vm0, %v2856_v46  ;;  %v2858_v49 = vld [vmem:[%s4003_s0 + $0x38] sm:$0xff]  }
 0x653   :  { %v574_v54 = vadd.f32 1.0, %v2910_v53  ;;  %2686 = vmatprep.mubr.msk.bf16.mxu0 %vm36_vm0, %v2857_v47 }
 0x654   :  { %2911 = vrcp.f32 %v573_v50 }
 0x655   :  { %2913 = vrcp.f32 %v574_v54 }
 0x65a   :  { %2687 = vmatmul.mubr.msk.bf16.gmra.mxu0 %vm36_vm0, %v2858_v49 }
 0x65b   :  { %2726 = vmatprep.mubr.msk.bf16.mxu0 %vm3173_vm1, %v3172_v1 }
 0x661   :  { %v2912_v55 = vpop.eup %2911 }
 0x662   :  { %v2914_v58 = vpop.eup %2913  ;;  %v581_v61 = vmul.f32 %v2912_v55, %v3331_v19  ;;  %v211_v19 = vadd.f32 %v3361_v35, %v3297_v13 }
 0x663   :  { %v582_v0 = vmul.f32 %v2914_v58, %v3334_v22 }
 0x6bf   :  { %v586_v56 = vpop.permute.xlu0 %585 }
 0x6c0   :  { %v591_v57 = vmul.f32 %v2912_v55, %v586_v56 }
 0x6c2   :  { %595 = vrot.lane.b32.xlu0 %v591_v57, %s3174_s2 }
 0x6c3   :  { %v588_v59 = vpop.permute.xlu1 %587 }
 0x6c4   :  { %v592_v60 = vmul.f32 %v2914_v58, %v588_v59 }
 0x6c6   :  { %597 = vrot.lane.b32.xlu1 %v592_v60, %s3174_s2 }
 0x712   :  { %v3433_v59 = vpop.f32.mrf.mxu0 }
 0x713   :  { %v224_v47 = vadd.f32 %v3433_v59, %v3297_v13 }
 0x714   :  { %v215_v60 = vpop.f32.mrf.mxu0 }
 0x734   :  { %v596_v62 = vpop.permute.xlu0 %595 }
 0x735   :  { %v601_v63 = vadd.f32 %v596_v62, %v581_v61  ;;  %v3435_v61 = vpop.f32.mrf.mxu0 }
 0x737   :  { %2915 = vtanh.f32 %v601_v63  ;;  %v218_v62 = vpop.f32.mrf.mxu0 }
 0x738   :  { %v598_v3 = vpop.permute.xlu1 %597 }
 0x739   :  { %v602_v5 = vadd.f32 %v598_v3, %v582_v0 }
 0x73b   :  { %2917 = vtanh.f32 %v602_v5 }
 0x744   :  { %v2916_v6 = vpop.eup %2915 }
 0x745   :  { %607 = vrot.lane.b32.xlu0 %v2916_v6, %s3175_s22  ;;  %v216_v6 = vadd.f32 %v3297_v13, %v215_v60 }
 0x748   :  { %v2918_v7 = vpop.eup %2917 }
 0x749   :  { %609 = vrot.lane.b32.xlu1 %v2918_v7, %s3175_s22 }
 0x7b7   :  { %v608_v8 = vpop.permute.xlu0 %607 }
 0x7b8   :  { %v3373_v10 = vmul.f32 %v2912_v55, %v608_v8 }
 0x7bb   :  { %v610_v9 = vpop.permute.xlu1 %609 }
 0x7bc   :  { %v3375_v11 = vmul.f32 %v2914_v58, %v610_v9 }
 0x7be   :  { %v615_v12 = vpack.c.bf16 %v3375_v11, %v3373_v10 }
 0x7c0   :  { %633 = vrot.lane.b32.xlu0 %v615_v12, %s3174_s2  ;;  %v219_v12 = vadd.f32 %v3297_v13, %v218_v62 }
 0x832   :  { %v634_v14 = vpop.permute.xlu0 %633 }
 0x833   :  { %2719 = vmatmul.mubr.msk.bf16.vlgmr.msra.gmra.mxu1 %vm36_vm0, %v634_v14 }
 0x834   :  { %2731 = vmatpush3.bf16.msra.mxu1 %v3238_v2  ;;  %2734 = vmatprep.mubr.msk.bf16.mxu1 %vm3173_vm1, %v3172_v1 }
 0x835   :  { %2732 = vmatprep.subr.bf16.mxu1 %v3172_v1 }
 0x838   :  { %2733 = vmatpush3.bf16.msra.mxu1 %v3263_v4 }
 0x839   :  { %2746 = vmatprep.subr.bf16.mxu1 %v3172_v1 }
 0x8f3   :  { %v672_v16 = vpop.f32.mrf.mxu1 }
 0x8f4   :  { %v679_v17 = vadd.f32 %v672_v16, %v208_v15 }
 0x8f5   :  { %v2720_v18 = vpop.f32.mrf.mxu1 }
 0x8f6   :  { %2919 = vtanh.f32 %v679_v17  ;;  %v2471_v25 = vmul.f32 -1.442695, %v679_v17 }
 0x8f7   :  { %v675_v20 = vpop.f32.mrf.mxu1 }
 0x8f8   :  { %v680_v21 = vadd.f32 %v675_v20, %v211_v19 }
 0x8f9   :  { %v2721_v22 = vpop.f32.mrf.mxu1 }
 0x8fa   :  { %2921 = vtanh.f32 %v680_v21  ;;  %v2472_v26 = vmul.f32 -1.442695, %v680_v21 }
 0x8fb   :  { %2923 = vpow2.f32 %v2471_v25 }
 0x8fc   :  { %2925 = vpow2.f32 %v2472_v26 }
 0x903   :  { %v2920_v23 = vpop.eup %2919 }
 0x904   :  { %699 = vrot.lane.b32.xlu1 %v2920_v23, %s3175_s22 }
 0x907   :  { %v2922_v24 = vpop.eup %2921 }
 0x908   :  { %701 = vrot.lane.b32.xlu0 %v2922_v24, %s3175_s22  ;;  %v2924_v27 = vpop.eup %2923 }
 0x909   :  { %v687_v28 = vadd.f32 1.0, %v2924_v27  ;;  %v2926_v31 = vpop.eup %2925 }
 0x90a   :  { %v688_v32 = vadd.f32 1.0, %v2926_v31 }
 0x90b   :  { %2927 = vrcp.f32 %v687_v28 }
 0x90c   :  { %2929 = vrcp.f32 %v688_v32 }
 0x918   :  { %v2928_v33 = vpop.eup %2927 }
 0x919   :  { %v2930_v36 = vpop.eup %2929  ;;  %v695_v39 = vmul.f32 %v2928_v33, %v601_v63  ;;  %v3437_v63 = vpop.f32.mrf.mxu0 }
 0x91a   :  { %v696_v42 = vmul.f32 %v2930_v36, %v602_v5 }
 0x91b   :  { %v3439_v0 = vpop.f32.mrf.mxu0 }
 0x91d   :  { %v3441_v3 = vpop.f32.mrf.mxu0 }
 0x91f   :  { %v3443_v5 = vpop.f32.mrf.mxu0 }
 0x976   :  { %v700_v34 = vpop.permute.xlu1 %699 }
 0x977   :  { %v705_v35 = vmul.f32 %v2928_v33, %v700_v34 }
 0x979   :  { %709 = vrot.lane.b32.xlu1 %v705_v35, %s3174_s2 }
 0x97a   :  { %v702_v37 = vpop.permute.xlu0 %701 }
 0x97b   :  { %v706_v38 = vmul.f32 %v2930_v36, %v702_v37 }
 0x97d   :  { %711 = vrot.lane.b32.xlu0 %v706_v38, %s3174_s2 }
 0x9eb   :  { %v710_v40 = vpop.permute.xlu1 %709 }
 0x9ec   :  { %v3394_v41 = vadd.f32 %v710_v40, %v695_v39 }
 0x9ee   :  { %2931 = vtanh.f32 %v3394_v41 }
 0x9ef   :  { %v712_v43 = vpop.permute.xlu0 %711 }
 0x9f0   :  { %v3397_v44 = vadd.f32 %v712_v43, %v696_v42 }
 0x9f2   :  { %2933 = vtanh.f32 %v3397_v44 }
 0x9fb   :  { %v2932_v48 = vpop.eup %2931 }
 0x9fc   :  { %721 = vrot.lane.b32.xlu1 %v2932_v48, %s3175_s22 }
 0x9ff   :  { %v2934_v50 = vpop.eup %2933 }
 0xa00   :  { %723 = vrot.lane.b32.xlu0 %v2934_v50, %s3175_s22 }
 0xa6e   :  { %v722_v53 = vpop.permute.xlu1 %721 }
 0xa6f   :  { %v3420_v55 = vmul.f32 %v2928_v33, %v722_v53  ;;  %v227_v53 = vadd.f32 %v3435_v61, %v3297_v13 }
 0xa72   :  { %v724_v54 = vpop.permute.xlu0 %723 }
 0xa73   :  { %v3422_v56 = vmul.f32 %v2930_v36, %v724_v54 }
 0xa75   :  { %v729_v57 = vpack.c.bf16 %v3422_v56, %v3420_v55 }
 0xa77   :  { %747 = vrot.lane.b32.xlu1 %v729_v57, %s3174_s2 }
 0xae9   :  { %v748_v58 = vpop.permute.xlu1 %747 }
 0xaea   :  { %2727 = vmatmul.mubr.msk.bf16.vlgmr.msra.gmra.mxu0 %vm36_vm0, %v748_v58 }
 0xaeb   :  { %2739 = vmatpush3.bf16.msra.mxu0 %v3238_v2  ;;  %2742 = vmatprep.mubr.msk.bf16.mxu0 %vm3173_vm1, %v3172_v1 }
 0xaec   :  { %2740 = vmatprep.subr.bf16.mxu0 %v3172_v1 }
 0xaef   :  { %2741 = vmatpush3.bf16.msra.mxu0 %v3263_v4 }
 0xbaa   :  { %v786_v7 = vpop.f32.mrf.mxu0 }
 0xbab   :  { %v793_v8 = vadd.f32 %v786_v7, %v216_v6 }
 0xbac   :  { %v2728_v9 = vpop.f32.mrf.mxu0 }
 0xbad   :  { %2935 = vtanh.f32 %v793_v8  ;;  %v2476_v19 = vmul.f32 -1.442695, %v793_v8 }
 0xbae   :  { %v789_v14 = vpop.f32.mrf.mxu0 }
 0xbaf   :  { %v794_v15 = vadd.f32 %v789_v14, %v219_v12 }
 0xbb0   :  { %v2729_v16 = vpop.f32.mrf.mxu0 }
 0xbb1   :  { %2937 = vtanh.f32 %v794_v15  ;;  %v2477_v20 = vmul.f32 -1.442695, %v794_v15 }
 0xbb2   :  { %2939 = vpow2.f32 %v2476_v19 }
 0xbb3   :  { %2941 = vpow2.f32 %v2477_v20 }
 0xbba   :  { %v2936_v17 = vpop.eup %2935 }
 0xbbb   :  { %813 = vrot.lane.b32.xlu0 %v2936_v17, %s3175_s22 }
 0xbbe   :  { %v2938_v18 = vpop.eup %2937 }
 0xbbf   :  { %815 = vrot.lane.b32.xlu1 %v2938_v18, %s3175_s22  ;;  %v2940_v21 = vpop.eup %2939 }
 0xbc0   :  { %v801_v22 = vadd.f32 1.0, %v2940_v21  ;;  %v2942_v23 = vpop.eup %2941 }
 0xbc1   :  { %v802_v24 = vadd.f32 1.0, %v2942_v23 }
 0xbc2   :  { %2943 = vrcp.f32 %v801_v22 }
 0xbc3   :  { %2945 = vrcp.f32 %v802_v24 }
 0xbcf   :  { %v2944_v25 = vpop.eup %2943 }
 0xbd0   :  { %v2946_v28 = vpop.eup %2945  ;;  %v809_v33 = vmul.f32 %v2944_v25, %v3394_v41 }
 0xbd1   :  { %v810_v36 = vmul.f32 %v2946_v28, %v3397_v44 }
 0xc2d   :  { %v814_v26 = vpop.permute.xlu0 %813 }
 0xc2e   :  { %v819_v27 = vmul.f32 %v2944_v25, %v814_v26 }
 0xc30   :  { %823 = vrot.lane.b32.xlu0 %v819_v27, %s3174_s2 }
 0xc31   :  { %v816_v31 = vpop.permute.xlu1 %815 }
 0xc32   :  { %v820_v32 = vmul.f32 %v2946_v28, %v816_v31 }
 0xc34   :  { %825 = vrot.lane.b32.xlu1 %v820_v32, %s3174_s2 }
 0xca2   :  { %v824_v34 = vpop.permute.xlu0 %823 }
 0xca3   :  { %v829_v35 = vadd.f32 %v824_v34, %v809_v33  ;;  %v232_v33 = vadd.f32 %v3297_v13, %v3439_v0 }
 0xca5   :  { %2947 = vtanh.f32 %v829_v35 }
 0xca6   :  { %v826_v37 = vpop.permute.xlu1 %825 }
 0xca7   :  { %v830_v38 = vadd.f32 %v826_v37, %v810_v36  ;;  %v235_v37 = vadd.f32 %v3297_v13, %v3443_v5 }
 0xca9   :  { %2949 = vtanh.f32 %v830_v38 }
 0xcb2   :  { %v2948_v39 = vpop.eup %2947 }
 0xcb3   :  { %835 = vrot.lane.b32.xlu0 %v2948_v39, %s3175_s22 }
 0xcb6   :  { %v2950_v40 = vpop.eup %2949 }
 0xcb7   :  { %837 = vrot.lane.b32.xlu1 %v2950_v40, %s3175_s22 }
 0xd25   :  { %v836_v42 = vpop.permute.xlu0 %835 }
 0xd26   :  { %v3455_v45 = vmul.f32 %v2944_v25, %v836_v42 }
 0xd29   :  { %v838_v43 = vpop.permute.xlu1 %837 }
 0xd2a   :  { %v3457_v46 = vmul.f32 %v2946_v28, %v838_v43 }
 0xd2c   :  { %v843_v41 = vpack.c.bf16 %v3457_v46, %v3455_v45 }
 0xd2e   :  { %861 = vrot.lane.b32.xlu0 %v843_v41, %s3174_s2 }
 0xda0   :  { %v862_v44 = vpop.permute.xlu0 %861 }
 0xda1   :  { %2735 = vmatmul.mubr.msk.bf16.vlgmr.msra.gmra.mxu1 %vm36_vm0, %v862_v44 }
 0xda2   :  { %2747 = vmatpush3.bf16.msra.mxu1 %v3238_v2  ;;  %2750 = vmatprep.mubr.msk.bf16.mxu1 %vm3173_vm1, %v3172_v1 }
 0xda3   :  { %2748 = vmatprep.subr.bf16.mxu1 %v3172_v1 }
 0xda6   :  { %2749 = vmatpush3.bf16.msra.mxu1 %v3263_v4 }
 0xda7   :  { %2774 = vmatprep.subr.bf16.mxu1 %v3172_v1 }
 0xe61   :  { %v900_v48 = vpop.f32.mrf.mxu1 }
 0xe62   :  { %v907_v49 = vadd.f32 %v900_v48, %v224_v47 }
 0xe63   :  { %v2736_v50 = vpop.f32.mrf.mxu1 }
 0xe64   :  { %2951 = vtanh.f32 %v907_v49  ;;  %v2481_v60 = vmul.f32 -1.442695, %v907_v49 }
 0xe65   :  { %v903_v2 = vpop.f32.mrf.mxu1 }
 0xe66   :  { %v908_v54 = vadd.f32 %v903_v2, %v227_v53 }
 0xe67   :  { %v2737_v57 = vpop.f32.mrf.mxu1 }
 0xe68   :  { %2953 = vtanh.f32 %v908_v54  ;;  %v2482_v59 = vmul.f32 -1.442695, %v908_v54 }
 0xe69   :  { %2955 = vpow2.f32 %v2481_v60 }
 0xe6a   :  { %2957 = vpow2.f32 %v2482_v59 }
 0xe71   :  { %v2952_v58 = vpop.eup %2951 }
 0xe72   :  { %927 = vrot.lane.b32.xlu1 %v2952_v58, %s3175_s22 }
 0xe75   :  { %v2954_v4 = vpop.eup %2953 }
 0xe76   :  { %929 = vrot.lane.b32.xlu0 %v2954_v4, %s3175_s22  ;;  %v2956_v62 = vpop.eup %2955 }
 0xe77   :  { %v915_v6 = vadd.f32 1.0, %v2956_v62  ;;  %v2958_v7 = vpop.eup %2957 }
 0xe78   :  { %v916_v61 = vadd.f32 1.0, %v2958_v7 }
 0xe79   :  { %2959 = vrcp.f32 %v915_v6 }
 0xe7a   :  { %2961 = vrcp.f32 %v916_v61  ;;  %v2859_v61 = vld [vmem:[%s4007_s4 + $0x8] sm:$0xff]  }
 0xe7b   :  { %2754 = vmatprep.subr.bf16.mxu0 %v2859_v61 }
 0xe86   :  { %v2960_v8 = vpop.eup %2959 }
 0xe87   :  { %v2962_v14 = vpop.eup %2961  ;;  %v923_v17 = vmul.f32 %v2960_v8, %v829_v35 }
 0xe88   :  { %v924_v20 = vmul.f32 %v2962_v14, %v830_v38 }
 0xee4   :  { %v928_v9 = vpop.permute.xlu1 %927 }
 0xee5   :  { %v933_v12 = vmul.f32 %v2960_v8, %v928_v9  ;;  %v2570_v9 = vpack.c.bf16 %v3309_v51, %v3309_v51  ;;  %v2573_v51 = vpack.c.bf16 %v3349_v30, %v3349_v30 }
 0xee7   :  { %937 = vrot.lane.b32.xlu1 %v933_v12, %s3174_s2 }
 0xee8   :  { %v930_v15 = vpop.permute.xlu0 %929 }
 0xee9   :  { %v934_v16 = vmul.f32 %v2962_v14, %v930_v15  ;;  %v2572_v15 = vpack.c.bf16 %v3347_v29, %v3347_v29 }
 0xeeb   :  { %939 = vrot.lane.b32.xlu0 %v934_v16, %s3174_s2 }
 0xf59   :  { %v938_v18 = vpop.permute.xlu1 %937 }
 0xf5a   :  { %v943_v19 = vadd.f32 %v938_v18, %v923_v17 }
 0xf5c   :  { %2963 = vtanh.f32 %v943_v19 }
 0xf5d   :  { %v940_v21 = vpop.permute.xlu0 %939 }
 0xf5e   :  { %v944_v22 = vadd.f32 %v940_v21, %v924_v20 }
 0xf60   :  { %2965 = vtanh.f32 %v944_v22 }
 0xf69   :  { %v2964_v23 = vpop.eup %2963 }
 0xf6a   :  { %949 = vrot.lane.b32.xlu1 %v2964_v23, %s3175_s22 }
 0xf6d   :  { %v2966_v24 = vpop.eup %2965 }
 0xf6e   :  { %951 = vrot.lane.b32.xlu0 %v2966_v24, %s3175_s22  ;;  %v3537_v24 = vld [vmem:[%s4008_s5 + $0x8] sm:$0xff]  }
 0xfdc   :  { %v950_v25 = vpop.permute.xlu1 %949 }
 0xfdd   :  { %v3479_v27 = vmul.f32 %v2960_v8, %v950_v25  ;;  %v2860_v8 = vld [vmem:[%s4007_s4] sm:$0xff]  }
 0xfde   :  { %v3545_v25 = vld [vmem:[%s4008_s5] sm:$0xff]  }
 0xfe0   :  { %v952_v26 = vpop.permute.xlu0 %951 }
 0xfe1   :  { %v3481_v28 = vmul.f32 %v2962_v14, %v952_v26  ;;  %v2571_v14 = vpack.c.bf16 %v3311_v52, %v3311_v52 }
 0xfe3   :  { %v957_v31 = vpack.c.bf16 %v3481_v28, %v3479_v27 }
 0xfe5   :  { %975 = vrot.lane.b32.xlu1 %v957_v31, %s3174_s2  ;;  %v1445_v31 = vld [vmem:[#allocation4 + $0x10] sm:$0xff] }
0x1057   :  { %v976_v32 = vpop.permute.xlu1 %975 }
0x1058   :  { %2743 = vmatmul.mubr.msk.bf16.vlgmr.msra.gmra.mxu0 %vm36_vm0, %v976_v32  ;;  %v1446_v32 = vld [vmem:[#allocation4 + $0x18] sm:$0xff] }
0x1059   :  { %2755 = vmatpush3.bf16.msra.mxu0 %v2859_v61 }
0x105a   :  { %2756 = vmatprep.subr.bf16.mxu0 %v2860_v8 }
0x105d   :  { %2757 = vmatpush3.bf16.msra.mxu0 %v2860_v8 }
0x105e   :  { %2806 = vmatprep.subr.bf16.mxu0 %v3172_v1 }
0x1118   :  { %v1014_v34 = vpop.f32.mrf.mxu0 }
0x1119   :  { %v1021_v35 = vadd.f32 %v1014_v34, %v232_v33  ;;  %v1452_v33 = vpack.c.bf16 %v1446_v32, %v1445_v31 }
0x111a   :  { %v2744_v36 = vpop.f32.mrf.mxu0 }
0x111b   :  { %2967 = vtanh.f32 %v1021_v35  ;;  %v2486_v41 = vmul.f32 -1.442695, %v1021_v35  ;;  %v240_v35 = vadd.f32 %v3437_v63, %v3297_v13 }
0x111c   :  { %v1017_v38 = vpop.f32.mrf.mxu0 }
0x111d   :  { %v1022_v39 = vadd.f32 %v1017_v38, %v235_v37 }
0x111e   :  { %v2745_v40 = vpop.f32.mrf.mxu0 }
0x111f   :  { %2969 = vtanh.f32 %v1022_v39  ;;  %v2487_v0 = vmul.f32 -1.442695, %v1022_v39  ;;  %v243_v40 = vadd.f32 %v3441_v3, %v3297_v13 }
0x1120   :  { %2971 = vpow2.f32 %v2486_v41 }
0x1121   :  { %2973 = vpow2.f32 %v2487_v0  ;;  %v3578_v0 = vld [vmem:[%s4009_s6] ss:$0 sm:$0xff] }
0x1128   :  { %v2968_v42 = vpop.eup %2967 }
0x1129   :  { %1041 = vrot.lane.b32.xlu0 %v2968_v42, %s3175_s22 }
0x112c   :  { %v2970_v43 = vpop.eup %2969 }
0x112d   :  { %1043 = vrot.lane.b32.xlu1 %v2970_v43, %s3175_s22  ;;  %v2972_v44 = vpop.eup %2971 }
0x112e   :  { %v1029_v47 = vadd.f32 1.0, %v2972_v44  ;;  %v2974_v48 = vpop.eup %2973 }
0x112f   :  { %v1030_v5 = vadd.f32 1.0, %v2974_v48 }
0x1130   :  { %2975 = vrcp.f32 %v1029_v47 }
0x1131   :  { %2977 = vrcp.f32 %v1030_v5 }
0x113d   :  { %v2976_v49 = vpop.eup %2975 }
0x113e   :  { %v2978_v2 = vpop.eup %2977  ;;  %v1037_v58 = vmul.f32 %v2976_v49, %v943_v19 }
0x113f   :  { %v1038_v59 = vmul.f32 %v2978_v2, %v944_v22 }
0x119b   :  { %v1042_v50 = vpop.permute.xlu0 %1041 }
0x119c   :  { %v1047_v53 = vmul.f32 %v2976_v49, %v1042_v50 }
0x119e   :  { %1051 = vrot.lane.b32.xlu0 %v1047_v53, %s3174_s2 }
0x119f   :  { %v1044_v54 = vpop.permute.xlu1 %1043 }
0x11a0   :  { %v1048_v57 = vmul.f32 %v2978_v2, %v1044_v54  ;;  %v1448_v54 = vld [vmem:[#allocation5 + $0x10] sm:$0xff] }
0x11a2   :  { %1053 = vrot.lane.b32.xlu1 %v1048_v57, %s3174_s2 }
0x1210   :  { %v1052_v4 = vpop.permute.xlu0 %1051 }
0x1211   :  { %v3495_v60 = vadd.f32 %v1052_v4, %v1037_v58  ;;  %v1449_v58 = vld [vmem:[#allocation5 + $0x18] sm:$0xff] }
0x1213   :  { %2979 = vtanh.f32 %v3495_v60 }
0x1214   :  { %v1054_v62 = vpop.permute.xlu1 %1053 }
0x1215   :  { %v3498_v6 = vadd.f32 %v1054_v62, %v1038_v59 }
0x1217   :  { %2981 = vtanh.f32 %v3498_v6 }
0x1220   :  { %v2980_v7 = vpop.eup %2979 }
0x1221   :  { %1063 = vrot.lane.b32.xlu0 %v2980_v7, %s3175_s22 }
0x1224   :  { %v2982_v12 = vpop.eup %2981 }
0x1225   :  { %393 = vrot.lane.b32.xlu0 %v2570_v9, %s3174_s2  ;;  %1065 = vrot.lane.b32.xlu1 %v2982_v12, %s3175_s22 }
0x1229   :  { %507 = vrot.lane.b32.xlu0 %v2572_v15, %s3174_s2  ;;  %395 = vrot.lane.b32.xlu1 %v2571_v14, %s3174_s2 }
0x122d   :  { %509 = vrot.lane.b32.xlu1 %v2573_v51, %s3174_s2 }
0x1293   :  { %v1064_v16 = vpop.permute.xlu0 %1063 }
0x1294   :  { %v3522_v52 = vmul.f32 %v2976_v49, %v1064_v16 }
0x1297   :  { %v394_v17 = vpop.permute.xlu0 %393  ;;  %v1066_v18 = vpop.permute.xlu1 %1065 }
0x1298   :  { %400 = vst.msk [vmem:[#allocation3] sm:$0xf] %vm399_vm2, %v394_v17  ;;  %v3525_v29 = vmul.f32 %v2978_v2, %v1066_v18 }
0x129a   :  { %v1071_v19 = vpack.c.bf16 %v3525_v29, %v3522_v52 }
0x129b   :  { %v508_v20 = vpop.permute.xlu0 %507  ;;  %v396_v21 = vpop.permute.xlu1 %395 }
0x129c   :  { %514 = vst.msk [vmem:[#allocation3 + $0x8] sm:$0xf] %vm399_vm2, %v508_v20  ;;  %401 = vst.msk [vmem:[#allocation3 + $0x4] sm:$0xf] %vm399_vm2, %v396_v21  ;;  %1089 = vrot.lane.b32.xlu0 %v1071_v19, %s3174_s2 }
0x129f   :  { %v510_v30 = vpop.permute.xlu1 %509 }
0x12a0   :  { %515 = vst.msk [vmem:[#allocation3 + $0xc] sm:$0xf] %vm399_vm2, %v510_v30 }
0x12a3   :  { %v2861_v22 = vld [vmem:[#allocation3] sm:$0xff]  }
0x12a4   :  { %2758 = vmatprep.mubr.msk.bf16.mxu0 %vm36_vm0, %v2861_v22 }
0x12a7   :  { %v2862_v23 = vld [vmem:[#allocation3 + $0x8] sm:$0xff]  }
0x12a8   :  { %2759 = vmatmul.mubr.msk.bf16.vlgmr.msra.gmra.mxu0 %vm36_vm0, %v2862_v23 }
0x12a9   :  { %2807 = vmatpush3.bf16.msra.mxu0 %v3537_v24 }
0x12aa   :  { %2808 = vmatprep.subr.bf16.mxu0 %v3172_v1 }
0x12ad   :  { %2809 = vmatpush3.bf16.msra.mxu0 %v3545_v25 }
0x12ae   :  { %2822 = vmatprep.subr.bf16.mxu0 %v3172_v1 }
0x130e   :  { %v1090_v26 = vpop.permute.xlu0 %1089 }
0x130f   :  { %2751 = vmatmul.mubr.msk.bf16.vlgmr.msra.gmra.mxu1 %vm36_vm0, %v1090_v26 }
0x1310   :  { %2775 = vmatpush3.bf16.msra.mxu1 %v3537_v24  ;;  %2778 = vmatprep.mubr.msk.bf16.mxu1 %vm3173_vm1, %v3172_v1 }
0x1311   :  { %2776 = vmatprep.subr.bf16.mxu1 %v3172_v1 }
0x1314   :  { %2777 = vmatpush3.bf16.msra.mxu1 %v3545_v25 }
0x1315   :  { %2782 = vmatprep.subr.bf16.mxu1 %v3172_v1 }
0x1317   :  { %2779 = vmatmul.mubr.msk.bf16.vlgmr.msra.gmra.mxu1 %vm36_vm0, %v1452_v33 }
0x1318   :  { %2783 = vmatpush3.bf16.msra.mxu1 %v3537_v24  ;;  %2786 = vmatprep.mubr.msk.bf16.mxu1 %vm3173_vm1, %v3172_v1 }
0x1319   :  { %2784 = vmatprep.subr.bf16.mxu1 %v3172_v1 }
0x131c   :  { %2785 = vmatpush3.bf16.msra.mxu1 %v3545_v25 }
0x131d   :  { %2790 = vmatprep.subr.bf16.mxu1 %v3172_v1 }
0x1368   :  { %v3563_v34 = vpop.f32.mrf.mxu0 }
0x136a   :  { %v1361_v36 = vpop.f32.mrf.mxu0 }
0x136b   :  { %v1362_v63 = vadd.f32 %v3578_v0, %v1361_v36 }
0x136c   :  { %v3571_v42 = vpop.f32.mrf.mxu0 }
0x136e   :  { %v1364_v47 = vpop.f32.mrf.mxu0 }
0x136f   :  { %v1365_v50 = vadd.f32 %v3578_v0, %v1364_v47  ;;  %v1373_v47 = vadd.f32 %v3571_v42, %v3578_v0 }
0x13cf   :  { %v1128_v37 = vpop.f32.mrf.mxu1 }
0x13d0   :  { %v3567_v38 = vadd.f32 %v1128_v37, %v240_v35 }
0x13d1   :  { %v2752_v39 = vpop.f32.mrf.mxu1 }
0x13d3   :  { %v1131_v43 = vpop.f32.mrf.mxu1 }
0x13d4   :  { %v3573_v41 = vadd.f32 %v1131_v43, %v243_v40  ;;  %v1370_v40 = vadd.f32 %v3563_v34, %v3578_v0 }
0x13d5   :  { %v2753_v44 = vpop.f32.mrf.mxu1 }
0x13d7   :  { %v1502_v48 = vpop.f32.mrf.mxu1 }
0x13d8   :  { %v1509_v5 = vadd.f32 %v1502_v48, %v1362_v63 }
0x13d9   :  { %v2780_v49 = vpop.f32.mrf.mxu1 }
0x13da   :  { %2983 = vtanh.f32 %v1509_v5  ;;  %v2517_v4 = vmul.f32 -1.442695, %v1509_v5 }
0x13db   :  { %v1505_v13 = vpop.f32.mrf.mxu1 }
0x13dc   :  { %v1510_v3 = vadd.f32 %v1505_v13, %v1365_v50 }
0x13dd   :  { %v2781_v53 = vpop.f32.mrf.mxu1 }
0x13de   :  { %2985 = vtanh.f32 %v1510_v3  ;;  %v2518_v59 = vmul.f32 -1.442695, %v1510_v3 }
0x13df   :  { %2987 = vpow2.f32 %v2517_v4 }
0x13e0   :  { %2989 = vpow2.f32 %v2518_v59 }
0x13e7   :  { %v2984_v2 = vpop.eup %2983 }
0x13e8   :  { %1537 = vrot.lane.b32.xlu1 %v2984_v2, %s3175_s22 }
0x13eb   :  { %v2986_v57 = vpop.eup %2985 }
0x13ec   :  { %1527 = vrot.lane.b32.xlu1 %v1448_v54, %s3174_s2  ;;  %1539 = vrot.lane.b32.xlu0 %v2986_v57, %s3175_s22  ;;  %v2988_v62 = vpop.eup %2987 }
0x13ed   :  { %v1517_v7 = vadd.f32 1.0, %v2988_v62  ;;  %v2990_v61 = vpop.eup %2989 }
0x13ee   :  { %v1518_v8 = vadd.f32 1.0, %v2990_v61 }
0x13ef   :  { %2991 = vrcp.f32 %v1517_v7 }
0x13f0   :  { %1529 = vrot.lane.b32.xlu0 %v1449_v58, %s3174_s2  ;;  %2993 = vrcp.f32 %v1518_v8 }
0x13fc   :  { %v2992_v9 = vpop.eup %2991 }
0x13fd   :  { %v2994_v15 = vpop.eup %2993 }
0x145a   :  { %v1538_v12 = vpop.permute.xlu1 %1537 }
0x145b   :  { %v1543_v14 = vmul.f32 %v2992_v9, %v1538_v12 }
0x145d   :  { %1547 = vrot.lane.b32.xlu1 %v1543_v14, %s3174_s2 }
0x145e   :  { %v1540_v51 = vpop.permute.xlu0 %1539  ;;  %v1528_v17 = vpop.permute.xlu1 %1527 }
0x145f   :  { %v1544_v16 = vmul.f32 %v2994_v15, %v1540_v51  ;;  %v1533_v18 = vmul.f32 %v2992_v9, %v1528_v17 }
0x1461   :  { %1549 = vrot.lane.b32.xlu0 %v1544_v16, %s3174_s2  ;;  %v2574_v16 = vpack.c.bf16 %v3373_v10, %v3373_v10 }
0x1462   :  { %v1530_v19 = vpop.permute.xlu0 %1529 }
0x1463   :  { %v1534_v30 = vmul.f32 %v2994_v15, %v1530_v19  ;;  %v2576_v19 = vpack.c.bf16 %v3420_v55, %v3420_v55 }
0x14cf   :  { %v1548_v20 = vpop.permute.xlu1 %1547 }
0x14d0   :  { %v1553_v21 = vadd.f32 %v1548_v20, %v1533_v18  ;;  %v2575_v18 = vpack.c.bf16 %v3375_v11, %v3375_v11  ;;  %v2577_v20 = vpack.c.bf16 %v3422_v56, %v3422_v56 }
0x14d2   :  { %2995 = vtanh.f32 %v1553_v21 }
0x14d3   :  { %v1550_v22 = vpop.permute.xlu0 %1549 }
0x14d4   :  { %v1554_v23 = vadd.f32 %v1550_v22, %v1534_v30 }
0x14d6   :  { %2997 = vtanh.f32 %v1554_v23 }
0x14df   :  { %v2996_v26 = vpop.eup %2995 }
0x14e0   :  { %1559 = vrot.lane.b32.xlu1 %v2996_v26, %s3175_s22 }
0x14e3   :  { %v2998_v31 = vpop.eup %2997 }
0x14e4   :  { %1561 = vrot.lane.b32.xlu0 %v2998_v31, %s3175_s22 }
0x1552   :  { %v1560_v32 = vpop.permute.xlu1 %1559 }
0x1553   :  { %v3590_v35 = vmul.f32 %v2992_v9, %v1560_v32 }
0x1556   :  { %v1562_v33 = vpop.permute.xlu0 %1561 }
0x1557   :  { %v3592_v36 = vmul.f32 %v2994_v15, %v1562_v33 }
0x1559   :  { %v1567_v37 = vpack.c.bf16 %v3592_v36, %v3590_v35 }
0x155b   :  { %1583 = vrot.lane.b32.xlu1 %v1567_v37, %s3174_s2 }
0x15cd   :  { %v1584_v39 = vpop.permute.xlu1 %1583 }
0x15ce   :  { %2787 = vmatmul.mubr.msk.bf16.vlgmr.msra.gmra.mxu1 %vm36_vm0, %v1584_v39 }
0x15cf   :  { %2791 = vmatpush3.bf16.msra.mxu1 %v3537_v24  ;;  %2794 = vmatprep.mubr.msk.bf16.mxu1 %vm3173_vm1, %v3172_v1 }
0x15d0   :  { %2792 = vmatprep.subr.bf16.mxu1 %v3172_v1 }
0x15d3   :  { %2793 = vmatpush3.bf16.msra.mxu1 %v3545_v25 }
0x15d4   :  { %2798 = vmatprep.subr.bf16.mxu1 %v3172_v1 }
0x168e   :  { %v1622_v43 = vpop.f32.mrf.mxu1 }
0x168f   :  { %v1629_v44 = vadd.f32 %v1622_v43, %v1370_v40 }
0x1690   :  { %v2788_v63 = vpop.f32.mrf.mxu1 }
0x1691   :  { %2999 = vtanh.f32 %v1629_v44  ;;  %v2522_v3 = vmul.f32 -1.442695, %v1629_v44 }
0x1692   :  { %v1625_v48 = vpop.f32.mrf.mxu1 }
0x1693   :  { %v1630_v5 = vadd.f32 %v1625_v48, %v1373_v47 }
0x1694   :  { %v2789_v49 = vpop.f32.mrf.mxu1 }
0x1695   :  { %3001 = vtanh.f32 %v1630_v5  ;;  %v2523_v34 = vmul.f32 -1.442695, %v1630_v5 }
0x1696   :  { %3003 = vpow2.f32 %v2522_v3 }
0x1697   :  { %3005 = vpow2.f32 %v2523_v34 }
0x169e   :  { %v3000_v50 = vpop.eup %2999 }
0x169f   :  { %1649 = vrot.lane.b32.xlu0 %v3000_v50, %s3175_s22 }
0x16a2   :  { %v3002_v13 = vpop.eup %3001 }
0x16a3   :  { %1651 = vrot.lane.b32.xlu1 %v3002_v13, %s3175_s22  ;;  %v3004_v53 = vpop.eup %3003 }
0x16a4   :  { %v1637_v2 = vadd.f32 1.0, %v3004_v53  ;;  %v3006_v54 = vpop.eup %3005 }
0x16a5   :  { %v1638_v42 = vadd.f32 1.0, %v3006_v54 }
0x16a6   :  { %3007 = vrcp.f32 %v1637_v2 }
0x16a7   :  { %3009 = vrcp.f32 %v1638_v42 }
0x16b3   :  { %v3008_v57 = vpop.eup %3007 }
0x16b4   :  { %v3010_v59 = vpop.eup %3009  ;;  %v1645_v61 = vmul.f32 %v3008_v57, %v1553_v21 }
0x16b5   :  { %v1646_v12 = vmul.f32 %v3010_v59, %v1554_v23 }
0x1711   :  { %v1650_v58 = vpop.permute.xlu0 %1649 }
0x1712   :  { %v1655_v4 = vmul.f32 %v3008_v57, %v1650_v58 }
0x1714   :  { %1659 = vrot.lane.b32.xlu0 %v1655_v4, %s3174_s2 }
0x1715   :  { %v1652_v62 = vpop.permute.xlu1 %1651 }
0x1716   :  { %v1656_v7 = vmul.f32 %v3010_v59, %v1652_v62 }
0x1718   :  { %1661 = vrot.lane.b32.xlu1 %v1656_v7, %s3174_s2 }
0x1786   :  { %v1660_v8 = vpop.permute.xlu0 %1659 }
0x1787   :  { %v3612_v9 = vadd.f32 %v1660_v8, %v1645_v61 }
0x1789   :  { %3011 = vtanh.f32 %v3612_v9 }
0x178a   :  { %v1662_v14 = vpop.permute.xlu1 %1661 }
0x178b   :  { %v3615_v15 = vadd.f32 %v1662_v14, %v1646_v12 }
0x178d   :  { %3013 = vtanh.f32 %v3615_v15 }
0x1796   :  { %v3012_v51 = vpop.eup %3011 }
0x1797   :  { %1671 = vrot.lane.b32.xlu0 %v3012_v51, %s3175_s22 }
0x179a   :  { %v3014_v17 = vpop.eup %3013 }
0x179b   :  { %621 = vrot.lane.b32.xlu0 %v2574_v16, %s3174_s2  ;;  %1673 = vrot.lane.b32.xlu1 %v3014_v17, %s3175_s22 }
0x179f   :  { %735 = vrot.lane.b32.xlu0 %v2576_v19, %s3174_s2  ;;  %623 = vrot.lane.b32.xlu1 %v2575_v18, %s3174_s2 }
0x17a3   :  { %737 = vrot.lane.b32.xlu1 %v2577_v20, %s3174_s2 }
0x1809   :  { %v1672_v10 = vpop.permute.xlu0 %1671 }
0x180a   :  { %v3632_v22 = vmul.f32 %v3008_v57, %v1672_v10 }
0x180d   :  { %v622_v21 = vpop.permute.xlu0 %621  ;;  %v1674_v30 = vpop.permute.xlu1 %1673 }
0x180e   :  { %628 = vst.msk [vmem:[#allocation3 + $0x10] sm:$0xf] %vm399_vm2, %v622_v21  ;;  %v3635_v11 = vmul.f32 %v3010_v59, %v1674_v30 }
0x1810   :  { %v1679_v55 = vpack.c.bf16 %v3635_v11, %v3632_v22 }
0x1811   :  { %v736_v23 = vpop.permute.xlu0 %735  ;;  %v624_v26 = vpop.permute.xlu1 %623 }
0x1812   :  { %742 = vst.msk [vmem:[#allocation3 + $0x18] sm:$0xf] %vm399_vm2, %v736_v23  ;;  %629 = vst.msk [vmem:[#allocation3 + $0x14] sm:$0xf] %vm399_vm2, %v624_v26  ;;  %1696 = vrot.lane.b32.xlu0 %v1679_v55, %s3174_s2 }
0x1815   :  { %v738_v56 = vpop.permute.xlu1 %737 }
0x1816   :  { %743 = vst.msk [vmem:[#allocation3 + $0x1c] sm:$0xf] %vm399_vm2, %v738_v56  ;;  %v2491_v56 = vmul.f32 -1.442695, %v3567_v38 }
0x1819   :  { %v2865_v31 = vld [vmem:[#allocation3 + $0x10] sm:$0xff]  }
0x181a   :  { %2762 = vmatprep.mubr.msk.bf16.mxu0 %vm36_vm0, %v2865_v31  ;;  %v2492_v31 = vmul.f32 -1.442695, %v3573_v41 }
0x181d   :  { %v2866_v32 = vld [vmem:[#allocation3 + $0x18] sm:$0xff]  }
0x181e   :  { %2763 = vmatmul.mubr.msk.bf16.gmra.mxu0 %vm36_vm0, %v2866_v32 }
0x1884   :  { %v1697_v33 = vpop.permute.xlu0 %1696 }
0x1885   :  { %2795 = vmatmul.mubr.msk.bf16.vlgmr.msra.gmra.mxu1 %vm36_vm0, %v1697_v33 }
0x1886   :  { %2799 = vmatpush3.bf16.msra.mxu1 %v3537_v24  ;;  %2802 = vmatprep.mubr.msk.bf16.mxu1 %vm3173_vm1, %v3172_v1 }
0x1887   :  { %2800 = vmatprep.subr.bf16.mxu1 %v3172_v1 }
0x188a   :  { %2801 = vmatpush3.bf16.msra.mxu1 %v3545_v25 }
0x188b   :  { %2814 = vmatprep.subr.bf16.mxu1 %v3172_v1 }
0x18de   :  { %v3652_v37 = vpop.f32.mrf.mxu0 }
0x18df   :  { %v1386_v33 = vadd.f32 %v3652_v37, %v3578_v0 }
0x18e0   :  { %v1377_v39 = vpop.f32.mrf.mxu0 }
0x18e1   :  { %v1378_v43 = vadd.f32 %v3578_v0, %v1377_v39 }
0x18e2   :  { %v3654_v40 = vpop.f32.mrf.mxu0 }
0x18e4   :  { %v1380_v44 = vpop.f32.mrf.mxu0 }
0x18e5   :  { %v1381_v5 = vadd.f32 %v3578_v0, %v1380_v44 }
0x1945   :  { %v1735_v63 = vpop.f32.mrf.mxu1 }
0x1946   :  { %v1742_v47 = vadd.f32 %v1735_v63, %v1378_v43 }
0x1947   :  { %v2796_v48 = vpop.f32.mrf.mxu1 }
0x1948   :  { %3015 = vtanh.f32 %v1742_v47  ;;  %v2529_v53 = vmul.f32 -1.442695, %v1742_v47  ;;  %v1389_v48 = vadd.f32 %v3654_v40, %v3578_v0 }
0x1949   :  { %v1738_v49 = vpop.f32.mrf.mxu1 }
0x194a   :  { %v1743_v50 = vadd.f32 %v1738_v49, %v1381_v5 }
0x194b   :  { %v2797_v13 = vpop.f32.mrf.mxu1 }
0x194c   :  { %3017 = vtanh.f32 %v1743_v50  ;;  %v2530_v2 = vmul.f32 -1.442695, %v1743_v50 }
0x194d   :  { %3019 = vpow2.f32 %v2529_v53 }
0x194e   :  { %3021 = vpow2.f32 %v2530_v2 }
0x1955   :  { %v3016_v3 = vpop.eup %3015 }
0x1956   :  { %1762 = vrot.lane.b32.xlu1 %v3016_v3, %s3175_s22 }
0x1959   :  { %v3018_v34 = vpop.eup %3017 }
0x195a   :  { %1764 = vrot.lane.b32.xlu0 %v3018_v34, %s3175_s22  ;;  %v3020_v54 = vpop.eup %3019 }
0x195b   :  { %v1750_v42 = vadd.f32 1.0, %v3020_v54  ;;  %v3022_v57 = vpop.eup %3021 }
0x195c   :  { %v1751_v58 = vadd.f32 1.0, %v3022_v57 }
0x195d   :  { %3023 = vrcp.f32 %v1750_v42 }
0x195e   :  { %3025 = vrcp.f32 %v1751_v58 }
0x196a   :  { %v3024_v4 = vpop.eup %3023 }
0x196b   :  { %v3026_v7 = vpop.eup %3025  ;;  %v1758_v12 = vmul.f32 %v3024_v4, %v3612_v9 }
0x196c   :  { %v1759_v16 = vmul.f32 %v3026_v7, %v3615_v15 }
0x19c8   :  { %v1763_v59 = vpop.permute.xlu1 %1762 }
0x19c9   :  { %v1768_v62 = vmul.f32 %v3024_v4, %v1763_v59 }
0x19cb   :  { %1772 = vrot.lane.b32.xlu1 %v1768_v62, %s3174_s2 }
0x19cc   :  { %v1765_v61 = vpop.permute.xlu0 %1764 }
0x19cd   :  { %v1769_v8 = vmul.f32 %v3026_v7, %v1765_v61 }
0x19cf   :  { %1774 = vrot.lane.b32.xlu0 %v1769_v8, %s3174_s2 }
0x1a3d   :  { %v1773_v14 = vpop.permute.xlu1 %1772 }
0x1a3e   :  { %v3663_v51 = vadd.f32 %v1773_v14, %v1758_v12 }
0x1a40   :  { %3027 = vtanh.f32 %v3663_v51 }
0x1a41   :  { %v1775_v17 = vpop.permute.xlu0 %1774 }
0x1a42   :  { %v3667_v18 = vadd.f32 %v1775_v17, %v1759_v16 }
0x1a44   :  { %3029 = vtanh.f32 %v3667_v18 }
0x1a45   :  { %3031 = vtanh.f32 %v3567_v38 }
0x1a46   :  { %3033 = vtanh.f32 %v3573_v41 }
0x1a47   :  { %3035 = vpow2.f32 %v2491_v56 }
0x1a48   :  { %3037 = vpow2.f32 %v2492_v31 }
0x1a4d   :  { %v3028_v19 = vpop.eup %3027 }
0x1a4e   :  { %1784 = vrot.lane.b32.xlu1 %v3028_v19, %s3175_s22 }
0x1a51   :  { %v3030_v20 = vpop.eup %3029 }
0x1a52   :  { %1786 = vrot.lane.b32.xlu0 %v3030_v20, %s3175_s22  ;;  %v3032_v9 = vpop.eup %3031 }
0x1a53   :  { %v3034_v23 = vpop.eup %3033 }
0x1a54   :  { %v3036_v32 = vpop.eup %3035 }
0x1a55   :  { %v1143_v43 = vadd.f32 1.0, %v3036_v32  ;;  %v3038_v63 = vpop.eup %3037 }
0x1a56   :  { %1155 = vrot.lane.b32.xlu0 %v3032_v9, %s3175_s22  ;;  %v1144_v38 = vadd.f32 1.0, %v3038_v63 }
0x1ac0   :  { %v1785_v10 = vpop.permute.xlu1 %1784 }
0x1ac1   :  { %v3675_v21 = vmul.f32 %v3024_v4, %v1785_v10 }
0x1ac4   :  { %v1787_v15 = vpop.permute.xlu0 %1786 }
0x1ac5   :  { %v3677_v30 = vmul.f32 %v3026_v7, %v1787_v15 }
0x1ac7   :  { %v1792_v55 = vpack.c.bf16 %v3677_v30, %v3675_v21 }
0x1ac8   :  { %v1156_v13 = vpop.permute.xlu0 %1155 }
0x1ac9   :  { %1809 = vrot.lane.b32.xlu1 %v1792_v55, %s3174_s2 }
0x1acd   :  { %1157 = vrot.lane.b32.xlu1 %v3034_v23, %s3175_s22 }
0x1b3b   :  { %v1810_v26 = vpop.permute.xlu1 %1809 }
0x1b3c   :  { %2803 = vmatmul.mubr.msk.bf16.vlgmr.msra.gmra.mxu1 %vm36_vm0, %v1810_v26 }
0x1b3d   :  { %2815 = vmatpush3.bf16.msra.mxu1 %v3537_v24  ;;  %2818 = vmatprep.mubr.msk.bf16.mxu1 %vm3173_vm1, %v3172_v1 }
0x1b3e   :  { %2816 = vmatprep.subr.bf16.mxu1 %v3172_v1 }
0x1b3f   :  { %v1158_v53 = vpop.permute.xlu1 %1157 }
0x1b41   :  { %2817 = vmatpush3.bf16.msra.mxu1 %v3545_v25 }
0x1b42   :  { %2830 = vmatprep.subr.bf16.mxu1 %v3172_v1 }
0x1bfc   :  { %v1848_v39 = vpop.f32.mrf.mxu1 }
0x1bfd   :  { %v1855_v44 = vadd.f32 %v1848_v39, %v1386_v33  ;;  %v2578_v33 = vpack.c.bf16 %v3455_v45, %v3455_v45  ;;  %v2582_v45 = vpack.c.bf16 %v3522_v52, %v3522_v52 }
0x1bfe   :  { %v2804_v47 = vpop.f32.mrf.mxu1 }
0x1bff   :  { %3039 = vtanh.f32 %v1855_v44  ;;  %v2536_v54 = vmul.f32 -1.442695, %v1855_v44  ;;  %v2581_v44 = vpack.c.bf16 %v3481_v28, %v3481_v28 }
0x1c00   :  { %v1851_v5 = vpop.f32.mrf.mxu1  ;;  %3041 = vrcp.f32 %v1143_v43 }
0x1c01   :  { %v1856_v49 = vadd.f32 %v1851_v5, %v1389_v48 }
0x1c02   :  { %v2805_v50 = vpop.f32.mrf.mxu1 }
0x1c03   :  { %3043 = vtanh.f32 %v1856_v49  ;;  %v2537_v42 = vmul.f32 -1.442695, %v1856_v49 }
0x1c04   :  { %3045 = vrcp.f32 %v1144_v38 }
0x1c05   :  { %3047 = vpow2.f32 %v2536_v54 }
0x1c06   :  { %3049 = vpow2.f32 %v2537_v42 }
0x1c0c   :  { %v3040_v41 = vpop.eup %3039 }
0x1c0d   :  { %1875 = vrot.lane.b32.xlu0 %v3040_v41, %s3175_s22  ;;  %v3042_v37 = vpop.eup %3041 }
0x1c0e   :  { %v1161_v3 = vmul.f32 %v3042_v37, %v1156_v13  ;;  %v1151_v8 = vmul.f32 %v3042_v37, %v3495_v60 }
0x1c10   :  { %v3044_v34 = vpop.eup %3043 }
0x1c11   :  { %1165 = vrot.lane.b32.xlu0 %v1161_v3, %s3174_s2  ;;  %1877 = vrot.lane.b32.xlu1 %v3044_v34, %s3175_s22  ;;  %v3046_v40 = vpop.eup %3045 }
0x1c12   :  { %v1162_v2 = vmul.f32 %v3046_v40, %v1158_v53  ;;  %v3048_v57 = vpop.eup %3047  ;;  %v1152_v20 = vmul.f32 %v3046_v40, %v3498_v6 }
0x1c13   :  { %v1863_v58 = vadd.f32 1.0, %v3048_v57  ;;  %v3050_v4 = vpop.eup %3049 }
0x1c14   :  { %v1864_v59 = vadd.f32 1.0, %v3050_v4 }
0x1c15   :  { %1167 = vrot.lane.b32.xlu1 %v1162_v2, %s3174_s2  ;;  %3051 = vrcp.f32 %v1863_v58 }
0x1c16   :  { %3053 = vrcp.f32 %v1864_v59 }
0x1c22   :  { %v3052_v62 = vpop.eup %3051 }
0x1c23   :  { %v3054_v12 = vpop.eup %3053  ;;  %v1871_v55 = vmul.f32 %v3052_v62, %v3663_v51  ;;  %v2579_v51 = vpack.c.bf16 %v3457_v46, %v3457_v46  ;;  %v2583_v46 = vpack.c.bf16 %v3525_v29, %v3525_v29 }
0x1c24   :  { %v1872_v6 = vmul.f32 %v3054_v12, %v3667_v18  ;;  %v2580_v18 = vpack.c.bf16 %v3479_v27, %v3479_v27 }
0x1c7f   :  { %v1876_v7 = vpop.permute.xlu0 %1875 }
0x1c80   :  { %v1881_v61 = vmul.f32 %v3052_v62, %v1876_v7 }
0x1c82   :  { %1885 = vrot.lane.b32.xlu0 %v1881_v61, %s3174_s2 }
0x1c83   :  { %v1166_v14 = vpop.permute.xlu0 %1165  ;;  %v1878_v16 = vpop.permute.xlu1 %1877 }
0x1c84   :  { %v3702_v17 = vadd.f32 %v1166_v14, %v1151_v8  ;;  %v1882_v19 = vmul.f32 %v3054_v12, %v1878_v16 }
0x1c86   :  { %3055 = vtanh.f32 %v3702_v17  ;;  %1887 = vrot.lane.b32.xlu1 %v1882_v19, %s3174_s2 }
0x1c87   :  { %v1168_v9 = vpop.permute.xlu1 %1167 }
0x1c88   :  { %v3707_v10 = vadd.f32 %v1168_v9, %v1152_v20 }
0x1c8a   :  { %3057 = vtanh.f32 %v3707_v10 }
0x1c93   :  { %v3056_v15 = vpop.eup %3055 }
0x1c94   :  { %1177 = vrot.lane.b32.xlu0 %v3056_v15, %s3175_s22 }
0x1c97   :  { %v3058_v60 = vpop.eup %3057 }
0x1c98   :  { %1179 = vrot.lane.b32.xlu1 %v3058_v60, %s3175_s22 }
0x1cf4   :  { %v1886_v23 = vpop.permute.xlu0 %1885 }
0x1cf5   :  { %v3713_v26 = vadd.f32 %v1886_v23, %v1871_v55 }
0x1cf7   :  { %3059 = vtanh.f32 %v3713_v26 }
0x1cf8   :  { %v1888_v56 = vpop.permute.xlu1 %1887 }
0x1cf9   :  { %v3717_v31 = vadd.f32 %v1888_v56, %v1872_v6 }
0x1cfb   :  { %3061 = vtanh.f32 %v3717_v31 }
0x1d04   :  { %v3060_v32 = vpop.eup %3059 }
0x1d05   :  { %1897 = vrot.lane.b32.xlu0 %v3060_v32, %s3175_s22 }
0x1d06   :  { %v1178_v43 = vpop.permute.xlu0 %1177 }
0x1d07   :  { %v3735_v63 = vmul.f32 %v3042_v37, %v1178_v43 }
0x1d08   :  { %v3062_v39 = vpop.eup %3061 }
0x1d09   :  { %849 = vrot.lane.b32.xlu0 %v2578_v33, %s3174_s2  ;;  %1899 = vrot.lane.b32.xlu1 %v3062_v39, %s3175_s22  ;;  %v2584_v27 = vpack.c.bf16 %v3735_v63, %v3735_v63 }
0x1d0a   :  { %v1180_v47 = vpop.permute.xlu1 %1179 }
0x1d0b   :  { %v3743_v48 = vmul.f32 %v3046_v40, %v1180_v47 }
0x1d0d   :  { %963 = vrot.lane.b32.xlu0 %v2580_v18, %s3174_s2  ;;  %851 = vrot.lane.b32.xlu1 %v2579_v51, %s3174_s2  ;;  %v2585_v28 = vpack.c.bf16 %v3743_v48, %v3743_v48 }
0x1d11   :  { %1077 = vrot.lane.b32.xlu0 %v2582_v45, %s3174_s2  ;;  %965 = vrot.lane.b32.xlu1 %v2581_v44, %s3174_s2 }
0x1d15   :  { %1191 = vrot.lane.b32.xlu0 %v2584_v27, %s3174_s2  ;;  %1079 = vrot.lane.b32.xlu1 %v2583_v46, %s3174_s2 }
0x1d19   :  { %1193 = vrot.lane.b32.xlu1 %v2585_v28, %s3174_s2 }
0x1d77   :  { %v1898_v52 = vpop.permute.xlu0 %1897 }
0x1d78   :  { %v3750_v49 = vmul.f32 %v3052_v62, %v1898_v52 }
0x1d7b   :  { %v850_v5 = vpop.permute.xlu0 %849  ;;  %v1900_v38 = vpop.permute.xlu1 %1899 }
0x1d7c   :  { %856 = vst.msk [vmem:[#allocation3 + $0x20] sm:$0xf] %vm399_vm2, %v850_v5  ;;  %v3753_v29 = vmul.f32 %v3054_v12, %v1900_v38 }
0x1d7e   :  { %v1905_v50 = vpack.c.bf16 %v3753_v29, %v3750_v49 }
0x1d7f   :  { %v964_v41 = vpop.permute.xlu0 %963  ;;  %v852_v13 = vpop.permute.xlu1 %851 }
0x1d80   :  { %970 = vst.msk [vmem:[#allocation3 + $0x28] sm:$0xf] %vm399_vm2, %v964_v41  ;;  %857 = vst.msk [vmem:[#allocation3 + $0x24] sm:$0xf] %vm399_vm2, %v852_v13  ;;  %1922 = vrot.lane.b32.xlu0 %v1905_v50, %s3174_s2 }
0x1d83   :  { %v1078_v37 = vpop.permute.xlu0 %1077  ;;  %v966_v3 = vpop.permute.xlu1 %965 }
0x1d84   :  { %1084 = vst.msk [vmem:[#allocation3 + $0x30] sm:$0xf] %vm399_vm2, %v1078_v37  ;;  %971 = vst.msk [vmem:[#allocation3 + $0x2c] sm:$0xf] %vm399_vm2, %v966_v3 }
0x1d87   :  { %v1192_v34 = vpop.permute.xlu0 %1191  ;;  %v1080_v53 = vpop.permute.xlu1 %1079  ;;  %v2867_v40 = vld [vmem:[#allocation3 + $0x20] sm:$0xff]  }
0x1d88   :  { %1198 = vst.msk [vmem:[#allocation3 + $0x38] sm:$0xf] %vm399_vm2, %v1192_v34  ;;  %1085 = vst.msk [vmem:[#allocation3 + $0x34] sm:$0xf] %vm399_vm2, %v1080_v53  ;;  %2766 = vmatprep.mubr.msk.bf16.mxu0 %vm36_vm0, %v2867_v40 }
0x1d8b   :  { %v1194_v2 = vpop.permute.xlu1 %1193  ;;  %v2868_v54 = vld [vmem:[#allocation3 + $0x28] sm:$0xff]  }
0x1d8c   :  { %1199 = vst.msk [vmem:[#allocation3 + $0x3c] sm:$0xf] %vm399_vm2, %v1194_v2  ;;  %2767 = vmatmul.mubr.msk.bf16.gmra.mxu0 %vm36_vm0, %v2868_v54 }
0x1d8f   :  { %v2869_v42 = vld [vmem:[#allocation3 + $0x30] sm:$0xff]  }
0x1d90   :  { %2770 = vmatprep.mubr.msk.bf16.mxu0 %vm36_vm0, %v2869_v42 }
0x1d93   :  { %v2870_v57 = vld [vmem:[#allocation3 + $0x38] sm:$0xff]  }
0x1d94   :  { %2771 = vmatmul.mubr.msk.bf16.gmra.mxu0 %vm36_vm0, %v2870_v57 }
0x1d95   :  { %2810 = vmatprep.mubr.msk.bf16.mxu0 %vm3173_vm1, %v3172_v1 }
0x1df2   :  { %v1923_v58 = vpop.permute.xlu0 %1922 }
0x1df3   :  { %2811 = vmatmul.mubr.msk.bf16.vlgmr.msra.gmra.mxu0 %vm36_vm0, %v1923_v58 }
0x1df4   :  { %2823 = vmatpush3.bf16.msra.mxu0 %v3537_v24  ;;  %2826 = vmatprep.mubr.msk.bf16.mxu0 %vm3173_vm1, %v3172_v1 }
0x1df5   :  { %2824 = vmatprep.subr.bf16.mxu0 %v3172_v1 }
0x1df8   :  { %2825 = vmatpush3.bf16.msra.mxu0 %v3545_v25 }
0x1e4c   :  { %v3777_v4 = vpop.f32.mrf.mxu0 }
0x1e4d   :  { %v1402_v54 = vadd.f32 %v3777_v4, %v3578_v0 }
0x1e4e   :  { %v1393_v59 = vpop.f32.mrf.mxu0 }
0x1e4f   :  { %v1394_v16 = vadd.f32 %v3578_v0, %v1393_v59 }
0x1e50   :  { %v3779_v62 = vpop.f32.mrf.mxu0 }
0x1e51   :  { %v1405_v59 = vadd.f32 %v3779_v62, %v3578_v0 }
0x1e52   :  { %v1396_v7 = vpop.f32.mrf.mxu0 }
0x1e53   :  { %v1397_v15 = vadd.f32 %v3578_v0, %v1396_v7 }
0x1e54   :  { %v3781_v61 = vpop.f32.mrf.mxu0 }
0x1e56   :  { %v3783_v8 = vpop.f32.mrf.mxu0 }
0x1e58   :  { %v3785_v12 = vpop.f32.mrf.mxu0 }
0x1e5a   :  { %v3787_v14 = vpop.f32.mrf.mxu0 }
0x1eb3   :  { %v1961_v19 = vpop.f32.mrf.mxu0 }
0x1eb4   :  { %v1968_v20 = vadd.f32 %v1961_v19, %v1394_v16 }
0x1eb5   :  { %v2812_v9 = vpop.f32.mrf.mxu0 }
0x1eb6   :  { %3063 = vtanh.f32 %v1968_v20  ;;  %v2543_v32 = vmul.f32 -1.442695, %v1968_v20 }
0x1eb7   :  { %v1964_v60 = vpop.f32.mrf.mxu0 }
0x1eb8   :  { %v1969_v55 = vadd.f32 %v1964_v60, %v1397_v15 }
0x1eb9   :  { %v2813_v23 = vpop.f32.mrf.mxu0 }
0x1eba   :  { %3065 = vtanh.f32 %v1969_v55  ;;  %v2544_v33 = vmul.f32 -1.442695, %v1969_v55 }
0x1ebb   :  { %3067 = vpow2.f32 %v2543_v32 }
0x1ebc   :  { %3069 = vpow2.f32 %v2544_v33 }
0x1ec3   :  { %v3064_v6 = vpop.eup %3063 }
0x1ec4   :  { %1988 = vrot.lane.b32.xlu1 %v3064_v6, %s3175_s22 }
0x1ec7   :  { %v3066_v56 = vpop.eup %3065 }
0x1ec8   :  { %1990 = vrot.lane.b32.xlu0 %v3066_v56, %s3175_s22  ;;  %v3068_v39 = vpop.eup %3067 }
0x1ec9   :  { %v1976_v51 = vadd.f32 1.0, %v3068_v39  ;;  %v3070_v18 = vpop.eup %3069 }
0x1eca   :  { %v1977_v43 = vadd.f32 1.0, %v3070_v18 }
0x1ecb   :  { %3071 = vrcp.f32 %v1976_v51 }
0x1ecc   :  { %3073 = vrcp.f32 %v1977_v43 }
0x1ed8   :  { %v3072_v44 = vpop.eup %3071 }
0x1ed9   :  { %v3074_v46 = vpop.eup %3073  ;;  %v1984_v52 = vmul.f32 %v3072_v44, %v3713_v26 }
0x1eda   :  { %v1985_v50 = vmul.f32 %v3074_v46, %v3717_v31 }
0x1f36   :  { %v1989_v45 = vpop.permute.xlu1 %1988 }
0x1f37   :  { %v1994_v47 = vmul.f32 %v3072_v44, %v1989_v45 }
0x1f39   :  { %1998 = vrot.lane.b32.xlu1 %v1994_v47, %s3174_s2 }
0x1f3a   :  { %v1991_v27 = vpop.permute.xlu0 %1990 }
0x1f3b   :  { %v1995_v28 = vmul.f32 %v3074_v46, %v1991_v27 }
0x1f3d   :  { %2000 = vrot.lane.b32.xlu0 %v1995_v28, %s3174_s2 }
0x1fab   :  { %v1999_v5 = vpop.permute.xlu1 %1998 }
0x1fac   :  { %v2004_v38 = vadd.f32 %v1999_v5, %v1984_v52 }
0x1fae   :  { %3075 = vtanh.f32 %v2004_v38 }
0x1faf   :  { %v2001_v41 = vpop.permute.xlu0 %2000 }
0x1fb0   :  { %v2005_v13 = vadd.f32 %v2001_v41, %v1985_v50  ;;  %v1410_v50 = vadd.f32 %v3578_v0, %v3783_v8 }
0x1fb2   :  { %3077 = vtanh.f32 %v2005_v13 }
0x1fbb   :  { %v3076_v37 = vpop.eup %3075 }
0x1fbc   :  { %2010 = vrot.lane.b32.xlu1 %v3076_v37, %s3175_s22 }
0x1fbf   :  { %v3078_v3 = vpop.eup %3077 }
0x1fc0   :  { %2012 = vrot.lane.b32.xlu0 %v3078_v3, %s3175_s22  ;;  %v1413_v3 = vadd.f32 %v3578_v0, %v3787_v14 }
0x202e   :  { %v2011_v34 = vpop.permute.xlu1 %2010 }
0x202f   :  { %v3799_v40 = vmul.f32 %v3072_v44, %v2011_v34 }
0x2032   :  { %v2013_v53 = vpop.permute.xlu0 %2012 }
0x2033   :  { %v3801_v2 = vmul.f32 %v3074_v46, %v2013_v53 }
0x2035   :  { %v2018_v26 = vpack.c.bf16 %v3801_v2, %v3799_v40 }
0x2037   :  { %2035 = vrot.lane.b32.xlu1 %v2018_v26, %s3174_s2 }
0x20a9   :  { %v2036_v31 = vpop.permute.xlu1 %2035 }
0x20aa   :  { %2819 = vmatmul.mubr.msk.bf16.vlgmr.msra.gmra.mxu1 %vm36_vm0, %v2036_v31 }
0x20ab   :  { %2831 = vmatpush3.bf16.msra.mxu1 %v3537_v24  ;;  %2834 = vmatprep.mubr.msk.bf16.mxu1 %vm3173_vm1, %v3172_v1 }
0x20ac   :  { %2832 = vmatprep.subr.bf16.mxu1 %v3172_v1 }
0x20af   :  { %2833 = vmatpush3.bf16.msra.mxu1 %v3545_v25 }
0x216a   :  { %v2074_v42 = vpop.f32.mrf.mxu1 }
0x216b   :  { %v2081_v57 = vadd.f32 %v2074_v42, %v1402_v54 }
0x216c   :  { %v2820_v58 = vpop.f32.mrf.mxu1 }
0x216d   :  { %3079 = vtanh.f32 %v2081_v57  ;;  %v2550_v25 = vmul.f32 -1.442695, %v2081_v57 }
0x216e   :  { %v2077_v7 = vpop.f32.mrf.mxu1 }
0x216f   :  { %v2082_v16 = vadd.f32 %v2077_v7, %v1405_v59 }
0x2170   :  { %v2821_v24 = vpop.f32.mrf.mxu1 }
0x2171   :  { %3081 = vtanh.f32 %v2082_v16  ;;  %v2551_v4 = vmul.f32 -1.442695, %v2082_v16 }
0x2172   :  { %3083 = vpow2.f32 %v2550_v25 }
0x2173   :  { %3085 = vpow2.f32 %v2551_v4 }
0x217a   :  { %v3080_v19 = vpop.eup %3079 }
0x217b   :  { %2101 = vrot.lane.b32.xlu0 %v3080_v19, %s3175_s22 }
0x217e   :  { %v3082_v1 = vpop.eup %3081 }
0x217f   :  { %2103 = vrot.lane.b32.xlu1 %v3082_v1, %s3175_s22  ;;  %v3084_v20 = vpop.eup %3083 }
0x2180   :  { %v2089_v9 = vadd.f32 1.0, %v3084_v20  ;;  %v3086_v15 = vpop.eup %3085 }
0x2181   :  { %v2090_v62 = vadd.f32 1.0, %v3086_v15 }
0x2182   :  { %3087 = vrcp.f32 %v2089_v9 }
0x2183   :  { %3089 = vrcp.f32 %v2090_v62 }
0x218f   :  { %v3088_v60 = vpop.eup %3087 }
0x2190   :  { %v3090_v6 = vpop.eup %3089  ;;  %v2097_v33 = vmul.f32 %v3088_v60, %v2004_v38 }
0x2191   :  { %v2098_v18 = vmul.f32 %v3090_v6, %v2005_v13 }
0x21ed   :  { %v2102_v55 = vpop.permute.xlu0 %2101 }
0x21ee   :  { %v2107_v23 = vmul.f32 %v3088_v60, %v2102_v55 }
0x21f0   :  { %2111 = vrot.lane.b32.xlu0 %v2107_v23, %s3174_s2 }
0x21f1   :  { %v2104_v56 = vpop.permute.xlu1 %2103 }
0x21f2   :  { %v2108_v32 = vmul.f32 %v3090_v6, %v2104_v56 }
0x21f4   :  { %2113 = vrot.lane.b32.xlu1 %v2108_v32, %s3174_s2 }
0x2262   :  { %v2112_v39 = vpop.permute.xlu0 %2111 }
0x2263   :  { %v2117_v51 = vadd.f32 %v2112_v39, %v2097_v33 }
0x2265   :  { %3091 = vtanh.f32 %v2117_v51 }
0x2266   :  { %v2114_v43 = vpop.permute.xlu1 %2113 }
0x2267   :  { %v2118_v44 = vadd.f32 %v2114_v43, %v2098_v18 }
0x2269   :  { %3093 = vtanh.f32 %v2118_v44 }
0x2272   :  { %v3092_v45 = vpop.eup %3091 }
0x2273   :  { %2123 = vrot.lane.b32.xlu0 %v3092_v45, %s3175_s22 }
0x2276   :  { %v3094_v47 = vpop.eup %3093 }
0x2277   :  { %2125 = vrot.lane.b32.xlu1 %v3094_v47, %s3175_s22 }
0x22e5   :  { %v2124_v46 = vpop.permute.xlu0 %2123 }
0x22e6   :  { %v3822_v28 = vmul.f32 %v3088_v60, %v2124_v46 }
0x22e9   :  { %v2126_v27 = vpop.permute.xlu1 %2125 }
0x22ea   :  { %v3824_v52 = vmul.f32 %v3090_v6, %v2126_v27 }
0x22ec   :  { %v2131_v5 = vpack.c.bf16 %v3824_v52, %v3822_v28 }
0x22ee   :  { %2148 = vrot.lane.b32.xlu0 %v2131_v5, %s3174_s2 }
0x2360   :  { %v2149_v38 = vpop.permute.xlu0 %2148 }
0x2361   :  { %2827 = vmatmul.mubr.msk.bf16.vlgmr.msra.gmra.mxu0 %vm36_vm0, %v2149_v38 }
0x2421   :  { %v2187_v41 = vpop.f32.mrf.mxu0 }
0x2422   :  { %v2194_v13 = vadd.f32 %v2187_v41, %v1410_v50 }
0x2423   :  { %v2828_v37 = vpop.f32.mrf.mxu0 }
0x2424   :  { %3095 = vtanh.f32 %v2194_v13  ;;  %v2557_v42 = vmul.f32 -1.442695, %v2194_v13 }
0x2425   :  { %v2190_v34 = vpop.f32.mrf.mxu0 }
0x2426   :  { %v2195_v53 = vadd.f32 %v2190_v34, %v1413_v3 }
0x2427   :  { %v2829_v26 = vpop.f32.mrf.mxu0 }
0x2428   :  { %3097 = vtanh.f32 %v2195_v53  ;;  %v2558_v8 = vmul.f32 -1.442695, %v2195_v53 }
0x2429   :  { %3099 = vpow2.f32 %v2557_v42 }
0x242a   :  { %3101 = vpow2.f32 %v2558_v8 }
0x2431   :  { %v3096_v31 = vpop.eup %3095 }
0x2432   :  { %2214 = vrot.lane.b32.xlu1 %v3096_v31, %s3175_s22 }
0x2435   :  { %v3098_v54 = vpop.eup %3097 }
0x2436   :  { %2216 = vrot.lane.b32.xlu0 %v3098_v54, %s3175_s22  ;;  %v3100_v57 = vpop.eup %3099 }
0x2437   :  { %v2202_v58 = vadd.f32 1.0, %v3100_v57  ;;  %v3102_v59 = vpop.eup %3101 }
0x2438   :  { %v2203_v0 = vadd.f32 1.0, %v3102_v59 }
0x2439   :  { %3103 = vrcp.f32 %v2202_v58 }
0x243a   :  { %3105 = vrcp.f32 %v2203_v0 }
0x2446   :  { %v3104_v14 = vpop.eup %3103 }
0x2447   :  { %v3106_v24 = vpop.eup %3105  ;;  %v2210_v25 = vmul.f32 %v3104_v14, %v2117_v51  ;;  %v3127_v51 = vld [vmem:[%s4009_s6] ss:$0 sm:$0xff]  ;;  %s3176_s6 = smov 96  }
0x2448   :  { %v2211_v9 = vmul.f32 %v3106_v24, %v2118_v44  ;;  %v1418_v18 = vadd.f32 %v3127_v51, %v3781_v61  ;;  %v1421_v47 = vadd.f32 %v3127_v51, %v3785_v12 }
0x24a4   :  { %v2215_v7 = vpop.permute.xlu1 %2214 }
0x24a5   :  { %v2220_v16 = vmul.f32 %v3104_v14, %v2215_v7 }
0x24a7   :  { %2224 = vrot.lane.b32.xlu1 %v2220_v16, %s3174_s2 }
0x24a8   :  { %v2217_v19 = vpop.permute.xlu0 %2216 }
0x24a9   :  { %v2221_v1 = vmul.f32 %v3106_v24, %v2217_v19  ;;  %v2588_v19 = vpack.c.bf16 %v3632_v22, %v3632_v22  ;;  %v2593_v22 = vpack.c.bf16 %v3753_v29, %v3753_v29 }
0x24ab   :  { %2226 = vrot.lane.b32.xlu0 %v2221_v1, %s3174_s2 }
0x2519   :  { %v2225_v4 = vpop.permute.xlu1 %2224 }
0x251a   :  { %v2230_v20 = vadd.f32 %v2225_v4, %v2210_v25 }
0x251c   :  { %3107 = vtanh.f32 %v2230_v20 }
0x251d   :  { %v2227_v15 = vpop.permute.xlu0 %2226 }
0x251e   :  { %v2231_v62 = vadd.f32 %v2227_v15, %v2211_v9 }
0x2520   :  { %3109 = vtanh.f32 %v2231_v62 }
0x2529   :  { %v3108_v60 = vpop.eup %3107 }
0x252a   :  { %2236 = vrot.lane.b32.xlu1 %v3108_v60, %s3175_s22 }
0x252d   :  { %v3110_v55 = vpop.eup %3109 }
0x252e   :  { %2238 = vrot.lane.b32.xlu0 %v3110_v55, %s3175_s22 }
0x259c   :  { %v2237_v23 = vpop.permute.xlu1 %2236 }
0x259d   :  { %v3840_v56 = vmul.f32 %v3104_v14, %v2237_v23 }
0x25a0   :  { %v2239_v6 = vpop.permute.xlu0 %2238 }
0x25a1   :  { %v3842_v32 = vmul.f32 %v3106_v24, %v2239_v6  ;;  %v2586_v24 = vpack.c.bf16 %v3590_v35, %v3590_v35  ;;  %v2591_v35 = vpack.c.bf16 %v3677_v30, %v3677_v30  ;;  %v2596_v30 = vpack.c.bf16 %v3822_v28, %v3822_v28 }
0x25a3   :  { %v2244_v33 = vpack.c.bf16 %v3842_v32, %v3840_v56  ;;  %v2599_v29 = vpack.c.bf16 %v3842_v32, %v3842_v32 }
0x25a5   :  { %2261 = vrot.lane.b32.xlu1 %v2244_v33, %s3174_s2 }
0x2617   :  { %v2262_v39 = vpop.permute.xlu1 %2261 }
0x2618   :  { %2835 = vmatmul.mubr.msk.bf16.vlgmr.msra.gmra.mxu1 %vm36_vm0, %v2262_v39 }
0x26d8   :  { %v2300_v43 = vpop.f32.mrf.mxu1 }
0x26d9   :  { %v2307_v44 = vadd.f32 %v2300_v43, %v1418_v18 }
0x26da   :  { %v2836_v45 = vpop.f32.mrf.mxu1 }
0x26db   :  { %3111 = vtanh.f32 %v2307_v44  ;;  %v2564_v41 = vmul.f32 -1.442695, %v2307_v44 }
0x26dc   :  { %v2303_v46 = vpop.f32.mrf.mxu1 }
0x26dd   :  { %v2308_v27 = vadd.f32 %v2303_v46, %v1421_v47 }
0x26de   :  { %v2837_v5 = vpop.f32.mrf.mxu1 }
0x26df   :  { %3113 = vtanh.f32 %v2308_v27  ;;  %v2565_v13 = vmul.f32 -1.442695, %v2308_v27 }
0x26e0   :  { %3115 = vpow2.f32 %v2564_v41 }
0x26e1   :  { %3117 = vpow2.f32 %v2565_v13 }
0x26e8   :  { %v3112_v38 = vpop.eup %3111 }
0x26e9   :  { %2327 = vrot.lane.b32.xlu0 %v3112_v38, %s3175_s22 }
0x26ec   :  { %v3114_v50 = vpop.eup %3113 }
0x26ed   :  { %2329 = vrot.lane.b32.xlu1 %v3114_v50, %s3175_s22  ;;  %v3116_v61 = vpop.eup %3115 }
0x26ee   :  { %v2315_v37 = vadd.f32 1.0, %v3116_v61  ;;  %v3118_v3 = vpop.eup %3117 }
0x26ef   :  { %v2316_v12 = vadd.f32 1.0, %v3118_v3 }
0x26f0   :  { %3119 = vrcp.f32 %v2315_v37 }
0x26f1   :  { %3121 = vrcp.f32 %v2316_v12 }
0x26fd   :  { %v3120_v34 = vpop.eup %3119 }
0x26fe   :  { %v3122_v31 = vpop.eup %3121  ;;  %v2323_v8 = vmul.f32 %v3120_v34, %v2230_v20 }
0x26ff   :  { %v2324_v59 = vmul.f32 %v3122_v31, %v2231_v62 }
0x275b   :  { %v2328_v53 = vpop.permute.xlu0 %2327 }
0x275c   :  { %v2333_v26 = vmul.f32 %v3120_v34, %v2328_v53 }
0x275e   :  { %2337 = vrot.lane.b32.xlu0 %v2333_v26, %s3174_s2 }
0x275f   :  { %v2330_v54 = vpop.permute.xlu1 %2329 }
0x2760   :  { %v2334_v42 = vmul.f32 %v3122_v31, %v2330_v54 }
0x2762   :  { %2339 = vrot.lane.b32.xlu1 %v2334_v42, %s3174_s2 }
0x27d0   :  { %v2338_v57 = vpop.permute.xlu0 %2337 }
0x27d1   :  { %v2343_v58 = vadd.f32 %v2338_v57, %v2323_v8 }
0x27d3   :  { %3123 = vtanh.f32 %v2343_v58 }
0x27d4   :  { %v2340_v0 = vpop.permute.xlu1 %2339 }
0x27d5   :  { %v2344_v14 = vadd.f32 %v2340_v0, %v2324_v59 }
0x27d7   :  { %3125 = vtanh.f32 %v2344_v14 }
0x27e0   :  { %v3124_v7 = vpop.eup %3123 }
0x27e1   :  { %2349 = vrot.lane.b32.xlu0 %v3124_v7, %s3175_s22 }
0x27e4   :  { %v3126_v16 = vpop.eup %3125 }
0x27e5   :  { %1202 = vrot.lane.b32.xlu0 %v3735_v63, %s3174_s2  ;;  %2351 = vrot.lane.b32.xlu1 %v3126_v16, %s3175_s22  ;;  %v2587_v63 = vpack.c.bf16 %v3592_v36, %v3592_v36  ;;  %v2592_v36 = vpack.c.bf16 %v3750_v49, %v3750_v49  ;;  %v2598_v49 = vpack.c.bf16 %v3840_v56, %v3840_v56  ;;  %s2417_s22 = sshll.u32 %s3177_s21, 4  ;;  %s2418_s22 = int_to_ptr.vmem [resolvable:$true] %s2417_s22 }
0x27e6   :  { %p3133_p1 = scmp.lt.s32.totalorder %s2418_s22, %s2418_s22 }
0x27e9   :  { %1212 = vrot.lane.b32.xlu0 %v3702_v17, %s3176_s6  ;;  %1204 = vrot.lane.b32.xlu1 %v3743_v48, %s3174_s2  ;;  %v2589_v17 = vpack.c.bf16 %v3635_v11, %v3635_v11  ;;  %v2594_v11 = vpack.c.bf16 %v3799_v40, %v3799_v40  ;;  %v2597_v48 = vpack.c.bf16 %v3824_v52, %v3824_v52 }
0x27ed   :  { %2384 = vrot.lane.b32.xlu0 %v2343_v58, %s3176_s6  ;;  %1214 = vrot.lane.b32.xlu1 %v3707_v10, %s3176_s6  ;;  %v2590_v10 = vpack.c.bf16 %v3675_v21, %v3675_v21  ;;  %v2595_v21 = vpack.c.bf16 %v3801_v2, %v3801_v2 }
0x27f1   :  { %1573 = vrot.lane.b32.xlu0 %v2586_v24, %s3174_s2  ;;  %2386 = vrot.lane.b32.xlu1 %v2344_v14, %s3176_s6 }
0x27f5   :  { %1685 = vrot.lane.b32.xlu0 %v2588_v19, %s3174_s2  ;;  %1575 = vrot.lane.b32.xlu1 %v2587_v63, %s3174_s2 }
0x27f9   :  { %1798 = vrot.lane.b32.xlu0 %v2590_v10, %s3174_s2  ;;  %1687 = vrot.lane.b32.xlu1 %v2589_v17, %s3174_s2 }
0x27fd   :  { %1911 = vrot.lane.b32.xlu0 %v2592_v36, %s3174_s2  ;;  %1800 = vrot.lane.b32.xlu1 %v2591_v35, %s3174_s2 }
0x2801   :  { %2024 = vrot.lane.b32.xlu0 %v2594_v11, %s3174_s2  ;;  %1913 = vrot.lane.b32.xlu1 %v2593_v22, %s3174_s2 }
0x2805   :  { %2137 = vrot.lane.b32.xlu0 %v2596_v30, %s3174_s2  ;;  %2026 = vrot.lane.b32.xlu1 %v2595_v21, %s3174_s2 }
0x2809   :  { %2250 = vrot.lane.b32.xlu0 %v2598_v49, %s3174_s2  ;;  %2139 = vrot.lane.b32.xlu1 %v2597_v48, %s3174_s2 }
0x280d   :  { %2252 = vrot.lane.b32.xlu1 %v2599_v29, %s3174_s2 }
0x2853   :  { %v2350_v40 = vpop.permute.xlu0 %2349 }
0x2854   :  { %v2355_v2 = vmul.f32 %v3120_v34, %v2350_v40 }
0x2856   :  { %2374 = vrot.lane.b32.xlu0 %v2355_v2, %s3174_s2  ;;  %v2600_v25 = vpack.c.bf16 %v2355_v2, %v2355_v2 }
0x2857   :  { %v1203_v28 = vpop.permute.xlu0 %1202  ;;  %v2352_v1 = vpop.permute.xlu1 %2351 }
0x2858   :  { %1208 = vst.msk [vmem:[#allocation4] sm:$0xff] %vm36_vm0, %v1203_v28  ;;  %1220 = vst.msk [vmem:[#allocation6] sm:$0xff] %vm36_vm0, %v1203_v28  ;;  %v2356_v52 = vmul.f32 %v3122_v31, %v2352_v1 }
0x285a   :  { %2363 = vrot.lane.b32.xlu0 %v2600_v25, %s3174_s2  ;;  %2376 = vrot.lane.b32.xlu1 %v2356_v52, %s3174_s2  ;;  %v2601_v9 = vpack.c.bf16 %v2356_v52, %v2356_v52 }
0x285b   :  { %v1213_v4 = vpop.permute.xlu0 %1212  ;;  %v1205_v20 = vpop.permute.xlu1 %1204 }
0x285c   :  { %1218 = vst.msk [vmem:[#allocation5] sm:$0xff] %vm36_vm0, %v1213_v4  ;;  %1222 = vst.msk [vmem:[#allocation8] sm:$0xff] %vm36_vm0, %v1213_v4 }
0x285d   :  { %1209 = vst.msk [vmem:[#allocation4 + $0x8] sm:$0xff] %vm36_vm0, %v1205_v20  ;;  %1221 = vst.msk [vmem:[#allocation6 + $0x8] sm:$0xff] %vm36_vm0, %v1205_v20 }
0x285e   :  { %2365 = vrot.lane.b32.xlu1 %v2601_v9, %s3174_s2  ;;  %s3128_s2 = scalar_lea.vmem %s2418_s22, 512 }
0x285f   :  { %v2385_v15 = vpop.permute.xlu0 %2384  ;;  %v1215_v62 = vpop.permute.xlu1 %1214  ;;  %p3129_p0 = scmp.ne.s32.totalorder %s2418_s22, %s3128_s2  ;;  %p3134_p2 = scmp.lt.s32.totalorder %s3128_s2, %s3128_s2 }
0x2860   :  { %2390 = vst.msk [vmem:[#allocation5 + $0x10] sm:$0xff] %vm36_vm0, %v2385_v15  ;;  %2396 = vst.msk [vmem:[#allocation8 + $0x10] sm:$0xff] %vm36_vm0, %v2385_v15 }
0x2861   :  { %1219 = vst.msk [vmem:[#allocation5 + $0x8] sm:$0xff] %vm36_vm0, %v1215_v62  ;;  %1223 = vst.msk [vmem:[#allocation8 + $0x8] sm:$0xff] %vm36_vm0, %v1215_v62  ;;  %p3135_p3 = por %p3134_p2, %p3133_p1 }
0x2863   :  { %v1574_v60 = vpop.permute.xlu0 %1573  ;;  %v2387_v55 = vpop.permute.xlu1 %2386  ;;  %p3136_p4 = pnand %p3135_p3, %p3129_p0 }
0x2864   :  { %1579 = vst.msk [vmem:[%s4010_s7] sm:$0xf] %vm399_vm2, %v1574_v60 }
0x2865   :  { %2391 = vst.msk [vmem:[#allocation5 + $0x18] sm:$0xff] %vm36_vm0, %v2387_v55  ;;  %2397 = vst.msk [vmem:[#allocation8 + $0x18] sm:$0xff] %vm36_vm0, %v2387_v55 }
0x2866   :  { %3139 = shalt.err (!%p3136_p4)
}
0x2867   :  { %s3178_s24 = smov 128   ;;  %s3179_s25 = smov 8   ;;  %v1686_v23 = vpop.permute.xlu0 %1685  ;;  %v1576_v6 = vpop.permute.xlu1 %1575 }
0x2868   :  { %2423 = dma.vmem_to_hbm [thread:$0]  %s2418_s22, 512, %s4012_s9, [#allocation9], %s3178_s24, %s3178_s24, %s3179_s25  }
0x2869   :  { %2526 = vst.msk [vmem:[%s4010_s7 + $0x8] sm:$0xf] %vm399_vm2, %v1686_v23  ;;  %1580 = vst.msk [vmem:[%s4010_s7 + $0x4] sm:$0xf] %vm399_vm2, %v1576_v6  ;;  %s3180_s27 = smov [#allocation6]  }
0x286a   :  { %s2405_s28 = sshll.u32 %s3180_s27, 4  ;;  %s2406_s28 = int_to_ptr.vmem [resolvable:$true] %s2405_s28 }
0x286b   :  { %v1799_v56 = vpop.permute.xlu0 %1798  ;;  %v1688_v32 = vpop.permute.xlu1 %1687  ;;  %s3148_s10 = scalar_lea.vmem %s2406_s28, 512  ;;  %p3153_p6 = scmp.lt.s32.totalorder %s2406_s28, %s2406_s28 }
0x286c   :  { %2533 = vst.msk [vmem:[%s4010_s7 + $0x10] sm:$0xf] %vm399_vm2, %v1799_v56  ;;  %2527 = vst.msk [vmem:[%s4010_s7 + $0xc] sm:$0xf] %vm399_vm2, %v1688_v32  ;;  %p3149_p5 = scmp.ne.s32.totalorder %s2406_s28, %s3148_s10  ;;  %p3154_p7 = scmp.lt.s32.totalorder %s3148_s10, %s3148_s10 }
0x286e   :  { %p3155_p8 = por %p3154_p7, %p3153_p6 }
0x286f   :  { %v1912_v33 = vpop.permute.xlu0 %1911  ;;  %v1801_v39 = vpop.permute.xlu1 %1800 }
0x2870   :  { %2540 = vst.msk [vmem:[%s4010_s7 + $0x18] sm:$0xf] %vm399_vm2, %v1912_v33  ;;  %2534 = vst.msk [vmem:[%s4010_s7 + $0x14] sm:$0xf] %vm399_vm2, %v1801_v39  ;;  %p3156_p9 = pnand %p3155_p8, %p3149_p5 }
0x2873   :  { %v2025_v51 = vpop.permute.xlu0 %2024  ;;  %v1914_v18 = vpop.permute.xlu1 %1913 }
0x2874   :  { %2547 = vst.msk [vmem:[%s4010_s7 + $0x20] sm:$0xf] %vm399_vm2, %v2025_v51  ;;  %2541 = vst.msk [vmem:[%s4010_s7 + $0x1c] sm:$0xf] %vm399_vm2, %v1914_v18 }
0x2877   :  { %v2138_v43 = vpop.permute.xlu0 %2137  ;;  %v2027_v44 = vpop.permute.xlu1 %2026 }
0x2878   :  { %2554 = vst.msk [vmem:[%s4010_s7 + $0x28] sm:$0xf] %vm399_vm2, %v2138_v43  ;;  %2548 = vst.msk [vmem:[%s4010_s7 + $0x24] sm:$0xf] %vm399_vm2, %v2027_v44 }
0x287b   :  { %v2251_v45 = vpop.permute.xlu0 %2250  ;;  %v2140_v47 = vpop.permute.xlu1 %2139 }
0x287c   :  { %2561 = vst.msk [vmem:[%s4010_s7 + $0x30] sm:$0xf] %vm399_vm2, %v2251_v45  ;;  %2555 = vst.msk [vmem:[%s4010_s7 + $0x2c] sm:$0xf] %vm399_vm2, %v2140_v47 }
0x287f   :  { %v2253_v46 = vpop.permute.xlu1 %2252 }
0x2880   :  { %2562 = vst.msk [vmem:[%s4010_s7 + $0x34] sm:$0xf] %vm399_vm2, %v2253_v46 }
0x28c8   :  { %v2375_v27 = vpop.permute.xlu0 %2374 }
0x28c9   :  { %2380 = vst.msk [vmem:[#allocation4 + $0x10] sm:$0xff] %vm36_vm0, %v2375_v27  ;;  %2393 = vst.msk [vmem:[#allocation6 + $0x10] sm:$0xff] %vm36_vm0, %v2375_v27 }
0x28cc   :  { %v2364_v5 = vpop.permute.xlu0 %2363  ;;  %v2377_v38 = vpop.permute.xlu1 %2376 }
0x28cd   :  { %2568 = vst.msk [vmem:[%s4010_s7 + $0x38] sm:$0xf] %vm399_vm2, %v2364_v5 }
0x28ce   :  { %2381 = vst.msk [vmem:[#allocation4 + $0x18] sm:$0xff] %vm36_vm0, %v2377_v38  ;;  %2394 = vst.msk [vmem:[#allocation6 + $0x18] sm:$0xff] %vm36_vm0, %v2377_v38 }
0x28cf   :  { %3159 = shalt.err (!%p3156_p9)
}
0x28d0   :  { %2411 = dma.vmem_to_hbm [thread:$0]  %s2406_s28, 512, %s4011_s8, [#allocation7], %s3178_s24, %s3178_s24, %s3179_s25   ;;  %v2366_v50 = vpop.permute.xlu1 %2365 }
0x28d1   :  { %2569 = vst.msk [vmem:[%s4010_s7 + $0x3c] sm:$0xf] %vm399_vm2, %v2366_v50 }
0x28d2   :  { %3168 = dma.done.wait [#allocation7], 512  }
0x28d3   :  { %3169 = vsyncadd [#allocation7], 4294966784 }
0x28d4   :  { %3170 = dma.done.wait [#allocation9], 512  }
0x28d5   :  { %3171 = vsyncadd [#allocation9], 4294966784 }
0x28d6   :  { %2432 = vsyncpa [#allocation7], 1 }
0x28d7   :  { %2433 = vsyncpa [#allocation9], 1 }

</bundles_post_ra>
